<compile_context>
chip_gen: v5e
topology: v5e:2x2
jax: 0.10.0
libtpu: 0.0.40
codegen_flags: <defaults>
</compile_context>

<pallas_src>
import jax
import jax.numpy as jnp
from jax import lax
from jax.experimental import pallas as pl
from jax.experimental.pallas import tpu as pltpu


# ------------------------------ Pallas kernel -------------------------------

def _fused_bilstm_tagger_kernel(x_ref, mask_ref, *refs):
    """Whole post-embedding BiLSTM tagger in one Pallas invocation (no grid).

    refs layout: for each layer: (w_ih_f, w_hh_f, b_f, w_ih_b, w_hh_b, b_b),
    then lin_w (padded to 128 cols), lin_b (padded), then the output ref.
    """
    num_layers = (len(refs) - 3) // 6
    lstm_refs = refs[:6 * num_layers]
    lin_w_ref, lin_b_ref, out_ref = refs[6 * num_layers:]

    T, B, _ = x_ref.shape
    H = lstm_refs[1].shape[0]                      # w_hh: (H, 4H)

    # Static lane mask selecting the `g` (cell candidate) quarter of the
    # (B, 4H) gate register: lets us run ONE full-width sigmoid and ONE
    # full-width tanh instead of four quarter-width activation passes.
    lane = lax.broadcasted_iota(jnp.int32, (B, 4 * H), 1)
    g_lane = (lane >= 2 * H) & (lane < 3 * H)

    # Per-timestep packed-sequence validity masks, loaded/compared once and
    # reused by every direction of every layer.
    valid = [mask_ref[t] > 0.0 for t in range(T)]   # each (B, H) bool

    def run_direction(xs, w_ih_ref, w_hh_ref, b_ref, reverse):
        # xs[t] is a list of (B, chunk) input pieces; split W_ih rows to match
        # so layer-1's bidirectional input never needs a concatenate.
        chunk_dims = [c.shape[-1] for c in xs[0]]
        w_ih_chunks = []
        row = 0
        for d in chunk_dims:
            w_ih_chunks.append(w_ih_ref[row:row + d, :])
            row += d
        w_hh = w_hh_ref[...]
        bias = b_ref[...]

        h = jnp.zeros((B, H), jnp.float32)
        c = jnp.zeros((B, H), jnp.float32)
        outs = [None] * T
        steps = range(T - 1, -1, -1) if reverse else range(T)
        for t in steps:
            gates = jnp.dot(h, w_hh, preferred_element_type=jnp.float32) + bias
            for chunk, w in zip(xs[t], w_ih_chunks):
                gates = gates + jnp.dot(chunk, w,
                                        preferred_element_type=jnp.float32)
            # Lane-dense activations on the full (B, 4H) register.
            act = jnp.where(g_lane, jnp.tanh(gates), jax.nn.sigmoid(gates))
            i_g = act[:, 0 * H:1 * H]
            f_g = act[:, 1 * H:2 * H]
            g_g = act[:, 2 * H:3 * H]
            o_g = act[:, 3 * H:4 * H]
            c_new = f_g * c + i_g * g_g
            h_new = o_g * jnp.tanh(c_new)
            m = valid[t]
            h = jnp.where(m, h_new, h)          # freeze state past length[b]
            c = jnp.where(m, c_new, c)
            outs[t] = jnp.where(m, h_new, 0.0)  # padded steps emit zeros
        return outs

    # Stacked bidirectional layers, all state kept as in-register values.
    xs = [[x_ref[t]] for t in range(T)]
    for layer in range(num_layers):
        (w_ih_f, w_hh_f, b_f,
         w_ih_b, w_hh_b, b_b) = lstm_refs[6 * layer:6 * layer + 6]
        outs_f = run_direction(xs, w_ih_f, w_hh_f, b_f, reverse=False)
        outs_b = run_direction(xs, w_ih_b, w_hh_b, b_b, reverse=True)
        xs = [[outs_f[t], outs_b[t]] for t in range(T)]

    # Fused classifier head.  lin_w/lin_b are pre-padded to 128 output lanes,
    # so each store below is a full, unmasked (B, 128) vreg store.
    lin_w_f = lin_w_ref[0:H, :]
    lin_w_b = lin_w_ref[H:2 * H, :]
    lin_b = lin_b_ref[...]
    for t in range(T):
        hf, hb = xs[t]
        out_ref[t] = (jnp.dot(hf, lin_w_f, preferred_element_type=jnp.float32)
                      + jnp.dot(hb, lin_w_b, preferred_element_type=jnp.float32)
                      + lin_b)


# ------------------------------ model wrapper --------------------------------

def bilstm_tagger_forward(params, text, text_prefix, text_suffix, text_lengths):
    # Embedding lookups (gathers) kept as XLA glue.
    emb = (jnp.take(params["prefix_emb"], text_prefix, axis=0)
           + jnp.take(params["word_emb"], text, axis=0)
           + jnp.take(params["suffix_emb"], text_suffix, axis=0))     # (B,T,E)

    x = jnp.transpose(emb, (1, 0, 2)).astype(jnp.float32)             # (T,B,E)
    T, B, _ = x.shape
    H = params["lstm"][0]["w_hh_f"].shape[0]
    num_classes = params["lin_w"].shape[1]
    n_pad = ((num_classes + 127) // 128) * 128

    # Precomputed packed-sequence validity mask, hoisted out of the kernel's
    # recurrence (t < length[b]), broadcast over H so no in-loop broadcasts.
    lengths = text_lengths.astype(jnp.int32)
    mask2d = jnp.arange(T, dtype=jnp.int32)[:, None] < lengths[None, :]
    mask = jnp.broadcast_to(mask2d[:, :, None], (T, B, H)).astype(jnp.float32)

    # Zero-pad classifier weights to 128 output lanes (lane-dense stores).
    lin_w = jnp.zeros((2 * H, n_pad), jnp.float32).at[:, :num_classes].set(
        params["lin_w"])
    lin_b = jnp.zeros((1, n_pad), jnp.float32).at[:, :num_classes].set(
        params["lin_b"])

    lstm_args = []
    for layer in params["lstm"]:
        lstm_args += [layer["w_ih_f"], layer["w_hh_f"], layer["b_f"],
                      layer["w_ih_b"], layer["w_hh_b"], layer["b_b"]]

    inputs = [x, mask] + lstm_args + [lin_w, lin_b]
    vmem_specs = [pl.BlockSpec(memory_space=pltpu.MemorySpace.VMEM)
                  for _ in inputs]

    out = pl.pallas_call(
        _fused_bilstm_tagger_kernel,
        out_shape=jax.ShapeDtypeStruct((T, B, n_pad), jnp.float32),
        in_specs=vmem_specs,
        out_specs=pl.BlockSpec(memory_space=pltpu.MemorySpace.VMEM),
    )(*inputs)

    # Back to batch_first and drop the lane padding.
    return jnp.transpose(out, (1, 0, 2))[:, :, :num_classes]          # (B,T,C)


# --------------------------- pure-JAX reference ------------------------------

def _ref_lstm_dir(x, lengths, w_ih, w_hh, b, reverse):
    T, B, _ = x.shape
    H = w_hh.shape[0]
    ts = jnp.arange(T)[::-1] if reverse else jnp.arange(T)

    def step(carry, t):
        h, c = carry
        gates = x[t] @ w_ih + h @ w_hh + b
        i_g = jax.nn.sigmoid(gates[:, :H])
        f_g = jax.nn.sigmoid(gates[:, H:2 * H])
        g_g = jnp.tanh(gates[:, 2 * H:3 * H])
        o_g = jax.nn.sigmoid(gates[:, 3 * H:])
        c_new = f_g * c + i_g * g_g
        h_new = o_g * jnp.tanh(c_new)
        valid = t < lengths
        h = jnp.where(valid, h_new, h)
        c = jnp.where(valid, c_new, c)
        return (h, c), jnp.where(valid, h_new, 0.0)

    _, outs = lax.scan(step, (jnp.zeros((B, H)), jnp.zeros((B, H))), ts)
    return outs[::-1] if reverse else outs


def bilstm_tagger_reference(params, text, text_prefix, text_suffix, text_lengths):
    emb = (jnp.take(params["prefix_emb"], text_prefix, axis=0)
           + jnp.take(params["word_emb"], text, axis=0)
           + jnp.take(params["suffix_emb"], text_suffix, axis=0))
    x = jnp.transpose(emb, (1, 0, 2)).astype(jnp.float32)
    lengths = text_lengths.astype(jnp.int32).reshape(-1, 1)
    for layer in params["lstm"]:
        out_f = _ref_lstm_dir(x, lengths, layer["w_ih_f"], layer["w_hh_f"],
                              layer["b_f"], False)
        out_b = _ref_lstm_dir(x, lengths, layer["w_ih_b"], layer["w_hh_b"],
                              layer["b_b"], True)
        x = jnp.concatenate([out_f, out_b], axis=-1)
    out = jnp.transpose(x, (1, 0, 2))
    return out @ params["lin_w"] + params["lin_b"]


# ------------------------------- param init ---------------------------------

def init_params(key, vocab_size, prefix_vocab_size, suffix_vocab_size,
                embedding_dim, pad_index, lstm_layers, lstm_units, num_classes):
    H = lstm_units
    ks = iter(jax.random.split(key, 64))

    def emb(k, n):
        e = 0.1 * jax.random.normal(k, (n, embedding_dim), jnp.float32)
        return e.at[pad_index].set(0.0)   # padding_idx row zeroed

    def unif(k, shape, bound):
        return jax.random.uniform(k, shape, jnp.float32, -bound, bound)

    params = {
        "word_emb": emb(next(ks), vocab_size),
        "prefix_emb": emb(next(ks), prefix_vocab_size),
        "suffix_emb": emb(next(ks), suffix_vocab_size),
        "lstm": [],
    }
    bound = 1.0 / jnp.sqrt(H)
    for layer in range(lstm_layers):
        in_dim = embedding_dim if layer == 0 else 2 * H
        layer_p = {}
        for d in ("f", "b"):
            layer_p[f"w_ih_{d}"] = unif(next(ks), (in_dim, 4 * H), bound)
            layer_p[f"w_hh_{d}"] = unif(next(ks), (H, 4 * H), bound)
            # b_ih + b_hh merged into one bias (gate order i, f, g, o)
            layer_p[f"b_{d}"] = (unif(next(ks), (1, 4 * H), bound)
                                 + unif(next(ks), (1, 4 * H), bound))
        params["lstm"].append(layer_p)

    lin_bound = 1.0 / jnp.sqrt(2 * H)
    params["lin_w"] = unif(next(ks), (2 * H, num_classes), lin_bound)
    params["lin_b"] = unif(next(ks), (1, num_classes), lin_bound)
    return params


# ---------------------------------- main -------------------------------------

if __name__ == "__main__":
    # Small, module-consistent sizes.
    B, T = 8, 8
    vocab_size, prefix_vocab_size, suffix_vocab_size = 50, 30, 30
    embedding_dim, pad_index = 32, 0
    lstm_layers, lstm_units, num_classes = 2, 32, 16

    key = jax.random.PRNGKey(0)
    k_par, k_txt, k_pre, k_suf = jax.random.split(key, 4)

    params = init_params(k_par, vocab_size, prefix_vocab_size,
                         suffix_vocab_size, embedding_dim, pad_index,
                         lstm_layers, lstm_units, num_classes)

    # Sorted-descending lengths (pack_padded_sequence default enforce_sorted).
    text_lengths = jnp.array([8, 7, 6, 5, 4, 3, 2, 1], dtype=jnp.int32)
    pos = jnp.arange(T)[None, :]
    pad_mask = pos < text_lengths[:, None]                   # (B, T)

    def make_tokens(k, vsize):
        toks = jax.random.randint(k, (B, T), 1, vsize, dtype=jnp.int32)
        return jnp.where(pad_mask, toks, pad_index)

    text = make_tokens(k_txt, vocab_size)
    text_prefix = make_tokens(k_pre, prefix_vocab_size)
    text_suffix = make_tokens(k_suf, suffix_vocab_size)

    out = bilstm_tagger_forward(params, text, text_prefix, text_suffix,
                                text_lengths)
    out = jax.block_until_ready(out)

    ref = bilstm_tagger_reference(params, text, text_prefix, text_suffix,
                                  text_lengths)
    assert out.shape == (B, T, num_classes)
    assert jnp.allclose(out, ref, atol=1e-5, rtol=1e-5)

    print("KERNEL_OK")
</pallas_src>

<mosaic_0001>
module attributes {stable_mosaic.version = 11 : i64} {
  func.func @_fused_bilstm_tagger_kernel(%arg0: memref<8x8x32xf32, #tpu.memory_space<vmem>>, %arg1: memref<8x8x32xf32, #tpu.memory_space<vmem>>, %arg2: memref<32x128xf32, #tpu.memory_space<vmem>>, %arg3: memref<32x128xf32, #tpu.memory_space<vmem>>, %arg4: memref<1x128xf32, #tpu.memory_space<vmem>>, %arg5: memref<32x128xf32, #tpu.memory_space<vmem>>, %arg6: memref<32x128xf32, #tpu.memory_space<vmem>>, %arg7: memref<1x128xf32, #tpu.memory_space<vmem>>, %arg8: memref<64x128xf32, #tpu.memory_space<vmem>>, %arg9: memref<32x128xf32, #tpu.memory_space<vmem>>, %arg10: memref<1x128xf32, #tpu.memory_space<vmem>>, %arg11: memref<64x128xf32, #tpu.memory_space<vmem>>, %arg12: memref<32x128xf32, #tpu.memory_space<vmem>>, %arg13: memref<1x128xf32, #tpu.memory_space<vmem>>, %arg14: memref<64x128xf32, #tpu.memory_space<vmem>>, %arg15: memref<1x128xf32, #tpu.memory_space<vmem>>, %arg16: memref<8x8x128xf32, #tpu.memory_space<vmem>>) attributes {dimension_semantics = [], scalar_prefetch = 0 : i64, scratch_operands = 0 : i64, tpu.core_type = #tpu.core_type<tc>} {
    %0 = tpu.iota {dimensions = array<i32: 1>} : vector<8x128xi32>
    %c64_i32 = arith.constant 64 : i32
    %1 = vector.broadcast %c64_i32 : i32 to vector<8x128xi32>
    %2 = arith.cmpi sge, %0, %1 : vector<8x128xi32>
    %c96_i32 = arith.constant 96 : i32
    %3 = vector.broadcast %c96_i32 : i32 to vector<8x128xi32>
    %4 = arith.cmpi slt, %0, %3 : vector<8x128xi32>
    %5 = arith.andi %2, %4 : vector<8x128xi1>
    %c0 = arith.constant 0 : index
    %c0_0 = arith.constant 0 : index
    %c0_1 = arith.constant 0 : index
    %6 = vector.load %arg1[%c0, %c0_0, %c0_1] : memref<8x8x32xf32, #tpu.memory_space<vmem>>, vector<1x8x32xf32>
    %7 = vector.shape_cast %6 : vector<1x8x32xf32> to vector<8x32xf32>
    %cst = arith.constant 0.000000e+00 : f32
    %8 = vector.broadcast %cst : f32 to vector<8x32xf32>
    %9 = arith.cmpf ogt, %7, %8 : vector<8x32xf32>
    %c1 = arith.constant 1 : index
    %c0_2 = arith.constant 0 : index
    %c0_3 = arith.constant 0 : index
    %10 = vector.load %arg1[%c1, %c0_2, %c0_3] : memref<8x8x32xf32, #tpu.memory_space<vmem>>, vector<1x8x32xf32>
    %11 = vector.shape_cast %10 : vector<1x8x32xf32> to vector<8x32xf32>
    %cst_4 = arith.constant 0.000000e+00 : f32
    %12 = vector.broadcast %cst_4 : f32 to vector<8x32xf32>
    %13 = arith.cmpf ogt, %11, %12 : vector<8x32xf32>
    %c2 = arith.constant 2 : index
    %c0_5 = arith.constant 0 : index
    %c0_6 = arith.constant 0 : index
    %14 = vector.load %arg1[%c2, %c0_5, %c0_6] : memref<8x8x32xf32, #tpu.memory_space<vmem>>, vector<1x8x32xf32>
    %15 = vector.shape_cast %14 : vector<1x8x32xf32> to vector<8x32xf32>
    %cst_7 = arith.constant 0.000000e+00 : f32
    %16 = vector.broadcast %cst_7 : f32 to vector<8x32xf32>
    %17 = arith.cmpf ogt, %15, %16 : vector<8x32xf32>
    %c3 = arith.constant 3 : index
    %c0_8 = arith.constant 0 : index
    %c0_9 = arith.constant 0 : index
    %18 = vector.load %arg1[%c3, %c0_8, %c0_9] : memref<8x8x32xf32, #tpu.memory_space<vmem>>, vector<1x8x32xf32>
    %19 = vector.shape_cast %18 : vector<1x8x32xf32> to vector<8x32xf32>
    %cst_10 = arith.constant 0.000000e+00 : f32
    %20 = vector.broadcast %cst_10 : f32 to vector<8x32xf32>
    %21 = arith.cmpf ogt, %19, %20 : vector<8x32xf32>
    %c4 = arith.constant 4 : index
    %c0_11 = arith.constant 0 : index
    %c0_12 = arith.constant 0 : index
    %22 = vector.load %arg1[%c4, %c0_11, %c0_12] : memref<8x8x32xf32, #tpu.memory_space<vmem>>, vector<1x8x32xf32>
    %23 = vector.shape_cast %22 : vector<1x8x32xf32> to vector<8x32xf32>
    %cst_13 = arith.constant 0.000000e+00 : f32
    %24 = vector.broadcast %cst_13 : f32 to vector<8x32xf32>
    %25 = arith.cmpf ogt, %23, %24 : vector<8x32xf32>
    %c5 = arith.constant 5 : index
    %c0_14 = arith.constant 0 : index
    %c0_15 = arith.constant 0 : index
    %26 = vector.load %arg1[%c5, %c0_14, %c0_15] : memref<8x8x32xf32, #tpu.memory_space<vmem>>, vector<1x8x32xf32>
    %27 = vector.shape_cast %26 : vector<1x8x32xf32> to vector<8x32xf32>
    %cst_16 = arith.constant 0.000000e+00 : f32
    %28 = vector.broadcast %cst_16 : f32 to vector<8x32xf32>
    %29 = arith.cmpf ogt, %27, %28 : vector<8x32xf32>
    %c6 = arith.constant 6 : index
    %c0_17 = arith.constant 0 : index
    %c0_18 = arith.constant 0 : index
    %30 = vector.load %arg1[%c6, %c0_17, %c0_18] : memref<8x8x32xf32, #tpu.memory_space<vmem>>, vector<1x8x32xf32>
    %31 = vector.shape_cast %30 : vector<1x8x32xf32> to vector<8x32xf32>
    %cst_19 = arith.constant 0.000000e+00 : f32
    %32 = vector.broadcast %cst_19 : f32 to vector<8x32xf32>
    %33 = arith.cmpf ogt, %31, %32 : vector<8x32xf32>
    %c7 = arith.constant 7 : index
    %c0_20 = arith.constant 0 : index
    %c0_21 = arith.constant 0 : index
    %34 = vector.load %arg1[%c7, %c0_20, %c0_21] : memref<8x8x32xf32, #tpu.memory_space<vmem>>, vector<1x8x32xf32>
    %35 = vector.shape_cast %34 : vector<1x8x32xf32> to vector<8x32xf32>
    %cst_22 = arith.constant 0.000000e+00 : f32
    %36 = vector.broadcast %cst_22 : f32 to vector<8x32xf32>
    %37 = arith.cmpf ogt, %35, %36 : vector<8x32xf32>
    %c0_23 = arith.constant 0 : index
    %c0_24 = arith.constant 0 : index
    %c0_25 = arith.constant 0 : index
    %38 = vector.load %arg0[%c0_23, %c0_24, %c0_25] : memref<8x8x32xf32, #tpu.memory_space<vmem>>, vector<1x8x32xf32>
    %39 = vector.shape_cast %38 : vector<1x8x32xf32> to vector<8x32xf32>
    %c1_26 = arith.constant 1 : index
    %c0_27 = arith.constant 0 : index
    %c0_28 = arith.constant 0 : index
    %40 = vector.load %arg0[%c1_26, %c0_27, %c0_28] : memref<8x8x32xf32, #tpu.memory_space<vmem>>, vector<1x8x32xf32>
    %41 = vector.shape_cast %40 : vector<1x8x32xf32> to vector<8x32xf32>
    %c2_29 = arith.constant 2 : index
    %c0_30 = arith.constant 0 : index
    %c0_31 = arith.constant 0 : index
    %42 = vector.load %arg0[%c2_29, %c0_30, %c0_31] : memref<8x8x32xf32, #tpu.memory_space<vmem>>, vector<1x8x32xf32>
    %43 = vector.shape_cast %42 : vector<1x8x32xf32> to vector<8x32xf32>
    %c3_32 = arith.constant 3 : index
    %c0_33 = arith.constant 0 : index
    %c0_34 = arith.constant 0 : index
    %44 = vector.load %arg0[%c3_32, %c0_33, %c0_34] : memref<8x8x32xf32, #tpu.memory_space<vmem>>, vector<1x8x32xf32>
    %45 = vector.shape_cast %44 : vector<1x8x32xf32> to vector<8x32xf32>
    %c4_35 = arith.constant 4 : index
    %c0_36 = arith.constant 0 : index
    %c0_37 = arith.constant 0 : index
    %46 = vector.load %arg0[%c4_35, %c0_36, %c0_37] : memref<8x8x32xf32, #tpu.memory_space<vmem>>, vector<1x8x32xf32>
    %47 = vector.shape_cast %46 : vector<1x8x32xf32> to vector<8x32xf32>
    %c5_38 = arith.constant 5 : index
    %c0_39 = arith.constant 0 : index
    %c0_40 = arith.constant 0 : index
    %48 = vector.load %arg0[%c5_38, %c0_39, %c0_40] : memref<8x8x32xf32, #tpu.memory_space<vmem>>, vector<1x8x32xf32>
    %49 = vector.shape_cast %48 : vector<1x8x32xf32> to vector<8x32xf32>
    %c6_41 = arith.constant 6 : index
    %c0_42 = arith.constant 0 : index
    %c0_43 = arith.constant 0 : index
    %50 = vector.load %arg0[%c6_41, %c0_42, %c0_43] : memref<8x8x32xf32, #tpu.memory_space<vmem>>, vector<1x8x32xf32>
    %51 = vector.shape_cast %50 : vector<1x8x32xf32> to vector<8x32xf32>
    %c7_44 = arith.constant 7 : index
    %c0_45 = arith.constant 0 : index
    %c0_46 = arith.constant 0 : index
    %52 = vector.load %arg0[%c7_44, %c0_45, %c0_46] : memref<8x8x32xf32, #tpu.memory_space<vmem>>, vector<1x8x32xf32>
    %53 = vector.shape_cast %52 : vector<1x8x32xf32> to vector<8x32xf32>
    %c0_47 = arith.constant 0 : index
    %c0_48 = arith.constant 0 : index
    %54 = vector.load %arg2[%c0_47, %c0_48] : memref<32x128xf32, #tpu.memory_space<vmem>>, vector<32x128xf32>
    %c0_49 = arith.constant 0 : index
    %c0_50 = arith.constant 0 : index
    %55 = vector.load %arg3[%c0_49, %c0_50] : memref<32x128xf32, #tpu.memory_space<vmem>>, vector<32x128xf32>
    %c0_51 = arith.constant 0 : index
    %c0_52 = arith.constant 0 : index
    %56 = vector.load %arg4[%c0_51, %c0_52] : memref<1x128xf32, #tpu.memory_space<vmem>>, vector<1x128xf32>
    %cst_53 = arith.constant 0.000000e+00 : f32
    %57 = vector.broadcast %cst_53 : f32 to vector<8x32xf32>
    %cst_54 = arith.constant 0.000000e+00 : f32
    %58 = vector.broadcast %cst_54 : f32 to vector<8x32xf32>
    %cst_55 = arith.constant dense<0.000000e+00> : vector<8x128xf32>
    %59 = tpu.matmul %57, %55, %cst_55 {dimension_numbers = #tpu.dot_dimension_numbers<[1], [0], [0], [1], [0, 0, 1, 1], [], []>} : vector<8x32xf32>, vector<32x128xf32>, vector<8x128xf32> -> vector<8x128xf32>
    %60 = vector.broadcast %56 : vector<1x128xf32> to vector<8x128xf32>
    %61 = arith.addf %59, %60 : vector<8x128xf32>
    %cst_56 = arith.constant dense<0.000000e+00> : vector<8x128xf32>
    %62 = tpu.matmul %39, %54, %cst_56 {dimension_numbers = #tpu.dot_dimension_numbers<[1], [0], [0], [1], [0, 0, 1, 1], [], []>} : vector<8x32xf32>, vector<32x128xf32>, vector<8x128xf32> -> vector<8x128xf32>
    %63 = arith.addf %61, %62 : vector<8x128xf32>
    %64 = math.tanh %63 : vector<8x128xf32>
    %65 = arith.negf %63 : vector<8x128xf32>
    %66 = math.exp %65 : vector<8x128xf32>
    %cst_57 = arith.constant 1.000000e+00 : f32
    %67 = vector.broadcast %cst_57 : f32 to vector<8x128xf32>
    %68 = arith.addf %67, %66 : vector<8x128xf32>
    %69 = arith.divf %67, %68 : vector<8x128xf32>
    %70 = arith.select %5, %64, %69 : vector<8x128xi1>, vector<8x128xf32>
    %71 = vector.extract_strided_slice %70 {offsets = [0, 0], sizes = [8, 32], strides = [1, 1]} : vector<8x128xf32> to vector<8x32xf32>
    %72 = vector.extract_strided_slice %70 {offsets = [0, 32], sizes = [8, 32], strides = [1, 1]} : vector<8x128xf32> to vector<8x32xf32>
    %73 = vector.extract_strided_slice %70 {offsets = [0, 64], sizes = [8, 32], strides = [1, 1]} : vector<8x128xf32> to vector<8x32xf32>
    %74 = vector.extract_strided_slice %70 {offsets = [0, 96], sizes = [8, 32], strides = [1, 1]} : vector<8x128xf32> to vector<8x32xf32>
    %75 = arith.mulf %72, %58 : vector<8x32xf32>
    %76 = arith.mulf %71, %73 : vector<8x32xf32>
    %77 = arith.addf %75, %76 : vector<8x32xf32>
    %78 = math.tanh %77 : vector<8x32xf32>
    %79 = arith.mulf %74, %78 : vector<8x32xf32>
    %80 = arith.select %9, %79, %57 : vector<8x32xi1>, vector<8x32xf32>
    %81 = arith.select %9, %77, %58 : vector<8x32xi1>, vector<8x32xf32>
    %cst_58 = arith.constant 0.000000e+00 : f32
    %82 = vector.broadcast %cst_58 : f32 to vector<8x32xf32>
    %83 = arith.select %9, %79, %82 : vector<8x32xi1>, vector<8x32xf32>
    %cst_59 = arith.constant dense<0.000000e+00> : vector<8x128xf32>
    %84 = tpu.matmul %80, %55, %cst_59 {dimension_numbers = #tpu.dot_dimension_numbers<[1], [0], [0], [1], [0, 0, 1, 1], [], []>} : vector<8x32xf32>, vector<32x128xf32>, vector<8x128xf32> -> vector<8x128xf32>
    %85 = vector.broadcast %56 : vector<1x128xf32> to vector<8x128xf32>
    %86 = arith.addf %84, %85 : vector<8x128xf32>
    %cst_60 = arith.constant dense<0.000000e+00> : vector<8x128xf32>
    %87 = tpu.matmul %41, %54, %cst_60 {dimension_numbers = #tpu.dot_dimension_numbers<[1], [0], [0], [1], [0, 0, 1, 1], [], []>} : vector<8x32xf32>, vector<32x128xf32>, vector<8x128xf32> -> vector<8x128xf32>
    %88 = arith.addf %86, %87 : vector<8x128xf32>
    %89 = math.tanh %88 : vector<8x128xf32>
    %90 = arith.negf %88 : vector<8x128xf32>
    %91 = math.exp %90 : vector<8x128xf32>
    %cst_61 = arith.constant 1.000000e+00 : f32
    %92 = vector.broadcast %cst_61 : f32 to vector<8x128xf32>
    %93 = arith.addf %92, %91 : vector<8x128xf32>
    %94 = arith.divf %92, %93 : vector<8x128xf32>
    %95 = arith.select %5, %89, %94 : vector<8x128xi1>, vector<8x128xf32>
    %96 = vector.extract_strided_slice %95 {offsets = [0, 0], sizes = [8, 32], strides = [1, 1]} : vector<8x128xf32> to vector<8x32xf32>
    %97 = vector.extract_strided_slice %95 {offsets = [0, 32], sizes = [8, 32], strides = [1, 1]} : vector<8x128xf32> to vector<8x32xf32>
    %98 = vector.extract_strided_slice %95 {offsets = [0, 64], sizes = [8, 32], strides = [1, 1]} : vector<8x128xf32> to vector<8x32xf32>
    %99 = vector.extract_strided_slice %95 {offsets = [0, 96], sizes = [8, 32], strides = [1, 1]} : vector<8x128xf32> to vector<8x32xf32>
    %100 = arith.mulf %97, %81 : vector<8x32xf32>
    %101 = arith.mulf %96, %98 : vector<8x32xf32>
    %102 = arith.addf %100, %101 : vector<8x32xf32>
    %103 = math.tanh %102 : vector<8x32xf32>
    %104 = arith.mulf %99, %103 : vector<8x32xf32>
    %105 = arith.select %13, %104, %80 : vector<8x32xi1>, vector<8x32xf32>
    %106 = arith.select %13, %102, %81 : vector<8x32xi1>, vector<8x32xf32>
    %cst_62 = arith.constant 0.000000e+00 : f32
    %107 = vector.broadcast %cst_62 : f32 to vector<8x32xf32>
    %108 = arith.select %13, %104, %107 : vector<8x32xi1>, vector<8x32xf32>
    %cst_63 = arith.constant dense<0.000000e+00> : vector<8x128xf32>
    %109 = tpu.matmul %105, %55, %cst_63 {dimension_numbers = #tpu.dot_dimension_numbers<[1], [0], [0], [1], [0, 0, 1, 1], [], []>} : vector<8x32xf32>, vector<32x128xf32>, vector<8x128xf32> -> vector<8x128xf32>
    %110 = vector.broadcast %56 : vector<1x128xf32> to vector<8x128xf32>
    %111 = arith.addf %109, %110 : vector<8x128xf32>
    %cst_64 = arith.constant dense<0.000000e+00> : vector<8x128xf32>
    %112 = tpu.matmul %43, %54, %cst_64 {dimension_numbers = #tpu.dot_dimension_numbers<[1], [0], [0], [1], [0, 0, 1, 1], [], []>} : vector<8x32xf32>, vector<32x128xf32>, vector<8x128xf32> -> vector<8x128xf32>
    %113 = arith.addf %111, %112 : vector<8x128xf32>
    %114 = math.tanh %113 : vector<8x128xf32>
    %115 = arith.negf %113 : vector<8x128xf32>
    %116 = math.exp %115 : vector<8x128xf32>
    %cst_65 = arith.constant 1.000000e+00 : f32
    %117 = vector.broadcast %cst_65 : f32 to vector<8x128xf32>
    %118 = arith.addf %117, %116 : vector<8x128xf32>
    %119 = arith.divf %117, %118 : vector<8x128xf32>
    %120 = arith.select %5, %114, %119 : vector<8x128xi1>, vector<8x128xf32>
    %121 = vector.extract_strided_slice %120 {offsets = [0, 0], sizes = [8, 32], strides = [1, 1]} : vector<8x128xf32> to vector<8x32xf32>
    %122 = vector.extract_strided_slice %120 {offsets = [0, 32], sizes = [8, 32], strides = [1, 1]} : vector<8x128xf32> to vector<8x32xf32>
    %123 = vector.extract_strided_slice %120 {offsets = [0, 64], sizes = [8, 32], strides = [1, 1]} : vector<8x128xf32> to vector<8x32xf32>
    %124 = vector.extract_strided_slice %120 {offsets = [0, 96], sizes = [8, 32], strides = [1, 1]} : vector<8x128xf32> to vector<8x32xf32>
    %125 = arith.mulf %122, %106 : vector<8x32xf32>
    %126 = arith.mulf %121, %123 : vector<8x32xf32>
    %127 = arith.addf %125, %126 : vector<8x32xf32>
    %128 = math.tanh %127 : vector<8x32xf32>
    %129 = arith.mulf %124, %128 : vector<8x32xf32>
    %130 = arith.select %17, %129, %105 : vector<8x32xi1>, vector<8x32xf32>
    %131 = arith.select %17, %127, %106 : vector<8x32xi1>, vector<8x32xf32>
    %cst_66 = arith.constant 0.000000e+00 : f32
    %132 = vector.broadcast %cst_66 : f32 to vector<8x32xf32>
    %133 = arith.select %17, %129, %132 : vector<8x32xi1>, vector<8x32xf32>
    %cst_67 = arith.constant dense<0.000000e+00> : vector<8x128xf32>
    %134 = tpu.matmul %130, %55, %cst_67 {dimension_numbers = #tpu.dot_dimension_numbers<[1], [0], [0], [1], [0, 0, 1, 1], [], []>} : vector<8x32xf32>, vector<32x128xf32>, vector<8x128xf32> -> vector<8x128xf32>
    %135 = vector.broadcast %56 : vector<1x128xf32> to vector<8x128xf32>
    %136 = arith.addf %134, %135 : vector<8x128xf32>
    %cst_68 = arith.constant dense<0.000000e+00> : vector<8x128xf32>
    %137 = tpu.matmul %45, %54, %cst_68 {dimension_numbers = #tpu.dot_dimension_numbers<[1], [0], [0], [1], [0, 0, 1, 1], [], []>} : vector<8x32xf32>, vector<32x128xf32>, vector<8x128xf32> -> vector<8x128xf32>
    %138 = arith.addf %136, %137 : vector<8x128xf32>
    %139 = math.tanh %138 : vector<8x128xf32>
    %140 = arith.negf %138 : vector<8x128xf32>
    %141 = math.exp %140 : vector<8x128xf32>
    %cst_69 = arith.constant 1.000000e+00 : f32
    %142 = vector.broadcast %cst_69 : f32 to vector<8x128xf32>
    %143 = arith.addf %142, %141 : vector<8x128xf32>
    %144 = arith.divf %142, %143 : vector<8x128xf32>
    %145 = arith.select %5, %139, %144 : vector<8x128xi1>, vector<8x128xf32>
    %146 = vector.extract_strided_slice %145 {offsets = [0, 0], sizes = [8, 32], strides = [1, 1]} : vector<8x128xf32> to vector<8x32xf32>
    %147 = vector.extract_strided_slice %145 {offsets = [0, 32], sizes = [8, 32], strides = [1, 1]} : vector<8x128xf32> to vector<8x32xf32>
    %148 = vector.extract_strided_slice %145 {offsets = [0, 64], sizes = [8, 32], strides = [1, 1]} : vector<8x128xf32> to vector<8x32xf32>
    %149 = vector.extract_strided_slice %145 {offsets = [0, 96], sizes = [8, 32], strides = [1, 1]} : vector<8x128xf32> to vector<8x32xf32>
    %150 = arith.mulf %147, %131 : vector<8x32xf32>
    %151 = arith.mulf %146, %148 : vector<8x32xf32>
    %152 = arith.addf %150, %151 : vector<8x32xf32>
    %153 = math.tanh %152 : vector<8x32xf32>
    %154 = arith.mulf %149, %153 : vector<8x32xf32>
    %155 = arith.select %21, %154, %130 : vector<8x32xi1>, vector<8x32xf32>
    %156 = arith.select %21, %152, %131 : vector<8x32xi1>, vector<8x32xf32>
    %cst_70 = arith.constant 0.000000e+00 : f32
    %157 = vector.broadcast %cst_70 : f32 to vector<8x32xf32>
    %158 = arith.select %21, %154, %157 : vector<8x32xi1>, vector<8x32xf32>
    %cst_71 = arith.constant dense<0.000000e+00> : vector<8x128xf32>
    %159 = tpu.matmul %155, %55, %cst_71 {dimension_numbers = #tpu.dot_dimension_numbers<[1], [0], [0], [1], [0, 0, 1, 1], [], []>} : vector<8x32xf32>, vector<32x128xf32>, vector<8x128xf32> -> vector<8x128xf32>
    %160 = vector.broadcast %56 : vector<1x128xf32> to vector<8x128xf32>
    %161 = arith.addf %159, %160 : vector<8x128xf32>
    %cst_72 = arith.constant dense<0.000000e+00> : vector<8x128xf32>
    %162 = tpu.matmul %47, %54, %cst_72 {dimension_numbers = #tpu.dot_dimension_numbers<[1], [0], [0], [1], [0, 0, 1, 1], [], []>} : vector<8x32xf32>, vector<32x128xf32>, vector<8x128xf32> -> vector<8x128xf32>
    %163 = arith.addf %161, %162 : vector<8x128xf32>
    %164 = math.tanh %163 : vector<8x128xf32>
    %165 = arith.negf %163 : vector<8x128xf32>
    %166 = math.exp %165 : vector<8x128xf32>
    %cst_73 = arith.constant 1.000000e+00 : f32
    %167 = vector.broadcast %cst_73 : f32 to vector<8x128xf32>
    %168 = arith.addf %167, %166 : vector<8x128xf32>
    %169 = arith.divf %167, %168 : vector<8x128xf32>
    %170 = arith.select %5, %164, %169 : vector<8x128xi1>, vector<8x128xf32>
    %171 = vector.extract_strided_slice %170 {offsets = [0, 0], sizes = [8, 32], strides = [1, 1]} : vector<8x128xf32> to vector<8x32xf32>
    %172 = vector.extract_strided_slice %170 {offsets = [0, 32], sizes = [8, 32], strides = [1, 1]} : vector<8x128xf32> to vector<8x32xf32>
    %173 = vector.extract_strided_slice %170 {offsets = [0, 64], sizes = [8, 32], strides = [1, 1]} : vector<8x128xf32> to vector<8x32xf32>
    %174 = vector.extract_strided_slice %170 {offsets = [0, 96], sizes = [8, 32], strides = [1, 1]} : vector<8x128xf32> to vector<8x32xf32>
    %175 = arith.mulf %172, %156 : vector<8x32xf32>
    %176 = arith.mulf %171, %173 : vector<8x32xf32>
    %177 = arith.addf %175, %176 : vector<8x32xf32>
    %178 = math.tanh %177 : vector<8x32xf32>
    %179 = arith.mulf %174, %178 : vector<8x32xf32>
    %180 = arith.select %25, %179, %155 : vector<8x32xi1>, vector<8x32xf32>
    %181 = arith.select %25, %177, %156 : vector<8x32xi1>, vector<8x32xf32>
    %cst_74 = arith.constant 0.000000e+00 : f32
    %182 = vector.broadcast %cst_74 : f32 to vector<8x32xf32>
    %183 = arith.select %25, %179, %182 : vector<8x32xi1>, vector<8x32xf32>
    %cst_75 = arith.constant dense<0.000000e+00> : vector<8x128xf32>
    %184 = tpu.matmul %180, %55, %cst_75 {dimension_numbers = #tpu.dot_dimension_numbers<[1], [0], [0], [1], [0, 0, 1, 1], [], []>} : vector<8x32xf32>, vector<32x128xf32>, vector<8x128xf32> -> vector<8x128xf32>
    %185 = vector.broadcast %56 : vector<1x128xf32> to vector<8x128xf32>
    %186 = arith.addf %184, %185 : vector<8x128xf32>
    %cst_76 = arith.constant dense<0.000000e+00> : vector<8x128xf32>
    %187 = tpu.matmul %49, %54, %cst_76 {dimension_numbers = #tpu.dot_dimension_numbers<[1], [0], [0], [1], [0, 0, 1, 1], [], []>} : vector<8x32xf32>, vector<32x128xf32>, vector<8x128xf32> -> vector<8x128xf32>
    %188 = arith.addf %186, %187 : vector<8x128xf32>
    %189 = math.tanh %188 : vector<8x128xf32>
    %190 = arith.negf %188 : vector<8x128xf32>
    %191 = math.exp %190 : vector<8x128xf32>
    %cst_77 = arith.constant 1.000000e+00 : f32
    %192 = vector.broadcast %cst_77 : f32 to vector<8x128xf32>
    %193 = arith.addf %192, %191 : vector<8x128xf32>
    %194 = arith.divf %192, %193 : vector<8x128xf32>
    %195 = arith.select %5, %189, %194 : vector<8x128xi1>, vector<8x128xf32>
    %196 = vector.extract_strided_slice %195 {offsets = [0, 0], sizes = [8, 32], strides = [1, 1]} : vector<8x128xf32> to vector<8x32xf32>
    %197 = vector.extract_strided_slice %195 {offsets = [0, 32], sizes = [8, 32], strides = [1, 1]} : vector<8x128xf32> to vector<8x32xf32>
    %198 = vector.extract_strided_slice %195 {offsets = [0, 64], sizes = [8, 32], strides = [1, 1]} : vector<8x128xf32> to vector<8x32xf32>
    %199 = vector.extract_strided_slice %195 {offsets = [0, 96], sizes = [8, 32], strides = [1, 1]} : vector<8x128xf32> to vector<8x32xf32>
    %200 = arith.mulf %197, %181 : vector<8x32xf32>
    %201 = arith.mulf %196, %198 : vector<8x32xf32>
    %202 = arith.addf %200, %201 : vector<8x32xf32>
    %203 = math.tanh %202 : vector<8x32xf32>
    %204 = arith.mulf %199, %203 : vector<8x32xf32>
    %205 = arith.select %29, %204, %180 : vector<8x32xi1>, vector<8x32xf32>
    %206 = arith.select %29, %202, %181 : vector<8x32xi1>, vector<8x32xf32>
    %cst_78 = arith.constant 0.000000e+00 : f32
    %207 = vector.broadcast %cst_78 : f32 to vector<8x32xf32>
    %208 = arith.select %29, %204, %207 : vector<8x32xi1>, vector<8x32xf32>
    %cst_79 = arith.constant dense<0.000000e+00> : vector<8x128xf32>
    %209 = tpu.matmul %205, %55, %cst_79 {dimension_numbers = #tpu.dot_dimension_numbers<[1], [0], [0], [1], [0, 0, 1, 1], [], []>} : vector<8x32xf32>, vector<32x128xf32>, vector<8x128xf32> -> vector<8x128xf32>
    %210 = vector.broadcast %56 : vector<1x128xf32> to vector<8x128xf32>
    %211 = arith.addf %209, %210 : vector<8x128xf32>
    %cst_80 = arith.constant dense<0.000000e+00> : vector<8x128xf32>
    %212 = tpu.matmul %51, %54, %cst_80 {dimension_numbers = #tpu.dot_dimension_numbers<[1], [0], [0], [1], [0, 0, 1, 1], [], []>} : vector<8x32xf32>, vector<32x128xf32>, vector<8x128xf32> -> vector<8x128xf32>
    %213 = arith.addf %211, %212 : vector<8x128xf32>
    %214 = math.tanh %213 : vector<8x128xf32>
    %215 = arith.negf %213 : vector<8x128xf32>
    %216 = math.exp %215 : vector<8x128xf32>
    %cst_81 = arith.constant 1.000000e+00 : f32
    %217 = vector.broadcast %cst_81 : f32 to vector<8x128xf32>
    %218 = arith.addf %217, %216 : vector<8x128xf32>
    %219 = arith.divf %217, %218 : vector<8x128xf32>
    %220 = arith.select %5, %214, %219 : vector<8x128xi1>, vector<8x128xf32>
    %221 = vector.extract_strided_slice %220 {offsets = [0, 0], sizes = [8, 32], strides = [1, 1]} : vector<8x128xf32> to vector<8x32xf32>
    %222 = vector.extract_strided_slice %220 {offsets = [0, 32], sizes = [8, 32], strides = [1, 1]} : vector<8x128xf32> to vector<8x32xf32>
    %223 = vector.extract_strided_slice %220 {offsets = [0, 64], sizes = [8, 32], strides = [1, 1]} : vector<8x128xf32> to vector<8x32xf32>
    %224 = vector.extract_strided_slice %220 {offsets = [0, 96], sizes = [8, 32], strides = [1, 1]} : vector<8x128xf32> to vector<8x32xf32>
    %225 = arith.mulf %222, %206 : vector<8x32xf32>
    %226 = arith.mulf %221, %223 : vector<8x32xf32>
    %227 = arith.addf %225, %226 : vector<8x32xf32>
    %228 = math.tanh %227 : vector<8x32xf32>
    %229 = arith.mulf %224, %228 : vector<8x32xf32>
    %230 = arith.select %33, %229, %205 : vector<8x32xi1>, vector<8x32xf32>
    %231 = arith.select %33, %227, %206 : vector<8x32xi1>, vector<8x32xf32>
    %cst_82 = arith.constant 0.000000e+00 : f32
    %232 = vector.broadcast %cst_82 : f32 to vector<8x32xf32>
    %233 = arith.select %33, %229, %232 : vector<8x32xi1>, vector<8x32xf32>
    %cst_83 = arith.constant dense<0.000000e+00> : vector<8x128xf32>
    %234 = tpu.matmul %230, %55, %cst_83 {dimension_numbers = #tpu.dot_dimension_numbers<[1], [0], [0], [1], [0, 0, 1, 1], [], []>} : vector<8x32xf32>, vector<32x128xf32>, vector<8x128xf32> -> vector<8x128xf32>
    %235 = vector.broadcast %56 : vector<1x128xf32> to vector<8x128xf32>
    %236 = arith.addf %234, %235 : vector<8x128xf32>
    %cst_84 = arith.constant dense<0.000000e+00> : vector<8x128xf32>
    %237 = tpu.matmul %53, %54, %cst_84 {dimension_numbers = #tpu.dot_dimension_numbers<[1], [0], [0], [1], [0, 0, 1, 1], [], []>} : vector<8x32xf32>, vector<32x128xf32>, vector<8x128xf32> -> vector<8x128xf32>
    %238 = arith.addf %236, %237 : vector<8x128xf32>
    %239 = math.tanh %238 : vector<8x128xf32>
    %240 = arith.negf %238 : vector<8x128xf32>
    %241 = math.exp %240 : vector<8x128xf32>
    %cst_85 = arith.constant 1.000000e+00 : f32
    %242 = vector.broadcast %cst_85 : f32 to vector<8x128xf32>
    %243 = arith.addf %242, %241 : vector<8x128xf32>
    %244 = arith.divf %242, %243 : vector<8x128xf32>
    %245 = arith.select %5, %239, %244 : vector<8x128xi1>, vector<8x128xf32>
    %246 = vector.extract_strided_slice %245 {offsets = [0, 0], sizes = [8, 32], strides = [1, 1]} : vector<8x128xf32> to vector<8x32xf32>
    %247 = vector.extract_strided_slice %245 {offsets = [0, 32], sizes = [8, 32], strides = [1, 1]} : vector<8x128xf32> to vector<8x32xf32>
    %248 = vector.extract_strided_slice %245 {offsets = [0, 64], sizes = [8, 32], strides = [1, 1]} : vector<8x128xf32> to vector<8x32xf32>
    %249 = vector.extract_strided_slice %245 {offsets = [0, 96], sizes = [8, 32], strides = [1, 1]} : vector<8x128xf32> to vector<8x32xf32>
    %250 = arith.mulf %247, %231 : vector<8x32xf32>
    %251 = arith.mulf %246, %248 : vector<8x32xf32>
    %252 = arith.addf %250, %251 : vector<8x32xf32>
    %253 = math.tanh %252 : vector<8x32xf32>
    %254 = arith.mulf %249, %253 : vector<8x32xf32>
    %cst_86 = arith.constant 0.000000e+00 : f32
    %255 = vector.broadcast %cst_86 : f32 to vector<8x32xf32>
    %256 = arith.select %37, %254, %255 : vector<8x32xi1>, vector<8x32xf32>
    %c0_87 = arith.constant 0 : index
    %c0_88 = arith.constant 0 : index
    %257 = vector.load %arg5[%c0_87, %c0_88] : memref<32x128xf32, #tpu.memory_space<vmem>>, vector<32x128xf32>
    %c0_89 = arith.constant 0 : index
    %c0_90 = arith.constant 0 : index
    %258 = vector.load %arg6[%c0_89, %c0_90] : memref<32x128xf32, #tpu.memory_space<vmem>>, vector<32x128xf32>
    %c0_91 = arith.constant 0 : index
    %c0_92 = arith.constant 0 : index
    %259 = vector.load %arg7[%c0_91, %c0_92] : memref<1x128xf32, #tpu.memory_space<vmem>>, vector<1x128xf32>
    %cst_93 = arith.constant 0.000000e+00 : f32
    %260 = vector.broadcast %cst_93 : f32 to vector<8x32xf32>
    %cst_94 = arith.constant 0.000000e+00 : f32
    %261 = vector.broadcast %cst_94 : f32 to vector<8x32xf32>
    %cst_95 = arith.constant dense<0.000000e+00> : vector<8x128xf32>
    %262 = tpu.matmul %260, %258, %cst_95 {dimension_numbers = #tpu.dot_dimension_numbers<[1], [0], [0], [1], [0, 0, 1, 1], [], []>} : vector<8x32xf32>, vector<32x128xf32>, vector<8x128xf32> -> vector<8x128xf32>
    %263 = vector.broadcast %259 : vector<1x128xf32> to vector<8x128xf32>
    %264 = arith.addf %262, %263 : vector<8x128xf32>
    %cst_96 = arith.constant dense<0.000000e+00> : vector<8x128xf32>
    %265 = tpu.matmul %53, %257, %cst_96 {dimension_numbers = #tpu.dot_dimension_numbers<[1], [0], [0], [1], [0, 0, 1, 1], [], []>} : vector<8x32xf32>, vector<32x128xf32>, vector<8x128xf32> -> vector<8x128xf32>
    %266 = arith.addf %264, %265 : vector<8x128xf32>
    %267 = math.tanh %266 : vector<8x128xf32>
    %268 = arith.negf %266 : vector<8x128xf32>
    %269 = math.exp %268 : vector<8x128xf32>
    %cst_97 = arith.constant 1.000000e+00 : f32
    %270 = vector.broadcast %cst_97 : f32 to vector<8x128xf32>
    %271 = arith.addf %270, %269 : vector<8x128xf32>
    %272 = arith.divf %270, %271 : vector<8x128xf32>
    %273 = arith.select %5, %267, %272 : vector<8x128xi1>, vector<8x128xf32>
    %274 = vector.extract_strided_slice %273 {offsets = [0, 0], sizes = [8, 32], strides = [1, 1]} : vector<8x128xf32> to vector<8x32xf32>
    %275 = vector.extract_strided_slice %273 {offsets = [0, 32], sizes = [8, 32], strides = [1, 1]} : vector<8x128xf32> to vector<8x32xf32>
    %276 = vector.extract_strided_slice %273 {offsets = [0, 64], sizes = [8, 32], strides = [1, 1]} : vector<8x128xf32> to vector<8x32xf32>
    %277 = vector.extract_strided_slice %273 {offsets = [0, 96], sizes = [8, 32], strides = [1, 1]} : vector<8x128xf32> to vector<8x32xf32>
    %278 = arith.mulf %275, %261 : vector<8x32xf32>
    %279 = arith.mulf %274, %276 : vector<8x32xf32>
    %280 = arith.addf %278, %279 : vector<8x32xf32>
    %281 = math.tanh %280 : vector<8x32xf32>
    %282 = arith.mulf %277, %281 : vector<8x32xf32>
    %283 = arith.select %37, %282, %260 : vector<8x32xi1>, vector<8x32xf32>
    %284 = arith.select %37, %280, %261 : vector<8x32xi1>, vector<8x32xf32>
    %cst_98 = arith.constant 0.000000e+00 : f32
    %285 = vector.broadcast %cst_98 : f32 to vector<8x32xf32>
    %286 = arith.select %37, %282, %285 : vector<8x32xi1>, vector<8x32xf32>
    %cst_99 = arith.constant dense<0.000000e+00> : vector<8x128xf32>
    %287 = tpu.matmul %283, %258, %cst_99 {dimension_numbers = #tpu.dot_dimension_numbers<[1], [0], [0], [1], [0, 0, 1, 1], [], []>} : vector<8x32xf32>, vector<32x128xf32>, vector<8x128xf32> -> vector<8x128xf32>
    %288 = vector.broadcast %259 : vector<1x128xf32> to vector<8x128xf32>
    %289 = arith.addf %287, %288 : vector<8x128xf32>
    %cst_100 = arith.constant dense<0.000000e+00> : vector<8x128xf32>
    %290 = tpu.matmul %51, %257, %cst_100 {dimension_numbers = #tpu.dot_dimension_numbers<[1], [0], [0], [1], [0, 0, 1, 1], [], []>} : vector<8x32xf32>, vector<32x128xf32>, vector<8x128xf32> -> vector<8x128xf32>
    %291 = arith.addf %289, %290 : vector<8x128xf32>
    %292 = math.tanh %291 : vector<8x128xf32>
    %293 = arith.negf %291 : vector<8x128xf32>
    %294 = math.exp %293 : vector<8x128xf32>
    %cst_101 = arith.constant 1.000000e+00 : f32
    %295 = vector.broadcast %cst_101 : f32 to vector<8x128xf32>
    %296 = arith.addf %295, %294 : vector<8x128xf32>
    %297 = arith.divf %295, %296 : vector<8x128xf32>
    %298 = arith.select %5, %292, %297 : vector<8x128xi1>, vector<8x128xf32>
    %299 = vector.extract_strided_slice %298 {offsets = [0, 0], sizes = [8, 32], strides = [1, 1]} : vector<8x128xf32> to vector<8x32xf32>
    %300 = vector.extract_strided_slice %298 {offsets = [0, 32], sizes = [8, 32], strides = [1, 1]} : vector<8x128xf32> to vector<8x32xf32>
    %301 = vector.extract_strided_slice %298 {offsets = [0, 64], sizes = [8, 32], strides = [1, 1]} : vector<8x128xf32> to vector<8x32xf32>
    %302 = vector.extract_strided_slice %298 {offsets = [0, 96], sizes = [8, 32], strides = [1, 1]} : vector<8x128xf32> to vector<8x32xf32>
    %303 = arith.mulf %300, %284 : vector<8x32xf32>
    %304 = arith.mulf %299, %301 : vector<8x32xf32>
    %305 = arith.addf %303, %304 : vector<8x32xf32>
    %306 = math.tanh %305 : vector<8x32xf32>
    %307 = arith.mulf %302, %306 : vector<8x32xf32>
    %308 = arith.select %33, %307, %283 : vector<8x32xi1>, vector<8x32xf32>
    %309 = arith.select %33, %305, %284 : vector<8x32xi1>, vector<8x32xf32>
    %cst_102 = arith.constant 0.000000e+00 : f32
    %310 = vector.broadcast %cst_102 : f32 to vector<8x32xf32>
    %311 = arith.select %33, %307, %310 : vector<8x32xi1>, vector<8x32xf32>
    %cst_103 = arith.constant dense<0.000000e+00> : vector<8x128xf32>
    %312 = tpu.matmul %308, %258, %cst_103 {dimension_numbers = #tpu.dot_dimension_numbers<[1], [0], [0], [1], [0, 0, 1, 1], [], []>} : vector<8x32xf32>, vector<32x128xf32>, vector<8x128xf32> -> vector<8x128xf32>
    %313 = vector.broadcast %259 : vector<1x128xf32> to vector<8x128xf32>
    %314 = arith.addf %312, %313 : vector<8x128xf32>
    %cst_104 = arith.constant dense<0.000000e+00> : vector<8x128xf32>
    %315 = tpu.matmul %49, %257, %cst_104 {dimension_numbers = #tpu.dot_dimension_numbers<[1], [0], [0], [1], [0, 0, 1, 1], [], []>} : vector<8x32xf32>, vector<32x128xf32>, vector<8x128xf32> -> vector<8x128xf32>
    %316 = arith.addf %314, %315 : vector<8x128xf32>
    %317 = math.tanh %316 : vector<8x128xf32>
    %318 = arith.negf %316 : vector<8x128xf32>
    %319 = math.exp %318 : vector<8x128xf32>
    %cst_105 = arith.constant 1.000000e+00 : f32
    %320 = vector.broadcast %cst_105 : f32 to vector<8x128xf32>
    %321 = arith.addf %320, %319 : vector<8x128xf32>
    %322 = arith.divf %320, %321 : vector<8x128xf32>
    %323 = arith.select %5, %317, %322 : vector<8x128xi1>, vector<8x128xf32>
    %324 = vector.extract_strided_slice %323 {offsets = [0, 0], sizes = [8, 32], strides = [1, 1]} : vector<8x128xf32> to vector<8x32xf32>
    %325 = vector.extract_strided_slice %323 {offsets = [0, 32], sizes = [8, 32], strides = [1, 1]} : vector<8x128xf32> to vector<8x32xf32>
    %326 = vector.extract_strided_slice %323 {offsets = [0, 64], sizes = [8, 32], strides = [1, 1]} : vector<8x128xf32> to vector<8x32xf32>
    %327 = vector.extract_strided_slice %323 {offsets = [0, 96], sizes = [8, 32], strides = [1, 1]} : vector<8x128xf32> to vector<8x32xf32>
    %328 = arith.mulf %325, %309 : vector<8x32xf32>
    %329 = arith.mulf %324, %326 : vector<8x32xf32>
    %330 = arith.addf %328, %329 : vector<8x32xf32>
    %331 = math.tanh %330 : vector<8x32xf32>
    %332 = arith.mulf %327, %331 : vector<8x32xf32>
    %333 = arith.select %29, %332, %308 : vector<8x32xi1>, vector<8x32xf32>
    %334 = arith.select %29, %330, %309 : vector<8x32xi1>, vector<8x32xf32>
    %cst_106 = arith.constant 0.000000e+00 : f32
    %335 = vector.broadcast %cst_106 : f32 to vector<8x32xf32>
    %336 = arith.select %29, %332, %335 : vector<8x32xi1>, vector<8x32xf32>
    %cst_107 = arith.constant dense<0.000000e+00> : vector<8x128xf32>
    %337 = tpu.matmul %333, %258, %cst_107 {dimension_numbers = #tpu.dot_dimension_numbers<[1], [0], [0], [1], [0, 0, 1, 1], [], []>} : vector<8x32xf32>, vector<32x128xf32>, vector<8x128xf32> -> vector<8x128xf32>
    %338 = vector.broadcast %259 : vector<1x128xf32> to vector<8x128xf32>
    %339 = arith.addf %337, %338 : vector<8x128xf32>
    %cst_108 = arith.constant dense<0.000000e+00> : vector<8x128xf32>
    %340 = tpu.matmul %47, %257, %cst_108 {dimension_numbers = #tpu.dot_dimension_numbers<[1], [0], [0], [1], [0, 0, 1, 1], [], []>} : vector<8x32xf32>, vector<32x128xf32>, vector<8x128xf32> -> vector<8x128xf32>
    %341 = arith.addf %339, %340 : vector<8x128xf32>
    %342 = math.tanh %341 : vector<8x128xf32>
    %343 = arith.negf %341 : vector<8x128xf32>
    %344 = math.exp %343 : vector<8x128xf32>
    %cst_109 = arith.constant 1.000000e+00 : f32
    %345 = vector.broadcast %cst_109 : f32 to vector<8x128xf32>
    %346 = arith.addf %345, %344 : vector<8x128xf32>
    %347 = arith.divf %345, %346 : vector<8x128xf32>
    %348 = arith.select %5, %342, %347 : vector<8x128xi1>, vector<8x128xf32>
    %349 = vector.extract_strided_slice %348 {offsets = [0, 0], sizes = [8, 32], strides = [1, 1]} : vector<8x128xf32> to vector<8x32xf32>
    %350 = vector.extract_strided_slice %348 {offsets = [0, 32], sizes = [8, 32], strides = [1, 1]} : vector<8x128xf32> to vector<8x32xf32>
    %351 = vector.extract_strided_slice %348 {offsets = [0, 64], sizes = [8, 32], strides = [1, 1]} : vector<8x128xf32> to vector<8x32xf32>
    %352 = vector.extract_strided_slice %348 {offsets = [0, 96], sizes = [8, 32], strides = [1, 1]} : vector<8x128xf32> to vector<8x32xf32>
    %353 = arith.mulf %350, %334 : vector<8x32xf32>
    %354 = arith.mulf %349, %351 : vector<8x32xf32>
    %355 = arith.addf %353, %354 : vector<8x32xf32>
    %356 = math.tanh %355 : vector<8x32xf32>
    %357 = arith.mulf %352, %356 : vector<8x32xf32>
    %358 = arith.select %25, %357, %333 : vector<8x32xi1>, vector<8x32xf32>
    %359 = arith.select %25, %355, %334 : vector<8x32xi1>, vector<8x32xf32>
    %cst_110 = arith.constant 0.000000e+00 : f32
    %360 = vector.broadcast %cst_110 : f32 to vector<8x32xf32>
    %361 = arith.select %25, %357, %360 : vector<8x32xi1>, vector<8x32xf32>
    %cst_111 = arith.constant dense<0.000000e+00> : vector<8x128xf32>
    %362 = tpu.matmul %358, %258, %cst_111 {dimension_numbers = #tpu.dot_dimension_numbers<[1], [0], [0], [1], [0, 0, 1, 1], [], []>} : vector<8x32xf32>, vector<32x128xf32>, vector<8x128xf32> -> vector<8x128xf32>
    %363 = vector.broadcast %259 : vector<1x128xf32> to vector<8x128xf32>
    %364 = arith.addf %362, %363 : vector<8x128xf32>
    %cst_112 = arith.constant dense<0.000000e+00> : vector<8x128xf32>
    %365 = tpu.matmul %45, %257, %cst_112 {dimension_numbers = #tpu.dot_dimension_numbers<[1], [0], [0], [1], [0, 0, 1, 1], [], []>} : vector<8x32xf32>, vector<32x128xf32>, vector<8x128xf32> -> vector<8x128xf32>
    %366 = arith.addf %364, %365 : vector<8x128xf32>
    %367 = math.tanh %366 : vector<8x128xf32>
    %368 = arith.negf %366 : vector<8x128xf32>
    %369 = math.exp %368 : vector<8x128xf32>
    %cst_113 = arith.constant 1.000000e+00 : f32
    %370 = vector.broadcast %cst_113 : f32 to vector<8x128xf32>
    %371 = arith.addf %370, %369 : vector<8x128xf32>
    %372 = arith.divf %370, %371 : vector<8x128xf32>
    %373 = arith.select %5, %367, %372 : vector<8x128xi1>, vector<8x128xf32>
    %374 = vector.extract_strided_slice %373 {offsets = [0, 0], sizes = [8, 32], strides = [1, 1]} : vector<8x128xf32> to vector<8x32xf32>
    %375 = vector.extract_strided_slice %373 {offsets = [0, 32], sizes = [8, 32], strides = [1, 1]} : vector<8x128xf32> to vector<8x32xf32>
    %376 = vector.extract_strided_slice %373 {offsets = [0, 64], sizes = [8, 32], strides = [1, 1]} : vector<8x128xf32> to vector<8x32xf32>
    %377 = vector.extract_strided_slice %373 {offsets = [0, 96], sizes = [8, 32], strides = [1, 1]} : vector<8x128xf32> to vector<8x32xf32>
    %378 = arith.mulf %375, %359 : vector<8x32xf32>
    %379 = arith.mulf %374, %376 : vector<8x32xf32>
    %380 = arith.addf %378, %379 : vector<8x32xf32>
    %381 = math.tanh %380 : vector<8x32xf32>
    %382 = arith.mulf %377, %381 : vector<8x32xf32>
    %383 = arith.select %21, %382, %358 : vector<8x32xi1>, vector<8x32xf32>
    %384 = arith.select %21, %380, %359 : vector<8x32xi1>, vector<8x32xf32>
    %cst_114 = arith.constant 0.000000e+00 : f32
    %385 = vector.broadcast %cst_114 : f32 to vector<8x32xf32>
    %386 = arith.select %21, %382, %385 : vector<8x32xi1>, vector<8x32xf32>
    %cst_115 = arith.constant dense<0.000000e+00> : vector<8x128xf32>
    %387 = tpu.matmul %383, %258, %cst_115 {dimension_numbers = #tpu.dot_dimension_numbers<[1], [0], [0], [1], [0, 0, 1, 1], [], []>} : vector<8x32xf32>, vector<32x128xf32>, vector<8x128xf32> -> vector<8x128xf32>
    %388 = vector.broadcast %259 : vector<1x128xf32> to vector<8x128xf32>
    %389 = arith.addf %387, %388 : vector<8x128xf32>
    %cst_116 = arith.constant dense<0.000000e+00> : vector<8x128xf32>
    %390 = tpu.matmul %43, %257, %cst_116 {dimension_numbers = #tpu.dot_dimension_numbers<[1], [0], [0], [1], [0, 0, 1, 1], [], []>} : vector<8x32xf32>, vector<32x128xf32>, vector<8x128xf32> -> vector<8x128xf32>
    %391 = arith.addf %389, %390 : vector<8x128xf32>
    %392 = math.tanh %391 : vector<8x128xf32>
    %393 = arith.negf %391 : vector<8x128xf32>
    %394 = math.exp %393 : vector<8x128xf32>
    %cst_117 = arith.constant 1.000000e+00 : f32
    %395 = vector.broadcast %cst_117 : f32 to vector<8x128xf32>
    %396 = arith.addf %395, %394 : vector<8x128xf32>
    %397 = arith.divf %395, %396 : vector<8x128xf32>
    %398 = arith.select %5, %392, %397 : vector<8x128xi1>, vector<8x128xf32>
    %399 = vector.extract_strided_slice %398 {offsets = [0, 0], sizes = [8, 32], strides = [1, 1]} : vector<8x128xf32> to vector<8x32xf32>
    %400 = vector.extract_strided_slice %398 {offsets = [0, 32], sizes = [8, 32], strides = [1, 1]} : vector<8x128xf32> to vector<8x32xf32>
    %401 = vector.extract_strided_slice %398 {offsets = [0, 64], sizes = [8, 32], strides = [1, 1]} : vector<8x128xf32> to vector<8x32xf32>
    %402 = vector.extract_strided_slice %398 {offsets = [0, 96], sizes = [8, 32], strides = [1, 1]} : vector<8x128xf32> to vector<8x32xf32>
    %403 = arith.mulf %400, %384 : vector<8x32xf32>
    %404 = arith.mulf %399, %401 : vector<8x32xf32>
    %405 = arith.addf %403, %404 : vector<8x32xf32>
    %406 = math.tanh %405 : vector<8x32xf32>
    %407 = arith.mulf %402, %406 : vector<8x32xf32>
    %408 = arith.select %17, %407, %383 : vector<8x32xi1>, vector<8x32xf32>
    %409 = arith.select %17, %405, %384 : vector<8x32xi1>, vector<8x32xf32>
    %cst_118 = arith.constant 0.000000e+00 : f32
    %410 = vector.broadcast %cst_118 : f32 to vector<8x32xf32>
    %411 = arith.select %17, %407, %410 : vector<8x32xi1>, vector<8x32xf32>
    %cst_119 = arith.constant dense<0.000000e+00> : vector<8x128xf32>
    %412 = tpu.matmul %408, %258, %cst_119 {dimension_numbers = #tpu.dot_dimension_numbers<[1], [0], [0], [1], [0, 0, 1, 1], [], []>} : vector<8x32xf32>, vector<32x128xf32>, vector<8x128xf32> -> vector<8x128xf32>
    %413 = vector.broadcast %259 : vector<1x128xf32> to vector<8x128xf32>
    %414 = arith.addf %412, %413 : vector<8x128xf32>
    %cst_120 = arith.constant dense<0.000000e+00> : vector<8x128xf32>
    %415 = tpu.matmul %41, %257, %cst_120 {dimension_numbers = #tpu.dot_dimension_numbers<[1], [0], [0], [1], [0, 0, 1, 1], [], []>} : vector<8x32xf32>, vector<32x128xf32>, vector<8x128xf32> -> vector<8x128xf32>
    %416 = arith.addf %414, %415 : vector<8x128xf32>
    %417 = math.tanh %416 : vector<8x128xf32>
    %418 = arith.negf %416 : vector<8x128xf32>
    %419 = math.exp %418 : vector<8x128xf32>
    %cst_121 = arith.constant 1.000000e+00 : f32
    %420 = vector.broadcast %cst_121 : f32 to vector<8x128xf32>
    %421 = arith.addf %420, %419 : vector<8x128xf32>
    %422 = arith.divf %420, %421 : vector<8x128xf32>
    %423 = arith.select %5, %417, %422 : vector<8x128xi1>, vector<8x128xf32>
    %424 = vector.extract_strided_slice %423 {offsets = [0, 0], sizes = [8, 32], strides = [1, 1]} : vector<8x128xf32> to vector<8x32xf32>
    %425 = vector.extract_strided_slice %423 {offsets = [0, 32], sizes = [8, 32], strides = [1, 1]} : vector<8x128xf32> to vector<8x32xf32>
    %426 = vector.extract_strided_slice %423 {offsets = [0, 64], sizes = [8, 32], strides = [1, 1]} : vector<8x128xf32> to vector<8x32xf32>
    %427 = vector.extract_strided_slice %423 {offsets = [0, 96], sizes = [8, 32], strides = [1, 1]} : vector<8x128xf32> to vector<8x32xf32>
    %428 = arith.mulf %425, %409 : vector<8x32xf32>
    %429 = arith.mulf %424, %426 : vector<8x32xf32>
    %430 = arith.addf %428, %429 : vector<8x32xf32>
    %431 = math.tanh %430 : vector<8x32xf32>
    %432 = arith.mulf %427, %431 : vector<8x32xf32>
    %433 = arith.select %13, %432, %408 : vector<8x32xi1>, vector<8x32xf32>
    %434 = arith.select %13, %430, %409 : vector<8x32xi1>, vector<8x32xf32>
    %cst_122 = arith.constant 0.000000e+00 : f32
    %435 = vector.broadcast %cst_122 : f32 to vector<8x32xf32>
    %436 = arith.select %13, %432, %435 : vector<8x32xi1>, vector<8x32xf32>
    %cst_123 = arith.constant dense<0.000000e+00> : vector<8x128xf32>
    %437 = tpu.matmul %433, %258, %cst_123 {dimension_numbers = #tpu.dot_dimension_numbers<[1], [0], [0], [1], [0, 0, 1, 1], [], []>} : vector<8x32xf32>, vector<32x128xf32>, vector<8x128xf32> -> vector<8x128xf32>
    %438 = vector.broadcast %259 : vector<1x128xf32> to vector<8x128xf32>
    %439 = arith.addf %437, %438 : vector<8x128xf32>
    %cst_124 = arith.constant dense<0.000000e+00> : vector<8x128xf32>
    %440 = tpu.matmul %39, %257, %cst_124 {dimension_numbers = #tpu.dot_dimension_numbers<[1], [0], [0], [1], [0, 0, 1, 1], [], []>} : vector<8x32xf32>, vector<32x128xf32>, vector<8x128xf32> -> vector<8x128xf32>
    %441 = arith.addf %439, %440 : vector<8x128xf32>
    %442 = math.tanh %441 : vector<8x128xf32>
    %443 = arith.negf %441 : vector<8x128xf32>
    %444 = math.exp %443 : vector<8x128xf32>
    %cst_125 = arith.constant 1.000000e+00 : f32
    %445 = vector.broadcast %cst_125 : f32 to vector<8x128xf32>
    %446 = arith.addf %445, %444 : vector<8x128xf32>
    %447 = arith.divf %445, %446 : vector<8x128xf32>
    %448 = arith.select %5, %442, %447 : vector<8x128xi1>, vector<8x128xf32>
    %449 = vector.extract_strided_slice %448 {offsets = [0, 0], sizes = [8, 32], strides = [1, 1]} : vector<8x128xf32> to vector<8x32xf32>
    %450 = vector.extract_strided_slice %448 {offsets = [0, 32], sizes = [8, 32], strides = [1, 1]} : vector<8x128xf32> to vector<8x32xf32>
    %451 = vector.extract_strided_slice %448 {offsets = [0, 64], sizes = [8, 32], strides = [1, 1]} : vector<8x128xf32> to vector<8x32xf32>
    %452 = vector.extract_strided_slice %448 {offsets = [0, 96], sizes = [8, 32], strides = [1, 1]} : vector<8x128xf32> to vector<8x32xf32>
    %453 = arith.mulf %450, %434 : vector<8x32xf32>
    %454 = arith.mulf %449, %451 : vector<8x32xf32>
    %455 = arith.addf %453, %454 : vector<8x32xf32>
    %456 = math.tanh %455 : vector<8x32xf32>
    %457 = arith.mulf %452, %456 : vector<8x32xf32>
    %cst_126 = arith.constant 0.000000e+00 : f32
    %458 = vector.broadcast %cst_126 : f32 to vector<8x32xf32>
    %459 = arith.select %9, %457, %458 : vector<8x32xi1>, vector<8x32xf32>
    %c0_127 = arith.constant 0 : index
    %c0_128 = arith.constant 0 : index
    %460 = vector.load %arg8[%c0_127, %c0_128] : memref<64x128xf32, #tpu.memory_space<vmem>>, vector<32x128xf32>
    %c32 = arith.constant 32 : index
    %c0_129 = arith.constant 0 : index
    %461 = vector.load %arg8[%c32, %c0_129] : memref<64x128xf32, #tpu.memory_space<vmem>>, vector<32x128xf32>
    %c0_130 = arith.constant 0 : index
    %c0_131 = arith.constant 0 : index
    %462 = vector.load %arg9[%c0_130, %c0_131] : memref<32x128xf32, #tpu.memory_space<vmem>>, vector<32x128xf32>
    %c0_132 = arith.constant 0 : index
    %c0_133 = arith.constant 0 : index
    %463 = vector.load %arg10[%c0_132, %c0_133] : memref<1x128xf32, #tpu.memory_space<vmem>>, vector<1x128xf32>
    %cst_134 = arith.constant 0.000000e+00 : f32
    %464 = vector.broadcast %cst_134 : f32 to vector<8x32xf32>
    %cst_135 = arith.constant 0.000000e+00 : f32
    %465 = vector.broadcast %cst_135 : f32 to vector<8x32xf32>
    %cst_136 = arith.constant dense<0.000000e+00> : vector<8x128xf32>
    %466 = tpu.matmul %464, %462, %cst_136 {dimension_numbers = #tpu.dot_dimension_numbers<[1], [0], [0], [1], [0, 0, 1, 1], [], []>} : vector<8x32xf32>, vector<32x128xf32>, vector<8x128xf32> -> vector<8x128xf32>
    %467 = vector.broadcast %463 : vector<1x128xf32> to vector<8x128xf32>
    %468 = arith.addf %466, %467 : vector<8x128xf32>
    %cst_137 = arith.constant dense<0.000000e+00> : vector<8x128xf32>
    %469 = tpu.matmul %83, %460, %cst_137 {dimension_numbers = #tpu.dot_dimension_numbers<[1], [0], [0], [1], [0, 0, 1, 1], [], []>} : vector<8x32xf32>, vector<32x128xf32>, vector<8x128xf32> -> vector<8x128xf32>
    %470 = arith.addf %468, %469 : vector<8x128xf32>
    %cst_138 = arith.constant dense<0.000000e+00> : vector<8x128xf32>
    %471 = tpu.matmul %459, %461, %cst_138 {dimension_numbers = #tpu.dot_dimension_numbers<[1], [0], [0], [1], [0, 0, 1, 1], [], []>} : vector<8x32xf32>, vector<32x128xf32>, vector<8x128xf32> -> vector<8x128xf32>
    %472 = arith.addf %470, %471 : vector<8x128xf32>
    %473 = math.tanh %472 : vector<8x128xf32>
    %474 = arith.negf %472 : vector<8x128xf32>
    %475 = math.exp %474 : vector<8x128xf32>
    %cst_139 = arith.constant 1.000000e+00 : f32
    %476 = vector.broadcast %cst_139 : f32 to vector<8x128xf32>
    %477 = arith.addf %476, %475 : vector<8x128xf32>
    %478 = arith.divf %476, %477 : vector<8x128xf32>
    %479 = arith.select %5, %473, %478 : vector<8x128xi1>, vector<8x128xf32>
    %480 = vector.extract_strided_slice %479 {offsets = [0, 0], sizes = [8, 32], strides = [1, 1]} : vector<8x128xf32> to vector<8x32xf32>
    %481 = vector.extract_strided_slice %479 {offsets = [0, 32], sizes = [8, 32], strides = [1, 1]} : vector<8x128xf32> to vector<8x32xf32>
    %482 = vector.extract_strided_slice %479 {offsets = [0, 64], sizes = [8, 32], strides = [1, 1]} : vector<8x128xf32> to vector<8x32xf32>
    %483 = vector.extract_strided_slice %479 {offsets = [0, 96], sizes = [8, 32], strides = [1, 1]} : vector<8x128xf32> to vector<8x32xf32>
    %484 = arith.mulf %481, %465 : vector<8x32xf32>
    %485 = arith.mulf %480, %482 : vector<8x32xf32>
    %486 = arith.addf %484, %485 : vector<8x32xf32>
    %487 = math.tanh %486 : vector<8x32xf32>
    %488 = arith.mulf %483, %487 : vector<8x32xf32>
    %489 = arith.select %9, %488, %464 : vector<8x32xi1>, vector<8x32xf32>
    %490 = arith.select %9, %486, %465 : vector<8x32xi1>, vector<8x32xf32>
    %cst_140 = arith.constant 0.000000e+00 : f32
    %491 = vector.broadcast %cst_140 : f32 to vector<8x32xf32>
    %492 = arith.select %9, %488, %491 : vector<8x32xi1>, vector<8x32xf32>
    %cst_141 = arith.constant dense<0.000000e+00> : vector<8x128xf32>
    %493 = tpu.matmul %489, %462, %cst_141 {dimension_numbers = #tpu.dot_dimension_numbers<[1], [0], [0], [1], [0, 0, 1, 1], [], []>} : vector<8x32xf32>, vector<32x128xf32>, vector<8x128xf32> -> vector<8x128xf32>
    %494 = vector.broadcast %463 : vector<1x128xf32> to vector<8x128xf32>
    %495 = arith.addf %493, %494 : vector<8x128xf32>
    %cst_142 = arith.constant dense<0.000000e+00> : vector<8x128xf32>
    %496 = tpu.matmul %108, %460, %cst_142 {dimension_numbers = #tpu.dot_dimension_numbers<[1], [0], [0], [1], [0, 0, 1, 1], [], []>} : vector<8x32xf32>, vector<32x128xf32>, vector<8x128xf32> -> vector<8x128xf32>
    %497 = arith.addf %495, %496 : vector<8x128xf32>
    %cst_143 = arith.constant dense<0.000000e+00> : vector<8x128xf32>
    %498 = tpu.matmul %436, %461, %cst_143 {dimension_numbers = #tpu.dot_dimension_numbers<[1], [0], [0], [1], [0, 0, 1, 1], [], []>} : vector<8x32xf32>, vector<32x128xf32>, vector<8x128xf32> -> vector<8x128xf32>
    %499 = arith.addf %497, %498 : vector<8x128xf32>
    %500 = math.tanh %499 : vector<8x128xf32>
    %501 = arith.negf %499 : vector<8x128xf32>
    %502 = math.exp %501 : vector<8x128xf32>
    %cst_144 = arith.constant 1.000000e+00 : f32
    %503 = vector.broadcast %cst_144 : f32 to vector<8x128xf32>
    %504 = arith.addf %503, %502 : vector<8x128xf32>
    %505 = arith.divf %503, %504 : vector<8x128xf32>
    %506 = arith.select %5, %500, %505 : vector<8x128xi1>, vector<8x128xf32>
    %507 = vector.extract_strided_slice %506 {offsets = [0, 0], sizes = [8, 32], strides = [1, 1]} : vector<8x128xf32> to vector<8x32xf32>
    %508 = vector.extract_strided_slice %506 {offsets = [0, 32], sizes = [8, 32], strides = [1, 1]} : vector<8x128xf32> to vector<8x32xf32>
    %509 = vector.extract_strided_slice %506 {offsets = [0, 64], sizes = [8, 32], strides = [1, 1]} : vector<8x128xf32> to vector<8x32xf32>
    %510 = vector.extract_strided_slice %506 {offsets = [0, 96], sizes = [8, 32], strides = [1, 1]} : vector<8x128xf32> to vector<8x32xf32>
    %511 = arith.mulf %508, %490 : vector<8x32xf32>
    %512 = arith.mulf %507, %509 : vector<8x32xf32>
    %513 = arith.addf %511, %512 : vector<8x32xf32>
    %514 = math.tanh %513 : vector<8x32xf32>
    %515 = arith.mulf %510, %514 : vector<8x32xf32>
    %516 = arith.select %13, %515, %489 : vector<8x32xi1>, vector<8x32xf32>
    %517 = arith.select %13, %513, %490 : vector<8x32xi1>, vector<8x32xf32>
    %cst_145 = arith.constant 0.000000e+00 : f32
    %518 = vector.broadcast %cst_145 : f32 to vector<8x32xf32>
    %519 = arith.select %13, %515, %518 : vector<8x32xi1>, vector<8x32xf32>
    %cst_146 = arith.constant dense<0.000000e+00> : vector<8x128xf32>
    %520 = tpu.matmul %516, %462, %cst_146 {dimension_numbers = #tpu.dot_dimension_numbers<[1], [0], [0], [1], [0, 0, 1, 1], [], []>} : vector<8x32xf32>, vector<32x128xf32>, vector<8x128xf32> -> vector<8x128xf32>
    %521 = vector.broadcast %463 : vector<1x128xf32> to vector<8x128xf32>
    %522 = arith.addf %520, %521 : vector<8x128xf32>
    %cst_147 = arith.constant dense<0.000000e+00> : vector<8x128xf32>
    %523 = tpu.matmul %133, %460, %cst_147 {dimension_numbers = #tpu.dot_dimension_numbers<[1], [0], [0], [1], [0, 0, 1, 1], [], []>} : vector<8x32xf32>, vector<32x128xf32>, vector<8x128xf32> -> vector<8x128xf32>
    %524 = arith.addf %522, %523 : vector<8x128xf32>
    %cst_148 = arith.constant dense<0.000000e+00> : vector<8x128xf32>
    %525 = tpu.matmul %411, %461, %cst_148 {dimension_numbers = #tpu.dot_dimension_numbers<[1], [0], [0], [1], [0, 0, 1, 1], [], []>} : vector<8x32xf32>, vector<32x128xf32>, vector<8x128xf32> -> vector<8x128xf32>
    %526 = arith.addf %524, %525 : vector<8x128xf32>
    %527 = math.tanh %526 : vector<8x128xf32>
    %528 = arith.negf %526 : vector<8x128xf32>
    %529 = math.exp %528 : vector<8x128xf32>
    %cst_149 = arith.constant 1.000000e+00 : f32
    %530 = vector.broadcast %cst_149 : f32 to vector<8x128xf32>
    %531 = arith.addf %530, %529 : vector<8x128xf32>
    %532 = arith.divf %530, %531 : vector<8x128xf32>
    %533 = arith.select %5, %527, %532 : vector<8x128xi1>, vector<8x128xf32>
    %534 = vector.extract_strided_slice %533 {offsets = [0, 0], sizes = [8, 32], strides = [1, 1]} : vector<8x128xf32> to vector<8x32xf32>
    %535 = vector.extract_strided_slice %533 {offsets = [0, 32], sizes = [8, 32], strides = [1, 1]} : vector<8x128xf32> to vector<8x32xf32>
    %536 = vector.extract_strided_slice %533 {offsets = [0, 64], sizes = [8, 32], strides = [1, 1]} : vector<8x128xf32> to vector<8x32xf32>
    %537 = vector.extract_strided_slice %533 {offsets = [0, 96], sizes = [8, 32], strides = [1, 1]} : vector<8x128xf32> to vector<8x32xf32>
    %538 = arith.mulf %535, %517 : vector<8x32xf32>
    %539 = arith.mulf %534, %536 : vector<8x32xf32>
    %540 = arith.addf %538, %539 : vector<8x32xf32>
    %541 = math.tanh %540 : vector<8x32xf32>
    %542 = arith.mulf %537, %541 : vector<8x32xf32>
    %543 = arith.select %17, %542, %516 : vector<8x32xi1>, vector<8x32xf32>
    %544 = arith.select %17, %540, %517 : vector<8x32xi1>, vector<8x32xf32>
    %cst_150 = arith.constant 0.000000e+00 : f32
    %545 = vector.broadcast %cst_150 : f32 to vector<8x32xf32>
    %546 = arith.select %17, %542, %545 : vector<8x32xi1>, vector<8x32xf32>
    %cst_151 = arith.constant dense<0.000000e+00> : vector<8x128xf32>
    %547 = tpu.matmul %543, %462, %cst_151 {dimension_numbers = #tpu.dot_dimension_numbers<[1], [0], [0], [1], [0, 0, 1, 1], [], []>} : vector<8x32xf32>, vector<32x128xf32>, vector<8x128xf32> -> vector<8x128xf32>
    %548 = vector.broadcast %463 : vector<1x128xf32> to vector<8x128xf32>
    %549 = arith.addf %547, %548 : vector<8x128xf32>
    %cst_152 = arith.constant dense<0.000000e+00> : vector<8x128xf32>
    %550 = tpu.matmul %158, %460, %cst_152 {dimension_numbers = #tpu.dot_dimension_numbers<[1], [0], [0], [1], [0, 0, 1, 1], [], []>} : vector<8x32xf32>, vector<32x128xf32>, vector<8x128xf32> -> vector<8x128xf32>
    %551 = arith.addf %549, %550 : vector<8x128xf32>
    %cst_153 = arith.constant dense<0.000000e+00> : vector<8x128xf32>
    %552 = tpu.matmul %386, %461, %cst_153 {dimension_numbers = #tpu.dot_dimension_numbers<[1], [0], [0], [1], [0, 0, 1, 1], [], []>} : vector<8x32xf32>, vector<32x128xf32>, vector<8x128xf32> -> vector<8x128xf32>
    %553 = arith.addf %551, %552 : vector<8x128xf32>
    %554 = math.tanh %553 : vector<8x128xf32>
    %555 = arith.negf %553 : vector<8x128xf32>
    %556 = math.exp %555 : vector<8x128xf32>
    %cst_154 = arith.constant 1.000000e+00 : f32
    %557 = vector.broadcast %cst_154 : f32 to vector<8x128xf32>
    %558 = arith.addf %557, %556 : vector<8x128xf32>
    %559 = arith.divf %557, %558 : vector<8x128xf32>
    %560 = arith.select %5, %554, %559 : vector<8x128xi1>, vector<8x128xf32>
    %561 = vector.extract_strided_slice %560 {offsets = [0, 0], sizes = [8, 32], strides = [1, 1]} : vector<8x128xf32> to vector<8x32xf32>
    %562 = vector.extract_strided_slice %560 {offsets = [0, 32], sizes = [8, 32], strides = [1, 1]} : vector<8x128xf32> to vector<8x32xf32>
    %563 = vector.extract_strided_slice %560 {offsets = [0, 64], sizes = [8, 32], strides = [1, 1]} : vector<8x128xf32> to vector<8x32xf32>
    %564 = vector.extract_strided_slice %560 {offsets = [0, 96], sizes = [8, 32], strides = [1, 1]} : vector<8x128xf32> to vector<8x32xf32>
    %565 = arith.mulf %562, %544 : vector<8x32xf32>
    %566 = arith.mulf %561, %563 : vector<8x32xf32>
    %567 = arith.addf %565, %566 : vector<8x32xf32>
    %568 = math.tanh %567 : vector<8x32xf32>
    %569 = arith.mulf %564, %568 : vector<8x32xf32>
    %570 = arith.select %21, %569, %543 : vector<8x32xi1>, vector<8x32xf32>
    %571 = arith.select %21, %567, %544 : vector<8x32xi1>, vector<8x32xf32>
    %cst_155 = arith.constant 0.000000e+00 : f32
    %572 = vector.broadcast %cst_155 : f32 to vector<8x32xf32>
    %573 = arith.select %21, %569, %572 : vector<8x32xi1>, vector<8x32xf32>
    %cst_156 = arith.constant dense<0.000000e+00> : vector<8x128xf32>
    %574 = tpu.matmul %570, %462, %cst_156 {dimension_numbers = #tpu.dot_dimension_numbers<[1], [0], [0], [1], [0, 0, 1, 1], [], []>} : vector<8x32xf32>, vector<32x128xf32>, vector<8x128xf32> -> vector<8x128xf32>
    %575 = vector.broadcast %463 : vector<1x128xf32> to vector<8x128xf32>
    %576 = arith.addf %574, %575 : vector<8x128xf32>
    %cst_157 = arith.constant dense<0.000000e+00> : vector<8x128xf32>
    %577 = tpu.matmul %183, %460, %cst_157 {dimension_numbers = #tpu.dot_dimension_numbers<[1], [0], [0], [1], [0, 0, 1, 1], [], []>} : vector<8x32xf32>, vector<32x128xf32>, vector<8x128xf32> -> vector<8x128xf32>
    %578 = arith.addf %576, %577 : vector<8x128xf32>
    %cst_158 = arith.constant dense<0.000000e+00> : vector<8x128xf32>
    %579 = tpu.matmul %361, %461, %cst_158 {dimension_numbers = #tpu.dot_dimension_numbers<[1], [0], [0], [1], [0, 0, 1, 1], [], []>} : vector<8x32xf32>, vector<32x128xf32>, vector<8x128xf32> -> vector<8x128xf32>
    %580 = arith.addf %578, %579 : vector<8x128xf32>
    %581 = math.tanh %580 : vector<8x128xf32>
    %582 = arith.negf %580 : vector<8x128xf32>
    %583 = math.exp %582 : vector<8x128xf32>
    %cst_159 = arith.constant 1.000000e+00 : f32
    %584 = vector.broadcast %cst_159 : f32 to vector<8x128xf32>
    %585 = arith.addf %584, %583 : vector<8x128xf32>
    %586 = arith.divf %584, %585 : vector<8x128xf32>
    %587 = arith.select %5, %581, %586 : vector<8x128xi1>, vector<8x128xf32>
    %588 = vector.extract_strided_slice %587 {offsets = [0, 0], sizes = [8, 32], strides = [1, 1]} : vector<8x128xf32> to vector<8x32xf32>
    %589 = vector.extract_strided_slice %587 {offsets = [0, 32], sizes = [8, 32], strides = [1, 1]} : vector<8x128xf32> to vector<8x32xf32>
    %590 = vector.extract_strided_slice %587 {offsets = [0, 64], sizes = [8, 32], strides = [1, 1]} : vector<8x128xf32> to vector<8x32xf32>
    %591 = vector.extract_strided_slice %587 {offsets = [0, 96], sizes = [8, 32], strides = [1, 1]} : vector<8x128xf32> to vector<8x32xf32>
    %592 = arith.mulf %589, %571 : vector<8x32xf32>
    %593 = arith.mulf %588, %590 : vector<8x32xf32>
    %594 = arith.addf %592, %593 : vector<8x32xf32>
    %595 = math.tanh %594 : vector<8x32xf32>
    %596 = arith.mulf %591, %595 : vector<8x32xf32>
    %597 = arith.select %25, %596, %570 : vector<8x32xi1>, vector<8x32xf32>
    %598 = arith.select %25, %594, %571 : vector<8x32xi1>, vector<8x32xf32>
    %cst_160 = arith.constant 0.000000e+00 : f32
    %599 = vector.broadcast %cst_160 : f32 to vector<8x32xf32>
    %600 = arith.select %25, %596, %599 : vector<8x32xi1>, vector<8x32xf32>
    %cst_161 = arith.constant dense<0.000000e+00> : vector<8x128xf32>
    %601 = tpu.matmul %597, %462, %cst_161 {dimension_numbers = #tpu.dot_dimension_numbers<[1], [0], [0], [1], [0, 0, 1, 1], [], []>} : vector<8x32xf32>, vector<32x128xf32>, vector<8x128xf32> -> vector<8x128xf32>
    %602 = vector.broadcast %463 : vector<1x128xf32> to vector<8x128xf32>
    %603 = arith.addf %601, %602 : vector<8x128xf32>
    %cst_162 = arith.constant dense<0.000000e+00> : vector<8x128xf32>
    %604 = tpu.matmul %208, %460, %cst_162 {dimension_numbers = #tpu.dot_dimension_numbers<[1], [0], [0], [1], [0, 0, 1, 1], [], []>} : vector<8x32xf32>, vector<32x128xf32>, vector<8x128xf32> -> vector<8x128xf32>
    %605 = arith.addf %603, %604 : vector<8x128xf32>
    %cst_163 = arith.constant dense<0.000000e+00> : vector<8x128xf32>
    %606 = tpu.matmul %336, %461, %cst_163 {dimension_numbers = #tpu.dot_dimension_numbers<[1], [0], [0], [1], [0, 0, 1, 1], [], []>} : vector<8x32xf32>, vector<32x128xf32>, vector<8x128xf32> -> vector<8x128xf32>
    %607 = arith.addf %605, %606 : vector<8x128xf32>
    %608 = math.tanh %607 : vector<8x128xf32>
    %609 = arith.negf %607 : vector<8x128xf32>
    %610 = math.exp %609 : vector<8x128xf32>
    %cst_164 = arith.constant 1.000000e+00 : f32
    %611 = vector.broadcast %cst_164 : f32 to vector<8x128xf32>
    %612 = arith.addf %611, %610 : vector<8x128xf32>
    %613 = arith.divf %611, %612 : vector<8x128xf32>
    %614 = arith.select %5, %608, %613 : vector<8x128xi1>, vector<8x128xf32>
    %615 = vector.extract_strided_slice %614 {offsets = [0, 0], sizes = [8, 32], strides = [1, 1]} : vector<8x128xf32> to vector<8x32xf32>
    %616 = vector.extract_strided_slice %614 {offsets = [0, 32], sizes = [8, 32], strides = [1, 1]} : vector<8x128xf32> to vector<8x32xf32>
    %617 = vector.extract_strided_slice %614 {offsets = [0, 64], sizes = [8, 32], strides = [1, 1]} : vector<8x128xf32> to vector<8x32xf32>
    %618 = vector.extract_strided_slice %614 {offsets = [0, 96], sizes = [8, 32], strides = [1, 1]} : vector<8x128xf32> to vector<8x32xf32>
    %619 = arith.mulf %616, %598 : vector<8x32xf32>
    %620 = arith.mulf %615, %617 : vector<8x32xf32>
    %621 = arith.addf %619, %620 : vector<8x32xf32>
    %622 = math.tanh %621 : vector<8x32xf32>
    %623 = arith.mulf %618, %622 : vector<8x32xf32>
    %624 = arith.select %29, %623, %597 : vector<8x32xi1>, vector<8x32xf32>
    %625 = arith.select %29, %621, %598 : vector<8x32xi1>, vector<8x32xf32>
    %cst_165 = arith.constant 0.000000e+00 : f32
    %626 = vector.broadcast %cst_165 : f32 to vector<8x32xf32>
    %627 = arith.select %29, %623, %626 : vector<8x32xi1>, vector<8x32xf32>
    %cst_166 = arith.constant dense<0.000000e+00> : vector<8x128xf32>
    %628 = tpu.matmul %624, %462, %cst_166 {dimension_numbers = #tpu.dot_dimension_numbers<[1], [0], [0], [1], [0, 0, 1, 1], [], []>} : vector<8x32xf32>, vector<32x128xf32>, vector<8x128xf32> -> vector<8x128xf32>
    %629 = vector.broadcast %463 : vector<1x128xf32> to vector<8x128xf32>
    %630 = arith.addf %628, %629 : vector<8x128xf32>
    %cst_167 = arith.constant dense<0.000000e+00> : vector<8x128xf32>
    %631 = tpu.matmul %233, %460, %cst_167 {dimension_numbers = #tpu.dot_dimension_numbers<[1], [0], [0], [1], [0, 0, 1, 1], [], []>} : vector<8x32xf32>, vector<32x128xf32>, vector<8x128xf32> -> vector<8x128xf32>
    %632 = arith.addf %630, %631 : vector<8x128xf32>
    %cst_168 = arith.constant dense<0.000000e+00> : vector<8x128xf32>
    %633 = tpu.matmul %311, %461, %cst_168 {dimension_numbers = #tpu.dot_dimension_numbers<[1], [0], [0], [1], [0, 0, 1, 1], [], []>} : vector<8x32xf32>, vector<32x128xf32>, vector<8x128xf32> -> vector<8x128xf32>
    %634 = arith.addf %632, %633 : vector<8x128xf32>
    %635 = math.tanh %634 : vector<8x128xf32>
    %636 = arith.negf %634 : vector<8x128xf32>
    %637 = math.exp %636 : vector<8x128xf32>
    %cst_169 = arith.constant 1.000000e+00 : f32
    %638 = vector.broadcast %cst_169 : f32 to vector<8x128xf32>
    %639 = arith.addf %638, %637 : vector<8x128xf32>
    %640 = arith.divf %638, %639 : vector<8x128xf32>
    %641 = arith.select %5, %635, %640 : vector<8x128xi1>, vector<8x128xf32>
    %642 = vector.extract_strided_slice %641 {offsets = [0, 0], sizes = [8, 32], strides = [1, 1]} : vector<8x128xf32> to vector<8x32xf32>
    %643 = vector.extract_strided_slice %641 {offsets = [0, 32], sizes = [8, 32], strides = [1, 1]} : vector<8x128xf32> to vector<8x32xf32>
    %644 = vector.extract_strided_slice %641 {offsets = [0, 64], sizes = [8, 32], strides = [1, 1]} : vector<8x128xf32> to vector<8x32xf32>
    %645 = vector.extract_strided_slice %641 {offsets = [0, 96], sizes = [8, 32], strides = [1, 1]} : vector<8x128xf32> to vector<8x32xf32>
    %646 = arith.mulf %643, %625 : vector<8x32xf32>
    %647 = arith.mulf %642, %644 : vector<8x32xf32>
    %648 = arith.addf %646, %647 : vector<8x32xf32>
    %649 = math.tanh %648 : vector<8x32xf32>
    %650 = arith.mulf %645, %649 : vector<8x32xf32>
    %651 = arith.select %33, %650, %624 : vector<8x32xi1>, vector<8x32xf32>
    %652 = arith.select %33, %648, %625 : vector<8x32xi1>, vector<8x32xf32>
    %cst_170 = arith.constant 0.000000e+00 : f32
    %653 = vector.broadcast %cst_170 : f32 to vector<8x32xf32>
    %654 = arith.select %33, %650, %653 : vector<8x32xi1>, vector<8x32xf32>
    %cst_171 = arith.constant dense<0.000000e+00> : vector<8x128xf32>
    %655 = tpu.matmul %651, %462, %cst_171 {dimension_numbers = #tpu.dot_dimension_numbers<[1], [0], [0], [1], [0, 0, 1, 1], [], []>} : vector<8x32xf32>, vector<32x128xf32>, vector<8x128xf32> -> vector<8x128xf32>
    %656 = vector.broadcast %463 : vector<1x128xf32> to vector<8x128xf32>
    %657 = arith.addf %655, %656 : vector<8x128xf32>
    %cst_172 = arith.constant dense<0.000000e+00> : vector<8x128xf32>
    %658 = tpu.matmul %256, %460, %cst_172 {dimension_numbers = #tpu.dot_dimension_numbers<[1], [0], [0], [1], [0, 0, 1, 1], [], []>} : vector<8x32xf32>, vector<32x128xf32>, vector<8x128xf32> -> vector<8x128xf32>
    %659 = arith.addf %657, %658 : vector<8x128xf32>
    %cst_173 = arith.constant dense<0.000000e+00> : vector<8x128xf32>
    %660 = tpu.matmul %286, %461, %cst_173 {dimension_numbers = #tpu.dot_dimension_numbers<[1], [0], [0], [1], [0, 0, 1, 1], [], []>} : vector<8x32xf32>, vector<32x128xf32>, vector<8x128xf32> -> vector<8x128xf32>
    %661 = arith.addf %659, %660 : vector<8x128xf32>
    %662 = math.tanh %661 : vector<8x128xf32>
    %663 = arith.negf %661 : vector<8x128xf32>
    %664 = math.exp %663 : vector<8x128xf32>
    %cst_174 = arith.constant 1.000000e+00 : f32
    %665 = vector.broadcast %cst_174 : f32 to vector<8x128xf32>
    %666 = arith.addf %665, %664 : vector<8x128xf32>
    %667 = arith.divf %665, %666 : vector<8x128xf32>
    %668 = arith.select %5, %662, %667 : vector<8x128xi1>, vector<8x128xf32>
    %669 = vector.extract_strided_slice %668 {offsets = [0, 0], sizes = [8, 32], strides = [1, 1]} : vector<8x128xf32> to vector<8x32xf32>
    %670 = vector.extract_strided_slice %668 {offsets = [0, 32], sizes = [8, 32], strides = [1, 1]} : vector<8x128xf32> to vector<8x32xf32>
    %671 = vector.extract_strided_slice %668 {offsets = [0, 64], sizes = [8, 32], strides = [1, 1]} : vector<8x128xf32> to vector<8x32xf32>
    %672 = vector.extract_strided_slice %668 {offsets = [0, 96], sizes = [8, 32], strides = [1, 1]} : vector<8x128xf32> to vector<8x32xf32>
    %673 = arith.mulf %670, %652 : vector<8x32xf32>
    %674 = arith.mulf %669, %671 : vector<8x32xf32>
    %675 = arith.addf %673, %674 : vector<8x32xf32>
    %676 = math.tanh %675 : vector<8x32xf32>
    %677 = arith.mulf %672, %676 : vector<8x32xf32>
    %cst_175 = arith.constant 0.000000e+00 : f32
    %678 = vector.broadcast %cst_175 : f32 to vector<8x32xf32>
    %679 = arith.select %37, %677, %678 : vector<8x32xi1>, vector<8x32xf32>
    %c0_176 = arith.constant 0 : index
    %c0_177 = arith.constant 0 : index
    %680 = vector.load %arg11[%c0_176, %c0_177] : memref<64x128xf32, #tpu.memory_space<vmem>>, vector<32x128xf32>
    %c32_178 = arith.constant 32 : index
    %c0_179 = arith.constant 0 : index
    %681 = vector.load %arg11[%c32_178, %c0_179] : memref<64x128xf32, #tpu.memory_space<vmem>>, vector<32x128xf32>
    %c0_180 = arith.constant 0 : index
    %c0_181 = arith.constant 0 : index
    %682 = vector.load %arg12[%c0_180, %c0_181] : memref<32x128xf32, #tpu.memory_space<vmem>>, vector<32x128xf32>
    %c0_182 = arith.constant 0 : index
    %c0_183 = arith.constant 0 : index
    %683 = vector.load %arg13[%c0_182, %c0_183] : memref<1x128xf32, #tpu.memory_space<vmem>>, vector<1x128xf32>
    %cst_184 = arith.constant 0.000000e+00 : f32
    %684 = vector.broadcast %cst_184 : f32 to vector<8x32xf32>
    %cst_185 = arith.constant 0.000000e+00 : f32
    %685 = vector.broadcast %cst_185 : f32 to vector<8x32xf32>
    %cst_186 = arith.constant dense<0.000000e+00> : vector<8x128xf32>
    %686 = tpu.matmul %684, %682, %cst_186 {dimension_numbers = #tpu.dot_dimension_numbers<[1], [0], [0], [1], [0, 0, 1, 1], [], []>} : vector<8x32xf32>, vector<32x128xf32>, vector<8x128xf32> -> vector<8x128xf32>
    %687 = vector.broadcast %683 : vector<1x128xf32> to vector<8x128xf32>
    %688 = arith.addf %686, %687 : vector<8x128xf32>
    %cst_187 = arith.constant dense<0.000000e+00> : vector<8x128xf32>
    %689 = tpu.matmul %256, %680, %cst_187 {dimension_numbers = #tpu.dot_dimension_numbers<[1], [0], [0], [1], [0, 0, 1, 1], [], []>} : vector<8x32xf32>, vector<32x128xf32>, vector<8x128xf32> -> vector<8x128xf32>
    %690 = arith.addf %688, %689 : vector<8x128xf32>
    %cst_188 = arith.constant dense<0.000000e+00> : vector<8x128xf32>
    %691 = tpu.matmul %286, %681, %cst_188 {dimension_numbers = #tpu.dot_dimension_numbers<[1], [0], [0], [1], [0, 0, 1, 1], [], []>} : vector<8x32xf32>, vector<32x128xf32>, vector<8x128xf32> -> vector<8x128xf32>
    %692 = arith.addf %690, %691 : vector<8x128xf32>
    %693 = math.tanh %692 : vector<8x128xf32>
    %694 = arith.negf %692 : vector<8x128xf32>
    %695 = math.exp %694 : vector<8x128xf32>
    %cst_189 = arith.constant 1.000000e+00 : f32
    %696 = vector.broadcast %cst_189 : f32 to vector<8x128xf32>
    %697 = arith.addf %696, %695 : vector<8x128xf32>
    %698 = arith.divf %696, %697 : vector<8x128xf32>
    %699 = arith.select %5, %693, %698 : vector<8x128xi1>, vector<8x128xf32>
    %700 = vector.extract_strided_slice %699 {offsets = [0, 0], sizes = [8, 32], strides = [1, 1]} : vector<8x128xf32> to vector<8x32xf32>
    %701 = vector.extract_strided_slice %699 {offsets = [0, 32], sizes = [8, 32], strides = [1, 1]} : vector<8x128xf32> to vector<8x32xf32>
    %702 = vector.extract_strided_slice %699 {offsets = [0, 64], sizes = [8, 32], strides = [1, 1]} : vector<8x128xf32> to vector<8x32xf32>
    %703 = vector.extract_strided_slice %699 {offsets = [0, 96], sizes = [8, 32], strides = [1, 1]} : vector<8x128xf32> to vector<8x32xf32>
    %704 = arith.mulf %701, %685 : vector<8x32xf32>
    %705 = arith.mulf %700, %702 : vector<8x32xf32>
    %706 = arith.addf %704, %705 : vector<8x32xf32>
    %707 = math.tanh %706 : vector<8x32xf32>
    %708 = arith.mulf %703, %707 : vector<8x32xf32>
    %709 = arith.select %37, %708, %684 : vector<8x32xi1>, vector<8x32xf32>
    %710 = arith.select %37, %706, %685 : vector<8x32xi1>, vector<8x32xf32>
    %cst_190 = arith.constant 0.000000e+00 : f32
    %711 = vector.broadcast %cst_190 : f32 to vector<8x32xf32>
    %712 = arith.select %37, %708, %711 : vector<8x32xi1>, vector<8x32xf32>
    %cst_191 = arith.constant dense<0.000000e+00> : vector<8x128xf32>
    %713 = tpu.matmul %709, %682, %cst_191 {dimension_numbers = #tpu.dot_dimension_numbers<[1], [0], [0], [1], [0, 0, 1, 1], [], []>} : vector<8x32xf32>, vector<32x128xf32>, vector<8x128xf32> -> vector<8x128xf32>
    %714 = vector.broadcast %683 : vector<1x128xf32> to vector<8x128xf32>
    %715 = arith.addf %713, %714 : vector<8x128xf32>
    %cst_192 = arith.constant dense<0.000000e+00> : vector<8x128xf32>
    %716 = tpu.matmul %233, %680, %cst_192 {dimension_numbers = #tpu.dot_dimension_numbers<[1], [0], [0], [1], [0, 0, 1, 1], [], []>} : vector<8x32xf32>, vector<32x128xf32>, vector<8x128xf32> -> vector<8x128xf32>
    %717 = arith.addf %715, %716 : vector<8x128xf32>
    %cst_193 = arith.constant dense<0.000000e+00> : vector<8x128xf32>
    %718 = tpu.matmul %311, %681, %cst_193 {dimension_numbers = #tpu.dot_dimension_numbers<[1], [0], [0], [1], [0, 0, 1, 1], [], []>} : vector<8x32xf32>, vector<32x128xf32>, vector<8x128xf32> -> vector<8x128xf32>
    %719 = arith.addf %717, %718 : vector<8x128xf32>
    %720 = math.tanh %719 : vector<8x128xf32>
    %721 = arith.negf %719 : vector<8x128xf32>
    %722 = math.exp %721 : vector<8x128xf32>
    %cst_194 = arith.constant 1.000000e+00 : f32
    %723 = vector.broadcast %cst_194 : f32 to vector<8x128xf32>
    %724 = arith.addf %723, %722 : vector<8x128xf32>
    %725 = arith.divf %723, %724 : vector<8x128xf32>
    %726 = arith.select %5, %720, %725 : vector<8x128xi1>, vector<8x128xf32>
    %727 = vector.extract_strided_slice %726 {offsets = [0, 0], sizes = [8, 32], strides = [1, 1]} : vector<8x128xf32> to vector<8x32xf32>
    %728 = vector.extract_strided_slice %726 {offsets = [0, 32], sizes = [8, 32], strides = [1, 1]} : vector<8x128xf32> to vector<8x32xf32>
    %729 = vector.extract_strided_slice %726 {offsets = [0, 64], sizes = [8, 32], strides = [1, 1]} : vector<8x128xf32> to vector<8x32xf32>
    %730 = vector.extract_strided_slice %726 {offsets = [0, 96], sizes = [8, 32], strides = [1, 1]} : vector<8x128xf32> to vector<8x32xf32>
    %731 = arith.mulf %728, %710 : vector<8x32xf32>
    %732 = arith.mulf %727, %729 : vector<8x32xf32>
    %733 = arith.addf %731, %732 : vector<8x32xf32>
    %734 = math.tanh %733 : vector<8x32xf32>
    %735 = arith.mulf %730, %734 : vector<8x32xf32>
    %736 = arith.select %33, %735, %709 : vector<8x32xi1>, vector<8x32xf32>
    %737 = arith.select %33, %733, %710 : vector<8x32xi1>, vector<8x32xf32>
    %cst_195 = arith.constant 0.000000e+00 : f32
    %738 = vector.broadcast %cst_195 : f32 to vector<8x32xf32>
    %739 = arith.select %33, %735, %738 : vector<8x32xi1>, vector<8x32xf32>
    %cst_196 = arith.constant dense<0.000000e+00> : vector<8x128xf32>
    %740 = tpu.matmul %736, %682, %cst_196 {dimension_numbers = #tpu.dot_dimension_numbers<[1], [0], [0], [1], [0, 0, 1, 1], [], []>} : vector<8x32xf32>, vector<32x128xf32>, vector<8x128xf32> -> vector<8x128xf32>
    %741 = vector.broadcast %683 : vector<1x128xf32> to vector<8x128xf32>
    %742 = arith.addf %740, %741 : vector<8x128xf32>
    %cst_197 = arith.constant dense<0.000000e+00> : vector<8x128xf32>
    %743 = tpu.matmul %208, %680, %cst_197 {dimension_numbers = #tpu.dot_dimension_numbers<[1], [0], [0], [1], [0, 0, 1, 1], [], []>} : vector<8x32xf32>, vector<32x128xf32>, vector<8x128xf32> -> vector<8x128xf32>
    %744 = arith.addf %742, %743 : vector<8x128xf32>
    %cst_198 = arith.constant dense<0.000000e+00> : vector<8x128xf32>
    %745 = tpu.matmul %336, %681, %cst_198 {dimension_numbers = #tpu.dot_dimension_numbers<[1], [0], [0], [1], [0, 0, 1, 1], [], []>} : vector<8x32xf32>, vector<32x128xf32>, vector<8x128xf32> -> vector<8x128xf32>
    %746 = arith.addf %744, %745 : vector<8x128xf32>
    %747 = math.tanh %746 : vector<8x128xf32>
    %748 = arith.negf %746 : vector<8x128xf32>
    %749 = math.exp %748 : vector<8x128xf32>
    %cst_199 = arith.constant 1.000000e+00 : f32
    %750 = vector.broadcast %cst_199 : f32 to vector<8x128xf32>
    %751 = arith.addf %750, %749 : vector<8x128xf32>
    %752 = arith.divf %750, %751 : vector<8x128xf32>
    %753 = arith.select %5, %747, %752 : vector<8x128xi1>, vector<8x128xf32>
    %754 = vector.extract_strided_slice %753 {offsets = [0, 0], sizes = [8, 32], strides = [1, 1]} : vector<8x128xf32> to vector<8x32xf32>
    %755 = vector.extract_strided_slice %753 {offsets = [0, 32], sizes = [8, 32], strides = [1, 1]} : vector<8x128xf32> to vector<8x32xf32>
    %756 = vector.extract_strided_slice %753 {offsets = [0, 64], sizes = [8, 32], strides = [1, 1]} : vector<8x128xf32> to vector<8x32xf32>
    %757 = vector.extract_strided_slice %753 {offsets = [0, 96], sizes = [8, 32], strides = [1, 1]} : vector<8x128xf32> to vector<8x32xf32>
    %758 = arith.mulf %755, %737 : vector<8x32xf32>
    %759 = arith.mulf %754, %756 : vector<8x32xf32>
    %760 = arith.addf %758, %759 : vector<8x32xf32>
    %761 = math.tanh %760 : vector<8x32xf32>
    %762 = arith.mulf %757, %761 : vector<8x32xf32>
    %763 = arith.select %29, %762, %736 : vector<8x32xi1>, vector<8x32xf32>
    %764 = arith.select %29, %760, %737 : vector<8x32xi1>, vector<8x32xf32>
    %cst_200 = arith.constant 0.000000e+00 : f32
    %765 = vector.broadcast %cst_200 : f32 to vector<8x32xf32>
    %766 = arith.select %29, %762, %765 : vector<8x32xi1>, vector<8x32xf32>
    %cst_201 = arith.constant dense<0.000000e+00> : vector<8x128xf32>
    %767 = tpu.matmul %763, %682, %cst_201 {dimension_numbers = #tpu.dot_dimension_numbers<[1], [0], [0], [1], [0, 0, 1, 1], [], []>} : vector<8x32xf32>, vector<32x128xf32>, vector<8x128xf32> -> vector<8x128xf32>
    %768 = vector.broadcast %683 : vector<1x128xf32> to vector<8x128xf32>
    %769 = arith.addf %767, %768 : vector<8x128xf32>
    %cst_202 = arith.constant dense<0.000000e+00> : vector<8x128xf32>
    %770 = tpu.matmul %183, %680, %cst_202 {dimension_numbers = #tpu.dot_dimension_numbers<[1], [0], [0], [1], [0, 0, 1, 1], [], []>} : vector<8x32xf32>, vector<32x128xf32>, vector<8x128xf32> -> vector<8x128xf32>
    %771 = arith.addf %769, %770 : vector<8x128xf32>
    %cst_203 = arith.constant dense<0.000000e+00> : vector<8x128xf32>
    %772 = tpu.matmul %361, %681, %cst_203 {dimension_numbers = #tpu.dot_dimension_numbers<[1], [0], [0], [1], [0, 0, 1, 1], [], []>} : vector<8x32xf32>, vector<32x128xf32>, vector<8x128xf32> -> vector<8x128xf32>
    %773 = arith.addf %771, %772 : vector<8x128xf32>
    %774 = math.tanh %773 : vector<8x128xf32>
    %775 = arith.negf %773 : vector<8x128xf32>
    %776 = math.exp %775 : vector<8x128xf32>
    %cst_204 = arith.constant 1.000000e+00 : f32
    %777 = vector.broadcast %cst_204 : f32 to vector<8x128xf32>
    %778 = arith.addf %777, %776 : vector<8x128xf32>
    %779 = arith.divf %777, %778 : vector<8x128xf32>
    %780 = arith.select %5, %774, %779 : vector<8x128xi1>, vector<8x128xf32>
    %781 = vector.extract_strided_slice %780 {offsets = [0, 0], sizes = [8, 32], strides = [1, 1]} : vector<8x128xf32> to vector<8x32xf32>
    %782 = vector.extract_strided_slice %780 {offsets = [0, 32], sizes = [8, 32], strides = [1, 1]} : vector<8x128xf32> to vector<8x32xf32>
    %783 = vector.extract_strided_slice %780 {offsets = [0, 64], sizes = [8, 32], strides = [1, 1]} : vector<8x128xf32> to vector<8x32xf32>
    %784 = vector.extract_strided_slice %780 {offsets = [0, 96], sizes = [8, 32], strides = [1, 1]} : vector<8x128xf32> to vector<8x32xf32>
    %785 = arith.mulf %782, %764 : vector<8x32xf32>
    %786 = arith.mulf %781, %783 : vector<8x32xf32>
    %787 = arith.addf %785, %786 : vector<8x32xf32>
    %788 = math.tanh %787 : vector<8x32xf32>
    %789 = arith.mulf %784, %788 : vector<8x32xf32>
    %790 = arith.select %25, %789, %763 : vector<8x32xi1>, vector<8x32xf32>
    %791 = arith.select %25, %787, %764 : vector<8x32xi1>, vector<8x32xf32>
    %cst_205 = arith.constant 0.000000e+00 : f32
    %792 = vector.broadcast %cst_205 : f32 to vector<8x32xf32>
    %793 = arith.select %25, %789, %792 : vector<8x32xi1>, vector<8x32xf32>
    %cst_206 = arith.constant dense<0.000000e+00> : vector<8x128xf32>
    %794 = tpu.matmul %790, %682, %cst_206 {dimension_numbers = #tpu.dot_dimension_numbers<[1], [0], [0], [1], [0, 0, 1, 1], [], []>} : vector<8x32xf32>, vector<32x128xf32>, vector<8x128xf32> -> vector<8x128xf32>
    %795 = vector.broadcast %683 : vector<1x128xf32> to vector<8x128xf32>
    %796 = arith.addf %794, %795 : vector<8x128xf32>
    %cst_207 = arith.constant dense<0.000000e+00> : vector<8x128xf32>
    %797 = tpu.matmul %158, %680, %cst_207 {dimension_numbers = #tpu.dot_dimension_numbers<[1], [0], [0], [1], [0, 0, 1, 1], [], []>} : vector<8x32xf32>, vector<32x128xf32>, vector<8x128xf32> -> vector<8x128xf32>
    %798 = arith.addf %796, %797 : vector<8x128xf32>
    %cst_208 = arith.constant dense<0.000000e+00> : vector<8x128xf32>
    %799 = tpu.matmul %386, %681, %cst_208 {dimension_numbers = #tpu.dot_dimension_numbers<[1], [0], [0], [1], [0, 0, 1, 1], [], []>} : vector<8x32xf32>, vector<32x128xf32>, vector<8x128xf32> -> vector<8x128xf32>
    %800 = arith.addf %798, %799 : vector<8x128xf32>
    %801 = math.tanh %800 : vector<8x128xf32>
    %802 = arith.negf %800 : vector<8x128xf32>
    %803 = math.exp %802 : vector<8x128xf32>
    %cst_209 = arith.constant 1.000000e+00 : f32
    %804 = vector.broadcast %cst_209 : f32 to vector<8x128xf32>
    %805 = arith.addf %804, %803 : vector<8x128xf32>
    %806 = arith.divf %804, %805 : vector<8x128xf32>
    %807 = arith.select %5, %801, %806 : vector<8x128xi1>, vector<8x128xf32>
    %808 = vector.extract_strided_slice %807 {offsets = [0, 0], sizes = [8, 32], strides = [1, 1]} : vector<8x128xf32> to vector<8x32xf32>
    %809 = vector.extract_strided_slice %807 {offsets = [0, 32], sizes = [8, 32], strides = [1, 1]} : vector<8x128xf32> to vector<8x32xf32>
    %810 = vector.extract_strided_slice %807 {offsets = [0, 64], sizes = [8, 32], strides = [1, 1]} : vector<8x128xf32> to vector<8x32xf32>
    %811 = vector.extract_strided_slice %807 {offsets = [0, 96], sizes = [8, 32], strides = [1, 1]} : vector<8x128xf32> to vector<8x32xf32>
    %812 = arith.mulf %809, %791 : vector<8x32xf32>
    %813 = arith.mulf %808, %810 : vector<8x32xf32>
    %814 = arith.addf %812, %813 : vector<8x32xf32>
    %815 = math.tanh %814 : vector<8x32xf32>
    %816 = arith.mulf %811, %815 : vector<8x32xf32>
    %817 = arith.select %21, %816, %790 : vector<8x32xi1>, vector<8x32xf32>
    %818 = arith.select %21, %814, %791 : vector<8x32xi1>, vector<8x32xf32>
    %cst_210 = arith.constant 0.000000e+00 : f32
    %819 = vector.broadcast %cst_210 : f32 to vector<8x32xf32>
    %820 = arith.select %21, %816, %819 : vector<8x32xi1>, vector<8x32xf32>
    %cst_211 = arith.constant dense<0.000000e+00> : vector<8x128xf32>
    %821 = tpu.matmul %817, %682, %cst_211 {dimension_numbers = #tpu.dot_dimension_numbers<[1], [0], [0], [1], [0, 0, 1, 1], [], []>} : vector<8x32xf32>, vector<32x128xf32>, vector<8x128xf32> -> vector<8x128xf32>
    %822 = vector.broadcast %683 : vector<1x128xf32> to vector<8x128xf32>
    %823 = arith.addf %821, %822 : vector<8x128xf32>
    %cst_212 = arith.constant dense<0.000000e+00> : vector<8x128xf32>
    %824 = tpu.matmul %133, %680, %cst_212 {dimension_numbers = #tpu.dot_dimension_numbers<[1], [0], [0], [1], [0, 0, 1, 1], [], []>} : vector<8x32xf32>, vector<32x128xf32>, vector<8x128xf32> -> vector<8x128xf32>
    %825 = arith.addf %823, %824 : vector<8x128xf32>
    %cst_213 = arith.constant dense<0.000000e+00> : vector<8x128xf32>
    %826 = tpu.matmul %411, %681, %cst_213 {dimension_numbers = #tpu.dot_dimension_numbers<[1], [0], [0], [1], [0, 0, 1, 1], [], []>} : vector<8x32xf32>, vector<32x128xf32>, vector<8x128xf32> -> vector<8x128xf32>
    %827 = arith.addf %825, %826 : vector<8x128xf32>
    %828 = math.tanh %827 : vector<8x128xf32>
    %829 = arith.negf %827 : vector<8x128xf32>
    %830 = math.exp %829 : vector<8x128xf32>
    %cst_214 = arith.constant 1.000000e+00 : f32
    %831 = vector.broadcast %cst_214 : f32 to vector<8x128xf32>
    %832 = arith.addf %831, %830 : vector<8x128xf32>
    %833 = arith.divf %831, %832 : vector<8x128xf32>
    %834 = arith.select %5, %828, %833 : vector<8x128xi1>, vector<8x128xf32>
    %835 = vector.extract_strided_slice %834 {offsets = [0, 0], sizes = [8, 32], strides = [1, 1]} : vector<8x128xf32> to vector<8x32xf32>
    %836 = vector.extract_strided_slice %834 {offsets = [0, 32], sizes = [8, 32], strides = [1, 1]} : vector<8x128xf32> to vector<8x32xf32>
    %837 = vector.extract_strided_slice %834 {offsets = [0, 64], sizes = [8, 32], strides = [1, 1]} : vector<8x128xf32> to vector<8x32xf32>
    %838 = vector.extract_strided_slice %834 {offsets = [0, 96], sizes = [8, 32], strides = [1, 1]} : vector<8x128xf32> to vector<8x32xf32>
    %839 = arith.mulf %836, %818 : vector<8x32xf32>
    %840 = arith.mulf %835, %837 : vector<8x32xf32>
    %841 = arith.addf %839, %840 : vector<8x32xf32>
    %842 = math.tanh %841 : vector<8x32xf32>
    %843 = arith.mulf %838, %842 : vector<8x32xf32>
    %844 = arith.select %17, %843, %817 : vector<8x32xi1>, vector<8x32xf32>
    %845 = arith.select %17, %841, %818 : vector<8x32xi1>, vector<8x32xf32>
    %cst_215 = arith.constant 0.000000e+00 : f32
    %846 = vector.broadcast %cst_215 : f32 to vector<8x32xf32>
    %847 = arith.select %17, %843, %846 : vector<8x32xi1>, vector<8x32xf32>
    %cst_216 = arith.constant dense<0.000000e+00> : vector<8x128xf32>
    %848 = tpu.matmul %844, %682, %cst_216 {dimension_numbers = #tpu.dot_dimension_numbers<[1], [0], [0], [1], [0, 0, 1, 1], [], []>} : vector<8x32xf32>, vector<32x128xf32>, vector<8x128xf32> -> vector<8x128xf32>
    %849 = vector.broadcast %683 : vector<1x128xf32> to vector<8x128xf32>
    %850 = arith.addf %848, %849 : vector<8x128xf32>
    %cst_217 = arith.constant dense<0.000000e+00> : vector<8x128xf32>
    %851 = tpu.matmul %108, %680, %cst_217 {dimension_numbers = #tpu.dot_dimension_numbers<[1], [0], [0], [1], [0, 0, 1, 1], [], []>} : vector<8x32xf32>, vector<32x128xf32>, vector<8x128xf32> -> vector<8x128xf32>
    %852 = arith.addf %850, %851 : vector<8x128xf32>
    %cst_218 = arith.constant dense<0.000000e+00> : vector<8x128xf32>
    %853 = tpu.matmul %436, %681, %cst_218 {dimension_numbers = #tpu.dot_dimension_numbers<[1], [0], [0], [1], [0, 0, 1, 1], [], []>} : vector<8x32xf32>, vector<32x128xf32>, vector<8x128xf32> -> vector<8x128xf32>
    %854 = arith.addf %852, %853 : vector<8x128xf32>
    %855 = math.tanh %854 : vector<8x128xf32>
    %856 = arith.negf %854 : vector<8x128xf32>
    %857 = math.exp %856 : vector<8x128xf32>
    %cst_219 = arith.constant 1.000000e+00 : f32
    %858 = vector.broadcast %cst_219 : f32 to vector<8x128xf32>
    %859 = arith.addf %858, %857 : vector<8x128xf32>
    %860 = arith.divf %858, %859 : vector<8x128xf32>
    %861 = arith.select %5, %855, %860 : vector<8x128xi1>, vector<8x128xf32>
    %862 = vector.extract_strided_slice %861 {offsets = [0, 0], sizes = [8, 32], strides = [1, 1]} : vector<8x128xf32> to vector<8x32xf32>
    %863 = vector.extract_strided_slice %861 {offsets = [0, 32], sizes = [8, 32], strides = [1, 1]} : vector<8x128xf32> to vector<8x32xf32>
    %864 = vector.extract_strided_slice %861 {offsets = [0, 64], sizes = [8, 32], strides = [1, 1]} : vector<8x128xf32> to vector<8x32xf32>
    %865 = vector.extract_strided_slice %861 {offsets = [0, 96], sizes = [8, 32], strides = [1, 1]} : vector<8x128xf32> to vector<8x32xf32>
    %866 = arith.mulf %863, %845 : vector<8x32xf32>
    %867 = arith.mulf %862, %864 : vector<8x32xf32>
    %868 = arith.addf %866, %867 : vector<8x32xf32>
    %869 = math.tanh %868 : vector<8x32xf32>
    %870 = arith.mulf %865, %869 : vector<8x32xf32>
    %871 = arith.select %13, %870, %844 : vector<8x32xi1>, vector<8x32xf32>
    %872 = arith.select %13, %868, %845 : vector<8x32xi1>, vector<8x32xf32>
    %cst_220 = arith.constant 0.000000e+00 : f32
    %873 = vector.broadcast %cst_220 : f32 to vector<8x32xf32>
    %874 = arith.select %13, %870, %873 : vector<8x32xi1>, vector<8x32xf32>
    %cst_221 = arith.constant dense<0.000000e+00> : vector<8x128xf32>
    %875 = tpu.matmul %871, %682, %cst_221 {dimension_numbers = #tpu.dot_dimension_numbers<[1], [0], [0], [1], [0, 0, 1, 1], [], []>} : vector<8x32xf32>, vector<32x128xf32>, vector<8x128xf32> -> vector<8x128xf32>
    %876 = vector.broadcast %683 : vector<1x128xf32> to vector<8x128xf32>
    %877 = arith.addf %875, %876 : vector<8x128xf32>
    %cst_222 = arith.constant dense<0.000000e+00> : vector<8x128xf32>
    %878 = tpu.matmul %83, %680, %cst_222 {dimension_numbers = #tpu.dot_dimension_numbers<[1], [0], [0], [1], [0, 0, 1, 1], [], []>} : vector<8x32xf32>, vector<32x128xf32>, vector<8x128xf32> -> vector<8x128xf32>
    %879 = arith.addf %877, %878 : vector<8x128xf32>
    %cst_223 = arith.constant dense<0.000000e+00> : vector<8x128xf32>
    %880 = tpu.matmul %459, %681, %cst_223 {dimension_numbers = #tpu.dot_dimension_numbers<[1], [0], [0], [1], [0, 0, 1, 1], [], []>} : vector<8x32xf32>, vector<32x128xf32>, vector<8x128xf32> -> vector<8x128xf32>
    %881 = arith.addf %879, %880 : vector<8x128xf32>
    %882 = math.tanh %881 : vector<8x128xf32>
    %883 = arith.negf %881 : vector<8x128xf32>
    %884 = math.exp %883 : vector<8x128xf32>
    %cst_224 = arith.constant 1.000000e+00 : f32
    %885 = vector.broadcast %cst_224 : f32 to vector<8x128xf32>
    %886 = arith.addf %885, %884 : vector<8x128xf32>
    %887 = arith.divf %885, %886 : vector<8x128xf32>
    %888 = arith.select %5, %882, %887 : vector<8x128xi1>, vector<8x128xf32>
    %889 = vector.extract_strided_slice %888 {offsets = [0, 0], sizes = [8, 32], strides = [1, 1]} : vector<8x128xf32> to vector<8x32xf32>
    %890 = vector.extract_strided_slice %888 {offsets = [0, 32], sizes = [8, 32], strides = [1, 1]} : vector<8x128xf32> to vector<8x32xf32>
    %891 = vector.extract_strided_slice %888 {offsets = [0, 64], sizes = [8, 32], strides = [1, 1]} : vector<8x128xf32> to vector<8x32xf32>
    %892 = vector.extract_strided_slice %888 {offsets = [0, 96], sizes = [8, 32], strides = [1, 1]} : vector<8x128xf32> to vector<8x32xf32>
    %893 = arith.mulf %890, %872 : vector<8x32xf32>
    %894 = arith.mulf %889, %891 : vector<8x32xf32>
    %895 = arith.addf %893, %894 : vector<8x32xf32>
    %896 = math.tanh %895 : vector<8x32xf32>
    %897 = arith.mulf %892, %896 : vector<8x32xf32>
    %cst_225 = arith.constant 0.000000e+00 : f32
    %898 = vector.broadcast %cst_225 : f32 to vector<8x32xf32>
    %899 = arith.select %9, %897, %898 : vector<8x32xi1>, vector<8x32xf32>
    %c0_226 = arith.constant 0 : index
    %c0_227 = arith.constant 0 : index
    %900 = vector.load %arg14[%c0_226, %c0_227] : memref<64x128xf32, #tpu.memory_space<vmem>>, vector<32x128xf32>
    %c32_228 = arith.constant 32 : index
    %c0_229 = arith.constant 0 : index
    %901 = vector.load %arg14[%c32_228, %c0_229] : memref<64x128xf32, #tpu.memory_space<vmem>>, vector<32x128xf32>
    %c0_230 = arith.constant 0 : index
    %c0_231 = arith.constant 0 : index
    %902 = vector.load %arg15[%c0_230, %c0_231] : memref<1x128xf32, #tpu.memory_space<vmem>>, vector<1x128xf32>
    %cst_232 = arith.constant dense<0.000000e+00> : vector<8x128xf32>
    %903 = tpu.matmul %492, %900, %cst_232 {dimension_numbers = #tpu.dot_dimension_numbers<[1], [0], [0], [1], [0, 0, 1, 1], [], []>} : vector<8x32xf32>, vector<32x128xf32>, vector<8x128xf32> -> vector<8x128xf32>
    %cst_233 = arith.constant dense<0.000000e+00> : vector<8x128xf32>
    %904 = tpu.matmul %899, %901, %cst_233 {dimension_numbers = #tpu.dot_dimension_numbers<[1], [0], [0], [1], [0, 0, 1, 1], [], []>} : vector<8x32xf32>, vector<32x128xf32>, vector<8x128xf32> -> vector<8x128xf32>
    %905 = arith.addf %903, %904 : vector<8x128xf32>
    %906 = vector.broadcast %902 : vector<1x128xf32> to vector<8x128xf32>
    %907 = arith.addf %905, %906 : vector<8x128xf32>
    %c0_234 = arith.constant 0 : index
    %c0_235 = arith.constant 0 : index
    %c0_236 = arith.constant 0 : index
    %908 = vector.load %arg16[%c0_234, %c0_235, %c0_236] : memref<8x8x128xf32, #tpu.memory_space<vmem>>, vector<1x8x128xf32>
    %909 = vector.shape_cast %908 : vector<1x8x128xf32> to vector<8x128xf32>
    %910 = vector.shape_cast %907 : vector<8x128xf32> to vector<1x8x128xf32>
    tpu.vector_store %arg16[%c0_234, %c0_235, %c0_236], %910 {strides = array<i32>} : memref<8x8x128xf32, #tpu.memory_space<vmem>>, vector<1x8x128xf32>,
    %cst_237 = arith.constant dense<0.000000e+00> : vector<8x128xf32>
    %911 = tpu.matmul %519, %900, %cst_237 {dimension_numbers = #tpu.dot_dimension_numbers<[1], [0], [0], [1], [0, 0, 1, 1], [], []>} : vector<8x32xf32>, vector<32x128xf32>, vector<8x128xf32> -> vector<8x128xf32>
    %cst_238 = arith.constant dense<0.000000e+00> : vector<8x128xf32>
    %912 = tpu.matmul %874, %901, %cst_238 {dimension_numbers = #tpu.dot_dimension_numbers<[1], [0], [0], [1], [0, 0, 1, 1], [], []>} : vector<8x32xf32>, vector<32x128xf32>, vector<8x128xf32> -> vector<8x128xf32>
    %913 = arith.addf %911, %912 : vector<8x128xf32>
    %914 = vector.broadcast %902 : vector<1x128xf32> to vector<8x128xf32>
    %915 = arith.addf %913, %914 : vector<8x128xf32>
    %c1_239 = arith.constant 1 : index
    %c0_240 = arith.constant 0 : index
    %c0_241 = arith.constant 0 : index
    %916 = vector.load %arg16[%c1_239, %c0_240, %c0_241] : memref<8x8x128xf32, #tpu.memory_space<vmem>>, vector<1x8x128xf32>
    %917 = vector.shape_cast %916 : vector<1x8x128xf32> to vector<8x128xf32>
    %918 = vector.shape_cast %915 : vector<8x128xf32> to vector<1x8x128xf32>
    tpu.vector_store %arg16[%c1_239, %c0_240, %c0_241], %918 {strides = array<i32>} : memref<8x8x128xf32, #tpu.memory_space<vmem>>, vector<1x8x128xf32>,
    %cst_242 = arith.constant dense<0.000000e+00> : vector<8x128xf32>
    %919 = tpu.matmul %546, %900, %cst_242 {dimension_numbers = #tpu.dot_dimension_numbers<[1], [0], [0], [1], [0, 0, 1, 1], [], []>} : vector<8x32xf32>, vector<32x128xf32>, vector<8x128xf32> -> vector<8x128xf32>
    %cst_243 = arith.constant dense<0.000000e+00> : vector<8x128xf32>
    %920 = tpu.matmul %847, %901, %cst_243 {dimension_numbers = #tpu.dot_dimension_numbers<[1], [0], [0], [1], [0, 0, 1, 1], [], []>} : vector<8x32xf32>, vector<32x128xf32>, vector<8x128xf32> -> vector<8x128xf32>
    %921 = arith.addf %919, %920 : vector<8x128xf32>
    %922 = vector.broadcast %902 : vector<1x128xf32> to vector<8x128xf32>
    %923 = arith.addf %921, %922 : vector<8x128xf32>
    %c2_244 = arith.constant 2 : index
    %c0_245 = arith.constant 0 : index
    %c0_246 = arith.constant 0 : index
    %924 = vector.load %arg16[%c2_244, %c0_245, %c0_246] : memref<8x8x128xf32, #tpu.memory_space<vmem>>, vector<1x8x128xf32>
    %925 = vector.shape_cast %924 : vector<1x8x128xf32> to vector<8x128xf32>
    %926 = vector.shape_cast %923 : vector<8x128xf32> to vector<1x8x128xf32>
    tpu.vector_store %arg16[%c2_244, %c0_245, %c0_246], %926 {strides = array<i32>} : memref<8x8x128xf32, #tpu.memory_space<vmem>>, vector<1x8x128xf32>,
    %cst_247 = arith.constant dense<0.000000e+00> : vector<8x128xf32>
    %927 = tpu.matmul %573, %900, %cst_247 {dimension_numbers = #tpu.dot_dimension_numbers<[1], [0], [0], [1], [0, 0, 1, 1], [], []>} : vector<8x32xf32>, vector<32x128xf32>, vector<8x128xf32> -> vector<8x128xf32>
    %cst_248 = arith.constant dense<0.000000e+00> : vector<8x128xf32>
    %928 = tpu.matmul %820, %901, %cst_248 {dimension_numbers = #tpu.dot_dimension_numbers<[1], [0], [0], [1], [0, 0, 1, 1], [], []>} : vector<8x32xf32>, vector<32x128xf32>, vector<8x128xf32> -> vector<8x128xf32>
    %929 = arith.addf %927, %928 : vector<8x128xf32>
    %930 = vector.broadcast %902 : vector<1x128xf32> to vector<8x128xf32>
    %931 = arith.addf %929, %930 : vector<8x128xf32>
    %c3_249 = arith.constant 3 : index
    %c0_250 = arith.constant 0 : index
    %c0_251 = arith.constant 0 : index
    %932 = vector.load %arg16[%c3_249, %c0_250, %c0_251] : memref<8x8x128xf32, #tpu.memory_space<vmem>>, vector<1x8x128xf32>
    %933 = vector.shape_cast %932 : vector<1x8x128xf32> to vector<8x128xf32>
    %934 = vector.shape_cast %931 : vector<8x128xf32> to vector<1x8x128xf32>
    tpu.vector_store %arg16[%c3_249, %c0_250, %c0_251], %934 {strides = array<i32>} : memref<8x8x128xf32, #tpu.memory_space<vmem>>, vector<1x8x128xf32>,
    %cst_252 = arith.constant dense<0.000000e+00> : vector<8x128xf32>
    %935 = tpu.matmul %600, %900, %cst_252 {dimension_numbers = #tpu.dot_dimension_numbers<[1], [0], [0], [1], [0, 0, 1, 1], [], []>} : vector<8x32xf32>, vector<32x128xf32>, vector<8x128xf32> -> vector<8x128xf32>
    %cst_253 = arith.constant dense<0.000000e+00> : vector<8x128xf32>
    %936 = tpu.matmul %793, %901, %cst_253 {dimension_numbers = #tpu.dot_dimension_numbers<[1], [0], [0], [1], [0, 0, 1, 1], [], []>} : vector<8x32xf32>, vector<32x128xf32>, vector<8x128xf32> -> vector<8x128xf32>
    %937 = arith.addf %935, %936 : vector<8x128xf32>
    %938 = vector.broadcast %902 : vector<1x128xf32> to vector<8x128xf32>
    %939 = arith.addf %937, %938 : vector<8x128xf32>
    %c4_254 = arith.constant 4 : index
    %c0_255 = arith.constant 0 : index
    %c0_256 = arith.constant 0 : index
    %940 = vector.load %arg16[%c4_254, %c0_255, %c0_256] : memref<8x8x128xf32, #tpu.memory_space<vmem>>, vector<1x8x128xf32>
    %941 = vector.shape_cast %940 : vector<1x8x128xf32> to vector<8x128xf32>
    %942 = vector.shape_cast %939 : vector<8x128xf32> to vector<1x8x128xf32>
    tpu.vector_store %arg16[%c4_254, %c0_255, %c0_256], %942 {strides = array<i32>} : memref<8x8x128xf32, #tpu.memory_space<vmem>>, vector<1x8x128xf32>,
    %cst_257 = arith.constant dense<0.000000e+00> : vector<8x128xf32>
    %943 = tpu.matmul %627, %900, %cst_257 {dimension_numbers = #tpu.dot_dimension_numbers<[1], [0], [0], [1], [0, 0, 1, 1], [], []>} : vector<8x32xf32>, vector<32x128xf32>, vector<8x128xf32> -> vector<8x128xf32>
    %cst_258 = arith.constant dense<0.000000e+00> : vector<8x128xf32>
    %944 = tpu.matmul %766, %901, %cst_258 {dimension_numbers = #tpu.dot_dimension_numbers<[1], [0], [0], [1], [0, 0, 1, 1], [], []>} : vector<8x32xf32>, vector<32x128xf32>, vector<8x128xf32> -> vector<8x128xf32>
    %945 = arith.addf %943, %944 : vector<8x128xf32>
    %946 = vector.broadcast %902 : vector<1x128xf32> to vector<8x128xf32>
    %947 = arith.addf %945, %946 : vector<8x128xf32>
    %c5_259 = arith.constant 5 : index
    %c0_260 = arith.constant 0 : index
    %c0_261 = arith.constant 0 : index
    %948 = vector.load %arg16[%c5_259, %c0_260, %c0_261] : memref<8x8x128xf32, #tpu.memory_space<vmem>>, vector<1x8x128xf32>
    %949 = vector.shape_cast %948 : vector<1x8x128xf32> to vector<8x128xf32>
    %950 = vector.shape_cast %947 : vector<8x128xf32> to vector<1x8x128xf32>
    tpu.vector_store %arg16[%c5_259, %c0_260, %c0_261], %950 {strides = array<i32>} : memref<8x8x128xf32, #tpu.memory_space<vmem>>, vector<1x8x128xf32>,
    %cst_262 = arith.constant dense<0.000000e+00> : vector<8x128xf32>
    %951 = tpu.matmul %654, %900, %cst_262 {dimension_numbers = #tpu.dot_dimension_numbers<[1], [0], [0], [1], [0, 0, 1, 1], [], []>} : vector<8x32xf32>, vector<32x128xf32>, vector<8x128xf32> -> vector<8x128xf32>
    %cst_263 = arith.constant dense<0.000000e+00> : vector<8x128xf32>
    %952 = tpu.matmul %739, %901, %cst_263 {dimension_numbers = #tpu.dot_dimension_numbers<[1], [0], [0], [1], [0, 0, 1, 1], [], []>} : vector<8x32xf32>, vector<32x128xf32>, vector<8x128xf32> -> vector<8x128xf32>
    %953 = arith.addf %951, %952 : vector<8x128xf32>
    %954 = vector.broadcast %902 : vector<1x128xf32> to vector<8x128xf32>
    %955 = arith.addf %953, %954 : vector<8x128xf32>
    %c6_264 = arith.constant 6 : index
    %c0_265 = arith.constant 0 : index
    %c0_266 = arith.constant 0 : index
    %956 = vector.load %arg16[%c6_264, %c0_265, %c0_266] : memref<8x8x128xf32, #tpu.memory_space<vmem>>, vector<1x8x128xf32>
    %957 = vector.shape_cast %956 : vector<1x8x128xf32> to vector<8x128xf32>
    %958 = vector.shape_cast %955 : vector<8x128xf32> to vector<1x8x128xf32>
    tpu.vector_store %arg16[%c6_264, %c0_265, %c0_266], %958 {strides = array<i32>} : memref<8x8x128xf32, #tpu.memory_space<vmem>>, vector<1x8x128xf32>,
    %cst_267 = arith.constant dense<0.000000e+00> : vector<8x128xf32>
    %959 = tpu.matmul %679, %900, %cst_267 {dimension_numbers = #tpu.dot_dimension_numbers<[1], [0], [0], [1], [0, 0, 1, 1], [], []>} : vector<8x32xf32>, vector<32x128xf32>, vector<8x128xf32> -> vector<8x128xf32>
    %cst_268 = arith.constant dense<0.000000e+00> : vector<8x128xf32>
    %960 = tpu.matmul %712, %901, %cst_268 {dimension_numbers = #tpu.dot_dimension_numbers<[1], [0], [0], [1], [0, 0, 1, 1], [], []>} : vector<8x32xf32>, vector<32x128xf32>, vector<8x128xf32> -> vector<8x128xf32>
    %961 = arith.addf %959, %960 : vector<8x128xf32>
    %962 = vector.broadcast %902 : vector<1x128xf32> to vector<8x128xf32>
    %963 = arith.addf %961, %962 : vector<8x128xf32>
    %c7_269 = arith.constant 7 : index
    %c0_270 = arith.constant 0 : index
    %c0_271 = arith.constant 0 : index
    %964 = vector.load %arg16[%c7_269, %c0_270, %c0_271] : memref<8x8x128xf32, #tpu.memory_space<vmem>>, vector<1x8x128xf32>
    %965 = vector.shape_cast %964 : vector<1x8x128xf32> to vector<8x128xf32>
    %966 = vector.shape_cast %963 : vector<8x128xf32> to vector<1x8x128xf32>
    tpu.vector_store %arg16[%c7_269, %c0_270, %c0_271], %966 {strides = array<i32>} : memref<8x8x128xf32, #tpu.memory_space<vmem>>, vector<1x8x128xf32>,
    return
  }
}

</mosaic_0001>

<bundles_post_ra>
// kernel: tpu_custom_call.1
= control target key start
LH: loop header
LB: loop body
LE: loop exit
PB: predicated region body
PF: predicated region fallthrough
CT: control target
= control target key end

     0   :  { %s6457_s0 = inlined_call_operand.hbm [shape: f32[8,8,32], index: 0, kind: input, shape index: {}]   ;;  %s6458_s1 = inlined_call_operand.hbm [shape: f32[8,8,32], index: 1, kind: input, shape index: {}]   ;;  %s6459_s2 = inlined_call_operand.hbm [shape: f32[32,128], index: 2, kind: input, shape index: {}]   ;;  %s6460_s3 = inlined_call_operand.hbm [shape: f32[32,128], index: 3, kind: input, shape index: {}]   ;;  %s6461_s4 = inlined_call_operand.vmem [shape: f32[1,128], index: 4, kind: input, shape index: {}]   ;;  %s6462_s5 = inlined_call_operand.hbm [shape: f32[32,128], index: 5, kind: input, shape index: {}]   ;;  %s6463_s6 = inlined_call_operand.hbm [shape: f32[32,128], index: 6, kind: input, shape index: {}]   ;;  %s6464_s7 = inlined_call_operand.vmem [shape: f32[1,128], index: 7, kind: input, shape index: {}]   ;;  %s6465_s8 = inlined_call_operand.hbm [shape: f32[64,128], index: 8, kind: input, shape index: {}]   ;;  %s6466_s9 = inlined_call_operand.hbm [shape: f32[32,128], index: 9, kind: input, shape index: {}]   ;;  %s6467_s10 = inlined_call_operand.vmem [shape: f32[1,128], index: 10, kind: input, shape index: {}]   ;;  %s6468_s11 = inlined_call_operand.hbm [shape: f32[64,128], index: 11, kind: input, shape index: {}]   ;;  %s6469_s12 = inlined_call_operand.hbm [shape: f32[32,128], index: 12, kind: input, shape index: {}]   ;;  %s6470_s13 = inlined_call_operand.vmem [shape: f32[1,128], index: 13, kind: input, shape index: {}]   ;;  %s6471_s14 = inlined_call_operand.hbm [shape: f32[64,128], index: 14, kind: input, shape index: {}]   ;;  %s6472_s15 = inlined_call_operand.vmem [shape: f32[1,128], index: 15, kind: input, shape index: {}]   ;;  %s6473_s16 = inlined_call_operand.hbm [shape: f32[8,8,128], index: 16, kind: output, shape index: {}]  }
   0x1   :  { %6475 = sst [smem:[#allocation29_spill]] %s6457_s0 }
   0x2   :  { %21 = vsyncpa [#allocation3], 0 }
   0x3   :  { %22 = vsyncpa [#allocation6], 0 }
   0x4   :  { %23 = vsyncpa [#allocation9], 0 }
   0x5   :  { %24 = vsyncpa [#allocation12], 0 }
   0x6   :  { %25 = vsyncpa [#allocation15], 0 }
   0x7   :  { %26 = vsyncpa [#allocation18], 0 }
   0x8   :  { %27 = vsyncpa [#allocation4], 0  ;;  %s45_s23 = sshll.u32 %s6458_s1, 4  ;;  %s4914_s24 = smov [#allocation5]   ;;  %s46_s23 = int_to_ptr.hbm [resolvable:$true] %s45_s23 }
   0x9   :  { %s47_s25 = sshll.u32 %s4914_s24, 4  ;;  %s71_s28 = sshll.u32 %s6460_s3, 4  ;;  %s48_s25 = int_to_ptr.vmem [resolvable:$true] %s47_s25  ;;  %s72_s28 = int_to_ptr.hbm [resolvable:$true] %s71_s28 }
   0xa   :  { %s4915_s29 = smov 128   ;;  %s4916_s30 = smov 8  }
   0xb   :  { %53 = dma.hbm_to_vmem [thread:$0]  %s46_s23, 1024, %s48_s25, [#allocation6], %s4915_s29, %s4915_s29, %s4916_s30  }
   0xc   :  { %s4917_s0 = smov [#allocation8]   ;;  %s99_s1 = sshll.u32 %s6463_s6, 4  ;;  %s100_s1 = int_to_ptr.hbm [resolvable:$true] %s99_s1 }
   0xd   :  { %s73_s17 = sshll.u32 %s4917_s0, 4  ;;  %s127_s21 = sshll.u32 %s6466_s9, 4  ;;  %s74_s17 = int_to_ptr.vmem [resolvable:$true] %s73_s17  ;;  %s128_s21 = int_to_ptr.hbm [resolvable:$true] %s127_s21 }
   0xe   :  { %79 = dma.hbm_to_vmem [thread:$0]  %s72_s28, 512, %s74_s17, [#allocation9], %s4915_s29, %s4915_s29, %s4916_s30  }
   0xf   :  { %s4918_s22 = smov [#allocation11]   ;;  %s4919_s23 = smov [#allocation14]  }
  0x10   :  { %s101_s24 = sshll.u32 %s4918_s22, 4  ;;  %s129_s6 = sshll.u32 %s4919_s23, 4  ;;  %s102_s24 = int_to_ptr.vmem [resolvable:$true] %s101_s24  ;;  %s130_s6 = int_to_ptr.vmem [resolvable:$true] %s129_s6 }
  0x11   :  { %107 = dma.hbm_to_vmem [thread:$0]  %s100_s1, 512, %s102_s24, [#allocation12], %s4915_s29, %s4915_s29, %s4916_s30  }
  0x12   :  { %s155_s27 = sshll.u32 %s6469_s12, 4  ;;  %s6476_s0 = sld [smem:[#allocation29_spill]]  ;;  %s156_s27 = int_to_ptr.hbm [resolvable:$true] %s155_s27 }
  0x13   :  { %135 = dma.hbm_to_vmem [thread:$0]  %s128_s21, 512, %s130_s6, [#allocation15], %s4915_s29, %s4915_s29, %s4916_s30  }
  0x14   :  { %s4920_s18 = smov [#allocation17]   ;;  %s4921_s1 = smov [#allocation2]  }
  0x15   :  { %s157_s19 = sshll.u32 %s4920_s18, 4  ;;  %s34_s12 = sshll.u32 %s4921_s1, 4  ;;  %s158_s19 = int_to_ptr.vmem [resolvable:$true] %s157_s19  ;;  %s35_s12 = int_to_ptr.vmem [resolvable:$true] %s34_s12 }
  0x16   :  { %163 = dma.hbm_to_vmem [thread:$0]  %s156_s27, 512, %s158_s19, [#allocation18], %s4915_s29, %s4915_s29, %s4916_s30  }
  0x17   :  { %s58_s22 = sshll.u32 %s6459_s2, 4  ;;  %s86_s23 = sshll.u32 %s6462_s5, 4  ;;  %s59_s22 = int_to_ptr.hbm [resolvable:$true] %s58_s22  ;;  %s87_s23 = int_to_ptr.hbm [resolvable:$true] %s86_s23 }
  0x18   :  { %s32_s17 = sshll.u32 %s6476_s0, 4  ;;  %s4922_s6 = smov [#allocation7]   ;;  %s33_s17 = int_to_ptr.hbm [resolvable:$true] %s32_s17 }
  0x19   :  { %40 = dma.hbm_to_vmem [thread:$0]  %s33_s17, 1024, %s35_s12, [#allocation3], %s4915_s29, %s4915_s29, %s4916_s30  }
  0x1a   :  { %s60_s25 = sshll.u32 %s4922_s6, 4  ;;  %s4923_s26 = smov [#allocation10]   ;;  %s61_s25 = int_to_ptr.vmem [resolvable:$true] %s60_s25 }
  0x1b   :  { %66 = dma.hbm_to_vmem [thread:$0]  %s59_s22, 512, %s61_s25, [#allocation6], %s4915_s29, %s4915_s29, %s4916_s30  }
  0x1c   :  { %s88_s2 = sshll.u32 %s4923_s26, 4  ;;  %s114_s28 = sshll.u32 %s6465_s8, 4  ;;  %s89_s2 = int_to_ptr.vmem [resolvable:$true] %s88_s2  ;;  %s115_s28 = int_to_ptr.hbm [resolvable:$true] %s114_s28 }
  0x1d   :  { %94 = dma.hbm_to_vmem [thread:$0]  %s87_s23, 512, %s89_s2, [#allocation9], %s4915_s29, %s4915_s29, %s4916_s30  }
  0x1e   :  { %s142_s17 = sshll.u32 %s6468_s11, 4  ;;  %s4924_s18 = smov [#allocation13]   ;;  %s143_s17 = int_to_ptr.hbm [resolvable:$true] %s142_s17 }
  0x1f   :  { %s116_s19 = sshll.u32 %s4924_s18, 4  ;;  %s4925_s1 = smov [#allocation16]   ;;  %s117_s19 = int_to_ptr.vmem [resolvable:$true] %s116_s19 }
  0x20   :  { %122 = dma.hbm_to_vmem [thread:$0]  %s115_s28, 1024, %s117_s19, [#allocation12], %s4915_s29, %s4915_s29, %s4916_s30  }
  0x21   :  { %s144_s8 = sshll.u32 %s4925_s1, 4  ;;  %s170_s20 = sshll.u32 %s6471_s14, 4  ;;  %s145_s8 = int_to_ptr.vmem [resolvable:$true] %s144_s8  ;;  %s171_s20 = int_to_ptr.hbm [resolvable:$true] %s170_s20 }
  0x22   :  { %150 = dma.hbm_to_vmem [thread:$0]  %s143_s17, 1024, %s145_s8, [#allocation15], %s4915_s29, %s4915_s29, %s4916_s30  }
  0x23   :  { %s4926_s11 = smov [#allocation19]  }
  0x24   :  { %s172_s22 = sshll.u32 %s4926_s11, 4  ;;  %s173_s22 = int_to_ptr.vmem [resolvable:$true] %s172_s22 }
  0x25   :  { %178 = dma.hbm_to_vmem [thread:$0]  %s171_s20, 1024, %s173_s22, [#allocation18], %s4915_s29, %s4915_s29, %s4916_s30  }
  0x26   :  { %4900 = dma.done.wait [#allocation3], 1024  }
  0x27   :  { %4901 = vsyncadd [#allocation3], 4294966272 }
  0x28   :  { %4902 = dma.done.wait [#allocation6], 1536  }
  0x29   :  { %4903 = vsyncadd [#allocation6], 4294965760 }
  0x2a   :  { %4904 = dma.done.wait [#allocation9], 1024  }
  0x2b   :  { %4905 = vsyncadd [#allocation9], 4294966272 }
  0x2c   :  { %4906 = dma.done.wait [#allocation12], 1536  }
  0x2d   :  { %4907 = vsyncadd [#allocation12], 4294965760 }
  0x2e   :  { %4908 = dma.done.wait [#allocation15], 1536  }
  0x2f   :  { %4909 = vsyncadd [#allocation15], 4294965760 }
  0x30   :  { %4910 = dma.done.wait [#allocation18], 1536  }
  0x31   :  { %4911 = vsyncadd [#allocation18], 4294965760  ;;  %v5083_v0 = vld [vmem:[#allocation8 + $0x18] sm:$0xff]  ;;  %v5085_v1 = vld [vmem:[#allocation8 + $0x10] sm:$0xff]  ;;  %vm280_vm0 = vcmask 261120   ;;  %v4927_v9 = vmov 0.0   ;;  %v225_v18 = vlaneseq }
  0x32   :  { %v5087_v2 = vld [vmem:[#allocation7 + $0x18] sm:$0xff]  ;;  %296 = vmatpush.msra.mxu0 %v5083_v0  ;;  %v5091_v3 = vld [vmem:[#allocation7 + $0x10] sm:$0xff]  ;;  %v5093_v4 = vld [vmem:[#allocation8 + $0x8] sm:$0xff]  ;;  %391 = vmatpush.msra.mxu2 %v5083_v0  ;;  %s4928_s24 = smov 64   ;;  %s4929_s23 = smov 32  }
  0x33   :  { %319 = vmatpush.msra.mxu1 %v5087_v2  ;;  %v5095_v5 = vld [vmem:[#allocation8] sm:$0xff]  ;;  %v5097_v6 = vld [vmem:[#allocation7 + $0x8] sm:$0xff]  ;;  %414 = vmatpush.msra.mxu3 %v5087_v2  ;;  %v226_v20 = vand.u32 127, %v225_v18  ;;  %s4930_s6 = smov 96   ;;  %v5169_v42 = vld [vmem:[#allocation2 + $0x10] sm:$0xff]  ;;  %s4181_s1 = sshll.u32 %s6473_s16, 4  ;;  %s4182_s1 = int_to_ptr.hbm [resolvable:$true] %s4181_s1 }
  0x34   :  { %297 = vmatpush.msra.mxu0 %v5085_v1  ;;  %v5103_v7 = vld [vmem:[#allocation7] sm:$0xff]  ;;  %392 = vmatpush.msra.mxu2 %v5085_v1  ;;  %v5178_v44 = vld [vmem:[#allocation10 + $0x18] sm:$0xff]  ;;  %v5183_v45 = vld [vmem:[#allocation10 + $0x10] sm:$0xff] }
  0x35   :  { %320 = vmatpush.msra.mxu1 %v5091_v3  ;;  %415 = vmatpush.msra.mxu3 %v5091_v3  ;;  %v5109_v8 = vld [vmem:[#allocation2] sm:$0xff]  ;;  %vm227_vm1 = vcmp.ge.s32.totalorder %v226_v20, 64  ;;  %vm228_vm2 = vcmp.lt.s32.totalorder %v226_v20, 96  ;;  %v5186_v46 = vld [vmem:[#allocation10 + $0x8] sm:$0xff]  ;;  %v265_v47 = vld [vmem:[#allocation2 + $0x30] sm:$0xff] }
  0x36   :  { %298 = vmatpush.msra.mxu0 %v5093_v4  ;;  %393 = vmatpush.msra.mxu2 %v5093_v4  ;;  %v5147_v10 = vld [vmem:[%s6461_s4] ss:$0 sm:$0xff]  ;;  %vm5150_vm4 = vmand %vm227_vm1, %vm228_vm2  ;;  %v267_v51 = vld [vmem:[#allocation2 + $0x38] sm:$0xff] }
  0x37   :  { %321 = vmatpush.msra.mxu1 %v5097_v6  ;;  %416 = vmatpush.msra.mxu3 %v5097_v6  ;;  %v5160_v39 = vld [vmem:[#allocation5] sm:$0xff]  ;;  %v255_v52 = vld [vmem:[#allocation2 + $0x8] sm:$0xff]  ;;  %v259_v54 = vld [vmem:[#allocation2 + $0x18] sm:$0xff] }
  0x38   :  { %299 = vmatpush.msra.mxu0 %v5095_v5  ;;  %394 = vmatpush.msra.mxu2 %v5095_v5  ;;  %6479 = vst [vmem:[#allocation28_spill] sm:$0xff] %v5160_v39  ;;  %vm231_vm8 = vcmp.gt.f32.partialorder %v5160_v39, 0.0  ;;  %v5175_v43 = vld [vmem:[#allocation2 + $0x20] sm:$0xff]  ;;  %v263_v53 = vld [vmem:[#allocation2 + $0x28] sm:$0xff]  ;;  %v1847_v55 = vld [vmem:[#allocation13 + $0x18] sm:$0xff] }
  0x39   :  { %322 = vmatpush.msra.mxu1 %v5103_v7  ;;  %300 = vmatmul.f32.vlgmr.msra.gmra.mxu0 %v4927_v9  ;;  %v1070_v50 = vld [vmem:[#allocation10] sm:$0xff]  ;;  %v1846_v56 = vld [vmem:[#allocation13 + $0x10] sm:$0xff]  ;;  %v1845_v57 = vld [vmem:[#allocation13 + $0x8] sm:$0xff] }
  0x3a   :  { %4199 = vmatmul.msk.f32.vlgmr.msra.gmra.mxu1 %vm280_vm0, %v5109_v8  ;;  %417 = vmatpush.msra.mxu3 %v5103_v7  ;;  %v1844_v58 = vld [vmem:[#allocation13] sm:$0xff] }
  0x3b   :  { %514 = vmatpush.msrb.mxu1 %v5087_v2  ;;  %491 = vmatpush.msrb.mxu0 %v5083_v0 }
  0x3c   :  { %591 = vmatpush.msrb.mxu2 %v5083_v0  ;;  %614 = vmatpush.msrb.mxu3 %v5087_v2 }
  0x3d   :  { %515 = vmatpush.msrb.mxu1 %v5091_v3  ;;  %492 = vmatpush.msrb.mxu0 %v5085_v1 }
  0x3e   :  { %592 = vmatpush.msrb.mxu2 %v5085_v1  ;;  %615 = vmatpush.msrb.mxu3 %v5091_v3 }
  0x3f   :  { %516 = vmatpush.msrb.mxu1 %v5097_v6  ;;  %493 = vmatpush.msrb.mxu0 %v5093_v4 }
  0x40   :  { %593 = vmatpush.msrb.mxu2 %v5093_v4  ;;  %616 = vmatpush.msrb.mxu3 %v5097_v6 }
  0x41   :  { %517 = vmatpush.msrb.mxu1 %v5103_v7  ;;  %494 = vmatpush.msrb.mxu0 %v5095_v5 }
  0x42   :  { %594 = vmatpush.msrb.mxu2 %v5095_v5  ;;  %617 = vmatpush.msrb.mxu3 %v5103_v7 }
  0x43   :  { %714 = vmatpush.msra.mxu1 %v5087_v2  ;;  %691 = vmatpush.msra.mxu0 %v5083_v0 }
  0x44   :  { %4205 = vmatmul.msk.f32.vlgmr.msrb.gmra.mxu1 %vm280_vm0, %v5169_v42  ;;  %4202 = vmatmul.msk.f32.vlgmr.msra.gmra.mxu3 %vm280_vm0, %v255_v52 }
  0x45   :  { %715 = vmatpush.msra.mxu1 %v5091_v3  ;;  %692 = vmatpush.msra.mxu0 %v5085_v1 }
  0x46   :  { %814 = vmatpush.msra.mxu3 %v5087_v2 }
  0x47   :  { %716 = vmatpush.msra.mxu1 %v5097_v6  ;;  %693 = vmatpush.msra.mxu0 %v5093_v4 }
  0x48   :  { %815 = vmatpush.msra.mxu3 %v5091_v3 }
  0x49   :  { %717 = vmatpush.msra.mxu1 %v5103_v7  ;;  %694 = vmatpush.msra.mxu0 %v5095_v5 }
  0x4a   :  { %816 = vmatpush.msra.mxu3 %v5097_v6 }
  0x4b   :  { %914 = vmatpush.msrb.mxu1 %v5087_v2 }
  0x4c   :  { %4211 = vmatmul.msk.f32.vlgmr.msra.gmra.mxu1 %vm280_vm0, %v5175_v43  ;;  %817 = vmatpush.msra.mxu3 %v5103_v7 }
  0x4d   :  { %915 = vmatpush.msrb.mxu1 %v5091_v3  ;;  %4208 = vmatmul.msk.f32.vlgmr.msrb.gmra.mxu3 %vm280_vm0, %v259_v54 }
  0x4e   :  { %1014 = vmatpush.msrb.mxu3 %v5087_v2 }
  0x4f   :  { %916 = vmatpush.msrb.mxu1 %v5097_v6 }
  0x50   :  { %1015 = vmatpush.msrb.mxu3 %v5091_v3 }
  0x51   :  { %917 = vmatpush.msrb.mxu1 %v5103_v7 }
  0x52   :  { %1016 = vmatpush.msrb.mxu3 %v5097_v6 }
  0x53   :  { %1114 = vmatpush.msra.mxu1 %v5178_v44 }
  0x54   :  { %4217 = vmatmul.msk.f32.vlgmr.msrb.gmra.mxu1 %vm280_vm0, %v265_v47  ;;  %1017 = vmatpush.msrb.mxu3 %v5103_v7 }
  0x55   :  { %1115 = vmatpush.msra.mxu1 %v5183_v45  ;;  %4214 = vmatmul.msk.f32.vlgmr.msra.gmra.mxu3 %vm280_vm0, %v263_v53 }
  0x56   :  { %1206 = vmatpush.msra.mxu3 %v5178_v44 }
  0x57   :  { %1116 = vmatpush.msra.mxu1 %v5186_v46 }
  0x58   :  { %1207 = vmatpush.msra.mxu3 %v5183_v45 }
  0x59   :  { %1117 = vmatpush.msra.mxu1 %v1070_v50 }
  0x5a   :  { %1208 = vmatpush.msra.mxu3 %v5186_v46 }
  0x5b   :  { %1303 = vmatpush.msrb.mxu1 %v5178_v44 }
  0x5c   :  { %4222 = vmatmul.msk.f32.vlgmr.msra.gmra.mxu1 %vm280_vm0, %v267_v51  ;;  %1209 = vmatpush.msra.mxu3 %v1070_v50 }
  0x5d   :  { %1304 = vmatpush.msrb.mxu1 %v5183_v45  ;;  %4220 = vmatmul.msk.f32.vlgmr.msrb.gmra.mxu3 %vm280_vm0, %v267_v51 }
  0x5e   :  { %1400 = vmatpush.msrb.mxu3 %v5178_v44 }
  0x5f   :  { %1305 = vmatpush.msrb.mxu1 %v5186_v46 }
  0x60   :  { %1401 = vmatpush.msrb.mxu3 %v5183_v45 }
  0x61   :  { %1306 = vmatpush.msrb.mxu1 %v1070_v50 }
  0x62   :  { %1402 = vmatpush.msrb.mxu3 %v5186_v46 }
  0x63   :  { %1497 = vmatpush.msra.mxu1 %v5178_v44 }
  0x64   :  { %4228 = vmatmul.msk.f32.vlgmr.msrb.gmra.mxu1 %vm280_vm0, %v263_v53  ;;  %1403 = vmatpush.msrb.mxu3 %v1070_v50 }
  0x65   :  { %1498 = vmatpush.msra.mxu1 %v5183_v45  ;;  %4225 = vmatmul.msk.f32.vlgmr.msra.gmra.mxu3 %vm280_vm0, %v265_v47 }
  0x66   :  { %1594 = vmatpush.msra.mxu3 %v5178_v44 }
  0x67   :  { %1499 = vmatpush.msra.mxu1 %v5186_v46 }
  0x68   :  { %1595 = vmatpush.msra.mxu3 %v5183_v45 }
  0x69   :  { %1500 = vmatpush.msra.mxu1 %v1070_v50 }
  0x6a   :  { %1596 = vmatpush.msra.mxu3 %v5186_v46 }
  0x6b   :  { %1691 = vmatpush.msrb.mxu1 %v5178_v44 }
  0x6c   :  { %4234 = vmatmul.msk.f32.vlgmr.msra.gmra.mxu1 %vm280_vm0, %v259_v54  ;;  %1597 = vmatpush.msra.mxu3 %v1070_v50 }
  0x6d   :  { %1692 = vmatpush.msrb.mxu1 %v5183_v45  ;;  %4231 = vmatmul.msk.f32.vlgmr.msrb.gmra.mxu3 %vm280_vm0, %v5175_v43 }
  0x6e   :  { %1788 = vmatpush.msrb.mxu3 %v5178_v44 }
  0x6f   :  { %1693 = vmatpush.msrb.mxu1 %v5186_v46 }
  0x70   :  { %1789 = vmatpush.msrb.mxu3 %v5183_v45 }
  0x71   :  { %1694 = vmatpush.msrb.mxu1 %v1070_v50 }
  0x72   :  { %1790 = vmatpush.msrb.mxu3 %v5186_v46 }
  0x73   :  { %1892 = vmatpush.msra.mxu1 %v1847_v55 }
  0x74   :  { %4240 = vmatmul.msk.f32.vlgmr.msrb.gmra.mxu1 %vm280_vm0, %v255_v52  ;;  %1791 = vmatpush.msrb.mxu3 %v1070_v50 }
  0x75   :  { %1893 = vmatpush.msra.mxu1 %v1846_v56  ;;  %4237 = vmatmul.msk.f32.vlgmr.msra.gmra.mxu3 %vm280_vm0, %v5169_v42 }
  0x77   :  { %1894 = vmatpush.msra.mxu1 %v1845_v57 }
  0x79   :  { %1895 = vmatpush.msra.mxu1 %v1844_v58 }
  0x7d   :  { %4243 = vmatmul.msk.f32.vlgmr.msrb.gmra.mxu3 %vm280_vm0, %v5109_v8 }
  0xb6   :  { %v301_v11 = vpop.f32.mrf.mxu0 }
  0xb7   :  { %v324_v12 = vpop.f32.mrf.mxu1  ;;  %v302_v13 = vadd.f32 %v5147_v10, %v301_v11 }
  0xb9   :  { %v327_v14 = vadd.f32 %v324_v12, %v302_v13 }
  0xbb   :  { %v4200_v15 = vmul.f32 -1.442695, %v327_v14 }
  0xbd   :  { %4346 = vpow2.f32 %v4200_v15 }
  0xc3   :  { %v4347_v16 = vpop.eup %4346 }
  0xc4   :  { %v332_v17 = vadd.f32 1.0, %v4347_v16 }
  0xc6   :  { %4348 = vrcp.f32 %v332_v17  ;;  %v344_v23 = vand.u32 2147483648, %v332_v17  ;;  %v342_v25 = vand.u32 2147483647, %v332_v17  ;;  %vm338_vm5 = vweird.f32 %v332_v17 }
  0xc7   :  { %4350 = vtanh.f32 %v327_v14  ;;  %v419_v62 = vpop.f32.mrf.mxu3 }
  0xc8   :  { %v345_v28 = vor.u32 1.1754944e-38, %v344_v23  ;;  %vm343_vm7 = vcmp.eq.f32.partialorder %v342_v25, 8.507059e+37 }
  0xcc   :  { %v4349_v19 = vpop.eup %4348 }
  0xcd   :  { %v334_v21 = vmul.f32 %v4349_v19, %v332_v17  ;;  %vm339_vm3 = vweird.f32 %v4349_v19  ;;  %v4351_v30 = vpop.eup %4350 }
  0xce   :  { %vm340_vm6 = vmor %vm338_vm5, %vm339_vm3 }
  0xcf   :  { %v335_v22 = vsub.f32 1.0, %v334_v21 }
  0xd1   :  { %v336_v24 = vmul.f32 %v4349_v19, %v335_v22 }
  0xd3   :  { %v337_v27 = vadd.f32 %v4349_v19, %v336_v24 }
  0xd5   :  { %v341_v29 = vsel %vm340_vm6, %v4349_v19, %v337_v27 }
  0xd6   :  { %v346_v31 = vsel %vm343_vm7, %v345_v28, %v341_v29 }
  0xd7   :  { %v348_v32 = vsel %vm5150_vm4, %v4351_v30, %v346_v31 }
  0xd8   :  { %351 = vrot.lane.b32.xlu0 %v348_v32, %s4928_s24  ;;  %v349_v35 = vmul.f32 0.0, %v348_v32 }
 0x14a   :  { %v352_v33 = vpop.permute.xlu0 %351 }
 0x14b   :  { %v354_v34 = vmul.f32 %v352_v33, %v348_v32 }
 0x14d   :  { %356 = vrot.lane.b32.xlu0 %v354_v34, %s4929_s23 }
 0x1bf   :  { %v357_v36 = vpop.permute.xlu0 %356 }
 0x1c0   :  { %v359_v37 = vadd.f32 %v357_v36, %v349_v35 }
 0x1c2   :  { %372 = vrot.lane.b32.xlu2 %v359_v37, %s4930_s6  ;;  %4352 = vtanh.f32 %v359_v37 }
 0x1c8   :  { %v4353_v38 = vpop.eup %4352 }
 0x1c9   :  { %362 = vrot.lane.b32.xlu1 %v4353_v38, %s4928_s24 }
 0x21c   :  { %v373_v40 = vpop.permute.xlu2 %372 }
 0x21d   :  { %v5165_v41 = vsel %vm231_vm8, %v373_v40, 0.0  ;;  %v519_v40 = vpop.f32.mrf.mxu1 }
 0x21e   :  { %445 = vrot.lane.b32.xlu0 %v5165_v41, %s4929_s23 }
 0x23b   :  { %v363_v48 = vpop.permute.xlu1 %362 }
 0x23c   :  { %v365_v49 = vmul.f32 %v363_v48, %v348_v32  ;;  %v5256_v32 = vld [vmem:[#allocation5 + $0x8] sm:$0xff] }
 0x23d   :  { %vm234_vm13 = vcmp.gt.f32.partialorder %v5256_v32, 0.0 }
 0x23e   :  { %367 = vrot.lane.b32.xlu1 %v365_v49, %s4929_s23 }
 0x290   :  { %v446_v24 = vpop.permute.xlu0 %445 }
 0x2b0   :  { %v368_v59 = vpop.permute.xlu1 %367 }
 0x2b1   :  { %v5238_v60 = vsel %vm231_vm8, %v368_v59, 0.0 }
 0x2b2   :  { %4201 = vmatmul.msk.f32.vlgmr.msra.gmra.mxu2 %vm280_vm0, %v5238_v60  ;;  %4245 = vmatmul.msk.f32.vlgmr.msra.gmra.mxu1 %vm280_vm0, %v5238_v60 }
 0x2b3   :  { %791 = vmatpush.msra.mxu2 %v5083_v0 }
 0x2b5   :  { %792 = vmatpush.msra.mxu2 %v5085_v1 }
 0x2b7   :  { %793 = vmatpush.msra.mxu2 %v5093_v4 }
 0x2b9   :  { %794 = vmatpush.msra.mxu2 %v5095_v5 }
 0x335   :  { %v396_v61 = vpop.f32.mrf.mxu2 }
 0x336   :  { %v397_v63 = vadd.f32 %v5147_v10, %v396_v61 }
 0x338   :  { %v422_v2 = vadd.f32 %v419_v62, %v397_v63 }
 0x33a   :  { %v4203_v3 = vmul.f32 -1.442695, %v422_v2 }
 0x33c   :  { %4354 = vpow2.f32 %v4203_v3 }
 0x342   :  { %v4355_v6 = vpop.eup %4354 }
 0x343   :  { %v427_v7 = vadd.f32 1.0, %v4355_v6 }
 0x345   :  { %4356 = vrcp.f32 %v427_v7  ;;  %v439_v13 = vand.u32 2147483648, %v427_v7  ;;  %v437_v15 = vand.u32 2147483647, %v427_v7  ;;  %vm433_vm10 = vweird.f32 %v427_v7 }
 0x346   :  { %4358 = vtanh.f32 %v422_v2 }
 0x347   :  { %v440_v17 = vor.u32 1.1754944e-38, %v439_v13  ;;  %vm438_vm12 = vcmp.eq.f32.partialorder %v437_v15, 8.507059e+37  ;;  %v619_v15 = vpop.f32.mrf.mxu3 }
 0x34b   :  { %v4357_v8 = vpop.eup %4356 }
 0x34c   :  { %v429_v11 = vmul.f32 %v4357_v8, %v427_v7  ;;  %vm434_vm9 = vweird.f32 %v4357_v8  ;;  %v4359_v19 = vpop.eup %4358  ;;  %v5282_v7 = vld [vmem:[#allocation5 + $0x10] sm:$0xff] }
 0x34d   :  { %vm435_vm11 = vmor %vm433_vm10, %vm434_vm9  ;;  %vm237_vm3 = vcmp.gt.f32.partialorder %v5282_v7, 0.0 }
 0x34e   :  { %v430_v12 = vsub.f32 1.0, %v429_v11 }
 0x350   :  { %v431_v14 = vmul.f32 %v4357_v8, %v430_v12 }
 0x352   :  { %v432_v16 = vadd.f32 %v4357_v8, %v431_v14 }
 0x354   :  { %v436_v18 = vsel %vm435_vm11, %v4357_v8, %v432_v16 }
 0x355   :  { %v441_v20 = vsel %vm438_vm12, %v440_v17, %v436_v18 }
 0x356   :  { %v443_v21 = vsel %vm5150_vm4, %v4359_v19, %v441_v20 }
 0x357   :  { %450 = vrot.lane.b32.xlu2 %v443_v21, %s4928_s24  ;;  %v448_v25 = vmul.f32 %v446_v24, %v443_v21 }
 0x3b1   :  { %v451_v22 = vpop.permute.xlu2 %450 }
 0x3b2   :  { %v453_v23 = vmul.f32 %v451_v22, %v443_v21 }
 0x3b4   :  { %455 = vrot.lane.b32.xlu1 %v453_v23, %s4929_s23 }
 0x426   :  { %v456_v27 = vpop.permute.xlu1 %455 }
 0x427   :  { %v458_v28 = vadd.f32 %v456_v27, %v448_v25 }
 0x429   :  { %4360 = vtanh.f32 %v458_v28  ;;  %471 = vrot.lane.b32.xlu1 %v458_v28, %s4930_s6 }
 0x42f   :  { %v4361_v29 = vpop.eup %4360 }
 0x430   :  { %461 = vrot.lane.b32.xlu2 %v4361_v29, %s4928_s24 }
 0x48a   :  { %v462_v30 = vpop.permute.xlu2 %461 }
 0x48b   :  { %v464_v31 = vmul.f32 %v462_v30, %v443_v21 }
 0x48d   :  { %466 = vrot.lane.b32.xlu0 %v464_v31, %s4929_s23 }
 0x49b   :  { %v472_v33 = vpop.permute.xlu1 %471 }
 0x49c   :  { %v474_v34 = vsel %vm234_vm13, %v472_v33, %v5165_v41 }
 0x49d   :  { %545 = vrot.lane.b32.xlu0 %v474_v34, %s4929_s23 }
 0x4ff   :  { %v5263_v35 = vpop.permute.xlu0 %466 }
 0x500   :  { %v469_v36 = vsel %vm234_vm13, %v5263_v35, %v5238_v60 }
 0x501   :  { %4204 = vmatmul.msk.f32.vlgmr.msrb.gmra.mxu0 %vm280_vm0, %v469_v36 }
 0x502   :  { %891 = vmatpush.msrb.mxu0 %v5083_v0 }
 0x504   :  { %892 = vmatpush.msrb.mxu0 %v5085_v1 }
 0x506   :  { %893 = vmatpush.msrb.mxu0 %v5093_v4 }
 0x508   :  { %894 = vmatpush.msrb.mxu0 %v5095_v5 }
 0x50f   :  { %v546_v59 = vpop.permute.xlu0 %545 }
 0x57e   :  { %v496_v37 = vpop.f32.mrf.mxu0 }
 0x57f   :  { %v497_v38 = vadd.f32 %v5147_v10, %v496_v37 }
 0x581   :  { %v522_v41 = vadd.f32 %v519_v40, %v497_v38 }
 0x583   :  { %v4206_v42 = vmul.f32 -1.442695, %v522_v41 }
 0x585   :  { %4362 = vpow2.f32 %v4206_v42  ;;  %v5306_v42 = vld [vmem:[#allocation5 + $0x18] sm:$0xff] }
 0x586   :  { %vm240_vm10 = vcmp.gt.f32.partialorder %v5306_v42, 0.0 }
 0x58b   :  { %v4363_v43 = vpop.eup %4362 }
 0x58c   :  { %v527_v44 = vadd.f32 1.0, %v4363_v43 }
 0x58e   :  { %4364 = vrcp.f32 %v527_v44  ;;  %v539_v48 = vand.u32 2147483648, %v527_v44  ;;  %v537_v50 = vand.u32 2147483647, %v527_v44  ;;  %vm533_vm15 = vweird.f32 %v527_v44 }
 0x58f   :  { %4366 = vtanh.f32 %v522_v41 }
 0x590   :  { %v540_v52 = vor.u32 1.1754944e-38, %v539_v48  ;;  %vm538_vm2 = vcmp.eq.f32.partialorder %v537_v50, 8.507059e+37 }
 0x594   :  { %v4365_v45 = vpop.eup %4364 }
 0x595   :  { %v529_v46 = vmul.f32 %v4365_v45, %v527_v44  ;;  %vm534_vm14 = vweird.f32 %v4365_v45  ;;  %v4367_v54 = vpop.eup %4366 }
 0x596   :  { %vm535_vm1 = vmor %vm533_vm15, %vm534_vm14 }
 0x597   :  { %v530_v47 = vsub.f32 1.0, %v529_v46 }
 0x599   :  { %v531_v49 = vmul.f32 %v4365_v45, %v530_v47 }
 0x59b   :  { %v532_v51 = vadd.f32 %v4365_v45, %v531_v49  ;;  %v719_v49 = vpop.f32.mrf.mxu1 }
 0x59d   :  { %v536_v53 = vsel %vm535_vm1, %v4365_v45, %v532_v51 }
 0x59e   :  { %v541_v55 = vsel %vm538_vm2, %v540_v52, %v536_v53 }
 0x59f   :  { %v543_v56 = vsel %vm5150_vm4, %v4367_v54, %v541_v55 }
 0x5a0   :  { %550 = vrot.lane.b32.xlu2 %v543_v56, %s4928_s24  ;;  %v548_v61 = vmul.f32 %v546_v59, %v543_v56 }
 0x5fa   :  { %v551_v57 = vpop.permute.xlu2 %550 }
 0x5fb   :  { %v553_v58 = vmul.f32 %v551_v57, %v543_v56 }
 0x5fd   :  { %555 = vrot.lane.b32.xlu1 %v553_v58, %s4929_s23 }
 0x66f   :  { %v556_v62 = vpop.permute.xlu1 %555 }
 0x670   :  { %v558_v63 = vadd.f32 %v556_v62, %v548_v61 }
 0x672   :  { %4368 = vtanh.f32 %v558_v63  ;;  %571 = vrot.lane.b32.xlu1 %v558_v63, %s4930_s6 }
 0x678   :  { %v4369_v2 = vpop.eup %4368 }
 0x679   :  { %561 = vrot.lane.b32.xlu2 %v4369_v2, %s4928_s24 }
 0x6d3   :  { %v562_v3 = vpop.permute.xlu2 %561 }
 0x6d4   :  { %v564_v6 = vmul.f32 %v562_v3, %v543_v56 }
 0x6d6   :  { %566 = vrot.lane.b32.xlu0 %v564_v6, %s4929_s23 }
 0x6e4   :  { %v572_v8 = vpop.permute.xlu1 %571 }
 0x6e5   :  { %v574_v11 = vsel %vm237_vm3, %v572_v8, %v474_v34 }
 0x6e6   :  { %645 = vrot.lane.b32.xlu0 %v574_v11, %s4929_s23 }
 0x748   :  { %v5288_v12 = vpop.permute.xlu0 %566 }
 0x749   :  { %v569_v13 = vsel %vm237_vm3, %v5288_v12, %v469_v36 }
 0x74a   :  { %4207 = vmatmul.msk.f32.vlgmr.msrb.gmra.mxu2 %vm280_vm0, %v569_v13 }
 0x74b   :  { %991 = vmatpush.msrb.mxu2 %v5083_v0 }
 0x74d   :  { %992 = vmatpush.msrb.mxu2 %v5085_v1 }
 0x74f   :  { %993 = vmatpush.msrb.mxu2 %v5093_v4 }
 0x751   :  { %994 = vmatpush.msrb.mxu2 %v5095_v5 }
 0x758   :  { %v646_v33 = vpop.permute.xlu0 %645 }
 0x7cd   :  { %v596_v14 = vpop.f32.mrf.mxu2 }
 0x7ce   :  { %v597_v16 = vadd.f32 %v5147_v10, %v596_v14 }
 0x7d0   :  { %v622_v17 = vadd.f32 %v619_v15, %v597_v16 }
 0x7d2   :  { %v4209_v18 = vmul.f32 -1.442695, %v622_v17 }
 0x7d4   :  { %4370 = vpow2.f32 %v4209_v18 }
 0x7da   :  { %v4371_v19 = vpop.eup %4370 }
 0x7db   :  { %v627_v20 = vadd.f32 1.0, %v4371_v19 }
 0x7dd   :  { %4372 = vrcp.f32 %v627_v20  ;;  %v639_v0 = vand.u32 2147483648, %v627_v20  ;;  %v637_v4 = vand.u32 2147483647, %v627_v20  ;;  %vm633_vm6 = vweird.f32 %v627_v20 }
 0x7de   :  { %4374 = vtanh.f32 %v622_v17 }
 0x7df   :  { %v640_v5 = vor.u32 1.1754944e-38, %v639_v0  ;;  %vm638_vm9 = vcmp.eq.f32.partialorder %v637_v4, 8.507059e+37  ;;  %v819_v4 = vpop.f32.mrf.mxu3 }
 0x7e3   :  { %v4373_v21 = vpop.eup %4372 }
 0x7e4   :  { %v629_v22 = vmul.f32 %v4373_v21, %v627_v20  ;;  %vm634_vm5 = vweird.f32 %v4373_v21  ;;  %v4375_v27 = vpop.eup %4374  ;;  %v5326_v20 = vld [vmem:[#allocation5 + $0x20] sm:$0xff] }
 0x7e5   :  { %vm635_vm7 = vmor %vm633_vm6, %vm634_vm5  ;;  %vm243_vm1 = vcmp.gt.f32.partialorder %v5326_v20, 0.0 }
 0x7e6   :  { %v630_v23 = vsub.f32 1.0, %v629_v22 }
 0x7e8   :  { %v631_v1 = vmul.f32 %v4373_v21, %v630_v23 }
 0x7ea   :  { %v632_v24 = vadd.f32 %v4373_v21, %v631_v1 }
 0x7ec   :  { %v636_v25 = vsel %vm635_vm7, %v4373_v21, %v632_v24 }
 0x7ed   :  { %v641_v28 = vsel %vm638_vm9, %v640_v5, %v636_v25 }
 0x7ee   :  { %v643_v29 = vsel %vm5150_vm4, %v4375_v27, %v641_v28 }
 0x7ef   :  { %650 = vrot.lane.b32.xlu2 %v643_v29, %s4928_s24  ;;  %v648_v34 = vmul.f32 %v646_v33, %v643_v29 }
 0x849   :  { %v651_v30 = vpop.permute.xlu2 %650 }
 0x84a   :  { %v653_v31 = vmul.f32 %v651_v30, %v643_v29 }
 0x84c   :  { %655 = vrot.lane.b32.xlu1 %v653_v31, %s4929_s23 }
 0x8be   :  { %v656_v36 = vpop.permute.xlu1 %655 }
 0x8bf   :  { %v658_v37 = vadd.f32 %v656_v36, %v648_v34 }
 0x8c1   :  { %4376 = vtanh.f32 %v658_v37  ;;  %671 = vrot.lane.b32.xlu1 %v658_v37, %s4930_s6 }
 0x8c7   :  { %v4377_v38 = vpop.eup %4376 }
 0x8c8   :  { %661 = vrot.lane.b32.xlu2 %v4377_v38, %s4928_s24 }
 0x922   :  { %v662_v40 = vpop.permute.xlu2 %661 }
 0x923   :  { %v664_v41 = vmul.f32 %v662_v40, %v643_v29 }
 0x925   :  { %666 = vrot.lane.b32.xlu0 %v664_v41, %s4929_s23 }
 0x933   :  { %v672_v43 = vpop.permute.xlu1 %671 }
 0x934   :  { %v674_v44 = vsel %vm240_vm10, %v672_v43, %v574_v11 }
 0x935   :  { %745 = vrot.lane.b32.xlu0 %v674_v44, %s4929_s23 }
 0x997   :  { %v5312_v45 = vpop.permute.xlu0 %666 }
 0x998   :  { %v669_v46 = vsel %vm240_vm10, %v5312_v45, %v569_v13 }
 0x999   :  { %4210 = vmatmul.msk.f32.vlgmr.msra.gmra.mxu0 %vm280_vm0, %v669_v46 }
 0x9a7   :  { %v746_v13 = vpop.permute.xlu0 %745 }
 0xa16   :  { %v696_v47 = vpop.f32.mrf.mxu0 }
 0xa17   :  { %v697_v48 = vadd.f32 %v5147_v10, %v696_v47 }
 0xa19   :  { %v722_v50 = vadd.f32 %v719_v49, %v697_v48 }
 0xa1b   :  { %v4212_v51 = vmul.f32 -1.442695, %v722_v50 }
 0xa1d   :  { %4378 = vpow2.f32 %v4212_v51 }
 0xa23   :  { %v4379_v52 = vpop.eup %4378 }
 0xa24   :  { %v727_v53 = vadd.f32 1.0, %v4379_v52 }
 0xa26   :  { %4380 = vrcp.f32 %v727_v53  ;;  %v739_v57 = vand.u32 2147483648, %v727_v53  ;;  %v737_v59 = vand.u32 2147483647, %v727_v53  ;;  %vm733_vm12 = vweird.f32 %v727_v53 }
 0xa27   :  { %4382 = vtanh.f32 %v722_v50 }
 0xa28   :  { %v740_v62 = vor.u32 1.1754944e-38, %v739_v57  ;;  %vm738_vm15 = vcmp.eq.f32.partialorder %v737_v59, 8.507059e+37  ;;  %v5357_v59 = vld [vmem:[#allocation11 + $0x10] sm:$0xff] }
 0xa2c   :  { %v4381_v54 = vpop.eup %4380 }
 0xa2d   :  { %v729_v55 = vmul.f32 %v4381_v54, %v727_v53  ;;  %vm734_vm11 = vweird.f32 %v4381_v54  ;;  %v4383_v2 = vpop.eup %4382 }
 0xa2e   :  { %vm735_vm14 = vmor %vm733_vm12, %vm734_vm11 }
 0xa2f   :  { %v730_v56 = vsub.f32 1.0, %v729_v55  ;;  %v5346_v55 = vld [vmem:[#allocation5 + $0x28] sm:$0xff] }
 0xa30   :  { %vm246_vm9 = vcmp.gt.f32.partialorder %v5346_v55, 0.0 }
 0xa31   :  { %v731_v58 = vmul.f32 %v4381_v54, %v730_v56 }
 0xa33   :  { %v732_v61 = vadd.f32 %v4381_v54, %v731_v58  ;;  %v5355_v58 = vld [vmem:[#allocation11 + $0x18] sm:$0xff] }
 0xa34   :  { %1094 = vmatpush.msra.mxu0 %v5355_v58 }
 0xa35   :  { %v736_v63 = vsel %vm735_vm14, %v4381_v54, %v732_v61  ;;  %v5361_v61 = vld [vmem:[#allocation11 + $0x8] sm:$0xff] }
 0xa36   :  { %v741_v3 = vsel %vm738_vm15, %v740_v62, %v736_v63  ;;  %1095 = vmatpush.msra.mxu0 %v5357_v59  ;;  %v5365_v62 = vld [vmem:[#allocation11] sm:$0xff] }
 0xa37   :  { %v743_v6 = vsel %vm5150_vm4, %v4383_v2, %v741_v3  ;;  %v919_v3 = vpop.f32.mrf.mxu1 }
 0xa38   :  { %750 = vrot.lane.b32.xlu2 %v743_v6, %s4928_s24  ;;  %v748_v14 = vmul.f32 %v746_v13, %v743_v6  ;;  %1096 = vmatpush.msra.mxu0 %v5361_v61 }
 0xa3a   :  { %1097 = vmatpush.msra.mxu0 %v5365_v62 }
 0xa92   :  { %v751_v8 = vpop.permute.xlu2 %750 }
 0xa93   :  { %v753_v11 = vmul.f32 %v751_v8, %v743_v6 }
 0xa95   :  { %755 = vrot.lane.b32.xlu1 %v753_v11, %s4929_s23 }
 0xb07   :  { %v756_v15 = vpop.permute.xlu1 %755 }
 0xb08   :  { %v758_v16 = vadd.f32 %v756_v15, %v748_v14  ;;  %v5393_v14 = vld [vmem:[%s6464_s7] ss:$0 sm:$0xff] }
 0xb0a   :  { %4384 = vtanh.f32 %v758_v16  ;;  %771 = vrot.lane.b32.xlu1 %v758_v16, %s4930_s6 }
 0xb10   :  { %v4385_v17 = vpop.eup %4384 }
 0xb11   :  { %761 = vrot.lane.b32.xlu2 %v4385_v17, %s4928_s24  ;;  %v1119_v17 = vpop.f32.mrf.mxu1 }
 0xb6b   :  { %v762_v18 = vpop.permute.xlu2 %761 }
 0xb6c   :  { %v764_v19 = vmul.f32 %v762_v18, %v743_v6 }
 0xb6e   :  { %766 = vrot.lane.b32.xlu0 %v764_v19, %s4929_s23 }
 0xb7c   :  { %v772_v21 = vpop.permute.xlu1 %771 }
 0xb7d   :  { %v774_v22 = vsel %vm243_vm1, %v772_v21, %v674_v44 }
 0xb7e   :  { %845 = vrot.lane.b32.xlu0 %v774_v22, %s4929_s23 }
 0xbe0   :  { %v5332_v23 = vpop.permute.xlu0 %766 }
 0xbe1   :  { %v769_v0 = vsel %vm243_vm1, %v5332_v23, %v669_v46 }
 0xbe2   :  { %4213 = vmatmul.msk.f32.vlgmr.msra.gmra.mxu2 %vm280_vm0, %v769_v0 }
 0xbe3   :  { %1186 = vmatpush.msra.mxu2 %v5355_v58 }
 0xbe5   :  { %1187 = vmatpush.msra.mxu2 %v5357_v59 }
 0xbe7   :  { %1188 = vmatpush.msra.mxu2 %v5361_v61 }
 0xbe9   :  { %1189 = vmatpush.msra.mxu2 %v5365_v62 }
 0xbf0   :  { %v846_v48 = vpop.permute.xlu0 %845 }
 0xc65   :  { %v796_v1 = vpop.f32.mrf.mxu2 }
 0xc66   :  { %v797_v24 = vadd.f32 %v5147_v10, %v796_v1 }
 0xc68   :  { %v822_v5 = vadd.f32 %v819_v4, %v797_v24 }
 0xc6a   :  { %v4215_v25 = vmul.f32 -1.442695, %v822_v5 }
 0xc6c   :  { %4386 = vpow2.f32 %v4215_v25 }
 0xc72   :  { %v4387_v27 = vpop.eup %4386 }
 0xc73   :  { %v827_v28 = vadd.f32 1.0, %v4387_v27 }
 0xc75   :  { %4388 = vrcp.f32 %v827_v28  ;;  %v839_v33 = vand.u32 2147483648, %v827_v28  ;;  %v837_v36 = vand.u32 2147483647, %v827_v28  ;;  %vm833_vm5 = vweird.f32 %v827_v28 }
 0xc76   :  { %4390 = vtanh.f32 %v822_v5 }
 0xc77   :  { %v840_v38 = vor.u32 1.1754944e-38, %v839_v33  ;;  %vm838_vm7 = vcmp.eq.f32.partialorder %v837_v36, 8.507059e+37 }
 0xc7b   :  { %v4389_v29 = vpop.eup %4388 }
 0xc7c   :  { %v829_v30 = vmul.f32 %v4389_v29, %v827_v28  ;;  %vm834_vm2 = vweird.f32 %v4389_v29  ;;  %v4391_v41 = vpop.eup %4390 }
 0xc7d   :  { %vm835_vm6 = vmor %vm833_vm5, %vm834_vm2 }
 0xc7e   :  { %v830_v31 = vsub.f32 1.0, %v829_v30 }
 0xc80   :  { %v831_v34 = vmul.f32 %v4389_v29, %v830_v31 }
 0xc82   :  { %v832_v37 = vadd.f32 %v4389_v29, %v831_v34 }
 0xc84   :  { %v836_v40 = vsel %vm835_vm6, %v4389_v29, %v832_v37 }
 0xc85   :  { %v841_v43 = vsel %vm838_vm7, %v840_v38, %v836_v40 }
 0xc86   :  { %v843_v44 = vsel %vm5150_vm4, %v4391_v41, %v841_v43 }
 0xc87   :  { %850 = vrot.lane.b32.xlu2 %v843_v44, %s4928_s24  ;;  %v848_v49 = vmul.f32 %v846_v48, %v843_v44 }
 0xce1   :  { %v851_v46 = vpop.permute.xlu2 %850 }
 0xce2   :  { %v853_v47 = vmul.f32 %v851_v46, %v843_v44 }
 0xce4   :  { %855 = vrot.lane.b32.xlu1 %v853_v47, %s4929_s23 }
 0xd56   :  { %v856_v50 = vpop.permute.xlu1 %855 }
 0xd57   :  { %v858_v51 = vadd.f32 %v856_v50, %v848_v49 }
 0xd59   :  { %4392 = vtanh.f32 %v858_v51  ;;  %871 = vrot.lane.b32.xlu1 %v858_v51, %s4930_s6 }
 0xd5f   :  { %v4393_v52 = vpop.eup %4392 }
 0xd60   :  { %861 = vrot.lane.b32.xlu2 %v4393_v52, %s4928_s24 }
 0xdba   :  { %v862_v53 = vpop.permute.xlu2 %861 }
 0xdbb   :  { %v864_v54 = vmul.f32 %v862_v53, %v843_v44 }
 0xdbd   :  { %866 = vrot.lane.b32.xlu0 %v864_v54, %s4929_s23 }
 0xdcb   :  { %v872_v56 = vpop.permute.xlu1 %871 }
 0xdcc   :  { %v5351_v57 = vsel %vm246_vm9, %v872_v56, %v774_v22 }
 0xdcd   :  { %945 = vrot.lane.b32.xlu1 %v5351_v57, %s4929_s23 }
 0xe2f   :  { %v5371_v63 = vpop.permute.xlu0 %866 }
 0xe30   :  { %v5376_v2 = vsel %vm246_vm9, %v5371_v63, %v769_v0 }
 0xe31   :  { %4216 = vmatmul.msk.f32.vlgmr.msrb.gmra.mxu0 %vm280_vm0, %v5376_v2 }
 0xe32   :  { %1283 = vmatpush.msrb.mxu0 %v5355_v58 }
 0xe34   :  { %1284 = vmatpush.msrb.mxu0 %v5357_v59 }
 0xe36   :  { %1285 = vmatpush.msrb.mxu0 %v5361_v61 }
 0xe38   :  { %1286 = vmatpush.msrb.mxu0 %v5365_v62 }
 0xe39   :  { %1098 = vmatmul.f32.vlgmr.msra.gmra.mxu0 %v4927_v9 }
 0xe3a   :  { %1477 = vmatpush.msra.mxu0 %v5355_v58 }
 0xe3c   :  { %1478 = vmatpush.msra.mxu0 %v5357_v59 }
 0xe3e   :  { %1479 = vmatpush.msra.mxu0 %v5361_v61 }
 0xe3f   :  { %v946_v56 = vpop.permute.xlu1 %945 }
 0xe40   :  { %1480 = vmatpush.msra.mxu0 %v5365_v62 }
 0xeae   :  { %v896_v6 = vpop.f32.mrf.mxu0 }
 0xeaf   :  { %v897_v8 = vadd.f32 %v5147_v10, %v896_v6 }
 0xeb1   :  { %v922_v11 = vadd.f32 %v919_v3, %v897_v8 }
 0xeb3   :  { %v4218_v13 = vmul.f32 -1.442695, %v922_v11 }
 0xeb5   :  { %4394 = vpow2.f32 %v4218_v13 }
 0xeb6   :  { %v1099_v15 = vpop.f32.mrf.mxu0 }
 0xeb7   :  { %v1100_v16 = vadd.f32 %v5393_v14, %v1099_v15 }
 0xeb9   :  { %v1122_v18 = vadd.f32 %v1119_v17, %v1100_v16 }
 0xebb   :  { %v4395_v19 = vpop.eup %4394  ;;  %v4223_v21 = vmul.f32 -1.442695, %v1122_v18 }
 0xebc   :  { %v927_v22 = vadd.f32 1.0, %v4395_v19 }
 0xebd   :  { %4396 = vpow2.f32 %v4223_v21 }
 0xebe   :  { %4398 = vrcp.f32 %v927_v22  ;;  %v939_v5 = vand.u32 2147483648, %v927_v22  ;;  %v937_v27 = vand.u32 2147483647, %v927_v22  ;;  %vm933_vm12 = vweird.f32 %v927_v22 }
 0xec0   :  { %v940_v30 = vor.u32 1.1754944e-38, %v939_v5  ;;  %vm938_vm15 = vcmp.eq.f32.partialorder %v937_v27, 8.507059e+37 }
 0xec3   :  { %v4397_v0 = vpop.eup %4396 }
 0xec4   :  { %v4399_v10 = vpop.eup %4398  ;;  %v1127_v1 = vadd.f32 1.0, %v4397_v0  ;;  %v5412_v0 = vld [vmem:[#allocation5 + $0x38] sm:$0xff] }
 0xec5   :  { %v929_v4 = vmul.f32 %v4399_v10, %v927_v22  ;;  %vm934_vm11 = vweird.f32 %v4399_v10 }
 0xec6   :  { %4400 = vrcp.f32 %v1127_v1  ;;  %vm935_vm14 = vmor %vm933_vm12, %vm934_vm11  ;;  %v1139_v40 = vand.u32 2147483648, %v1127_v1  ;;  %v1137_v43 = vand.u32 2147483647, %v1127_v1  ;;  %vm1133_vm5 = vweird.f32 %v1127_v1 }
 0xec7   :  { %v930_v24 = vsub.f32 1.0, %v929_v4  ;;  %4402 = vtanh.f32 %v922_v11  ;;  %vm252_vm11 = vcmp.gt.f32.partialorder %v5412_v0, 0.0  ;;  %v5421_v4 = vld [vmem:[#allocation5 + $0x30] sm:$0xff] }
 0xec8   :  { %4404 = vtanh.f32 %v1122_v18  ;;  %v1140_v46 = vor.u32 1.1754944e-38, %v1139_v40  ;;  %vm1138_vm7 = vcmp.eq.f32.partialorder %v1137_v43, 8.507059e+37  ;;  %vm249_vm12 = vcmp.gt.f32.partialorder %v5421_v4, 0.0 }
 0xec9   :  { %v931_v25 = vmul.f32 %v4399_v10, %v930_v24 }
 0xecb   :  { %v932_v28 = vadd.f32 %v4399_v10, %v931_v25 }
 0xecc   :  { %v4401_v29 = vpop.eup %4400 }
 0xecd   :  { %v936_v31 = vsel %vm935_vm14, %v4399_v10, %v932_v28  ;;  %v1129_v33 = vmul.f32 %v4401_v29, %v1127_v1  ;;  %v4403_v34 = vpop.eup %4402  ;;  %vm1134_vm2 = vweird.f32 %v4401_v29  ;;  %v1019_v28 = vpop.f32.mrf.mxu3 }
 0xece   :  { %v941_v36 = vsel %vm938_vm15, %v940_v30, %v936_v31  ;;  %vm1135_vm6 = vmor %vm1133_vm5, %vm1134_vm2  ;;  %v4405_v48 = vpop.eup %4404 }
 0xecf   :  { %v943_v37 = vsel %vm5150_vm4, %v4403_v34, %v941_v36  ;;  %v1130_v38 = vsub.f32 1.0, %v1129_v33 }
 0xed0   :  { %950 = vrot.lane.b32.xlu2 %v943_v37, %s4928_s24  ;;  %v948_v3 = vmul.f32 %v946_v56, %v943_v37 }
 0xed1   :  { %v1131_v41 = vmul.f32 %v4401_v29, %v1130_v38 }
 0xed3   :  { %v1132_v44 = vadd.f32 %v4401_v29, %v1131_v41 }
 0xed5   :  { %v1136_v47 = vsel %vm1135_vm6, %v4401_v29, %v1132_v44  ;;  %v4602_v29 = vld [vmem:[%s6461_s4] ss:$0 sm:$0xff]  ;;  %v1211_v34 = vpop.f32.mrf.mxu3 }
 0xed6   :  { %v1141_v49 = vsel %vm1138_vm7, %v1140_v46, %v1136_v47 }
 0xed7   :  { %v1143_v50 = vsel %vm5150_vm4, %v4405_v48, %v1141_v49 }
 0xed8   :  { %1146 = vrot.lane.b32.xlu0 %v1143_v50, %s4928_s24  ;;  %v1144_v13 = vmul.f32 0.0, %v1143_v50 }
 0xf2a   :  { %v951_v51 = vpop.permute.xlu2 %950 }
 0xf2b   :  { %v953_v52 = vmul.f32 %v951_v51, %v943_v37 }
 0xf2d   :  { %955 = vrot.lane.b32.xlu2 %v953_v52, %s4929_s23 }
 0xf4a   :  { %v1147_v53 = vpop.permute.xlu0 %1146 }
 0xf4b   :  { %v1149_v54 = vmul.f32 %v1147_v53, %v1143_v50 }
 0xf4d   :  { %1151 = vrot.lane.b32.xlu0 %v1149_v54, %s4929_s23 }
 0xf87   :  { %v956_v6 = vpop.permute.xlu2 %955 }
 0xf88   :  { %v5404_v8 = vadd.f32 %v956_v6, %v948_v3 }
 0xf8a   :  { %4406 = vtanh.f32 %v5404_v8 }
 0xf90   :  { %v4407_v11 = vpop.eup %4406 }
 0xf91   :  { %961 = vrot.lane.b32.xlu1 %v4407_v11, %s4928_s24 }
 0xfbf   :  { %v1152_v15 = vpop.permute.xlu0 %1151 }
 0xfc0   :  { %v1154_v16 = vadd.f32 %v1152_v15, %v1144_v13 }
 0xfc2   :  { %4408 = vtanh.f32 %v1154_v16 }
 0xfc8   :  { %v4409_v17 = vpop.eup %4408 }
 0xfc9   :  { %1157 = vrot.lane.b32.xlu2 %v4409_v17, %s4928_s24 }
 0xfd1   :  { %1167 = vrot.lane.b32.xlu2 %v1154_v16, %s4930_s6 }
0x1003   :  { %v962_v18 = vpop.permute.xlu1 %961 }
0x1004   :  { %v964_v19 = vmul.f32 %v962_v18, %v943_v37 }
0x1006   :  { %966 = vrot.lane.b32.xlu0 %v964_v19, %s4929_s23 }
0x1023   :  { %v1158_v21 = vpop.permute.xlu2 %1157 }
0x1024   :  { %v1160_v22 = vmul.f32 %v1158_v21, %v1143_v50 }
0x1026   :  { %1162 = vrot.lane.b32.xlu1 %v1160_v22, %s4929_s23 }
0x102b   :  { %v1168_v10 = vpop.permute.xlu2 %1167 }
0x102c   :  { %v5417_v1 = vsel %vm252_vm11, %v1168_v10, 0.0 }
0x102e   :  { %1237 = vrot.lane.b32.xlu1 %v5417_v1, %s4929_s23 }
0x1078   :  { %v5424_v24 = vpop.permute.xlu0 %966 }
0x1079   :  { %v969_v5 = vsel %vm249_vm12, %v5424_v24, %v5376_v2 }
0x107a   :  { %4219 = vmatmul.msk.f32.vlgmr.msrb.gmra.mxu2 %vm280_vm0, %v969_v5 }
0x107b   :  { %1380 = vmatpush.msrb.mxu2 %v5355_v58 }
0x107d   :  { %1381 = vmatpush.msrb.mxu2 %v5357_v59 }
0x107f   :  { %1382 = vmatpush.msrb.mxu2 %v5361_v61 }
0x1081   :  { %1383 = vmatpush.msrb.mxu2 %v5365_v62 }
0x1098   :  { %v1163_v25 = vpop.permute.xlu1 %1162 }
0x1099   :  { %v5437_v27 = vsel %vm252_vm11, %v1163_v25, 0.0 }
0x109a   :  { %4224 = vmatmul.msk.f32.vlgmr.msra.gmra.mxu2 %vm280_vm0, %v5437_v27 }
0x109b   :  { %1574 = vmatpush.msra.mxu2 %v5355_v58 }
0x109d   :  { %1575 = vmatpush.msra.mxu2 %v5357_v59 }
0x109f   :  { %1576 = vmatpush.msra.mxu2 %v5361_v61 }
0x10a0   :  { %v1238_v11 = vpop.permute.xlu1 %1237 }
0x10a1   :  { %1577 = vmatpush.msra.mxu2 %v5365_v62 }
0x10fd   :  { %v996_v2 = vpop.f32.mrf.mxu2 }
0x10fe   :  { %v997_v30 = vadd.f32 %v4602_v29, %v996_v2  ;;  %v1308_v2 = vpop.f32.mrf.mxu1 }
0x1100   :  { %v5448_v31 = vadd.f32 %v1019_v28, %v997_v30 }
0x111d   :  { %v1191_v33 = vpop.f32.mrf.mxu2 }
0x111e   :  { %v1192_v36 = vadd.f32 %v5393_v14, %v1191_v33 }
0x1120   :  { %v1214_v37 = vadd.f32 %v1211_v34, %v1192_v36 }
0x1122   :  { %v4226_v38 = vmul.f32 -1.442695, %v1214_v37 }
0x1124   :  { %4410 = vpow2.f32 %v4226_v38 }
0x112a   :  { %v4411_v40 = vpop.eup %4410 }
0x112b   :  { %v1219_v41 = vadd.f32 1.0, %v4411_v40 }
0x112d   :  { %4412 = vrcp.f32 %v1219_v41  ;;  %v1231_v47 = vand.u32 2147483648, %v1219_v41  ;;  %v1229_v49 = vand.u32 2147483647, %v1219_v41  ;;  %vm1225_vm15 = vweird.f32 %v1219_v41 }
0x112e   :  { %4414 = vtanh.f32 %v1214_v37 }
0x112f   :  { %v1232_v51 = vor.u32 1.1754944e-38, %v1231_v47  ;;  %vm1230_vm5 = vcmp.eq.f32.partialorder %v1229_v49, 8.507059e+37 }
0x1133   :  { %v4413_v43 = vpop.eup %4412 }
0x1134   :  { %v1221_v44 = vmul.f32 %v4413_v43, %v1219_v41  ;;  %vm1226_vm14 = vweird.f32 %v4413_v43  ;;  %v4415_v53 = vpop.eup %4414 }
0x1135   :  { %vm1227_vm2 = vmor %vm1225_vm15, %vm1226_vm14 }
0x1136   :  { %v1222_v46 = vsub.f32 1.0, %v1221_v44 }
0x1138   :  { %v1223_v48 = vmul.f32 %v4413_v43, %v1222_v46 }
0x113a   :  { %v1224_v50 = vadd.f32 %v4413_v43, %v1223_v48 }
0x113c   :  { %v1228_v52 = vsel %vm1227_vm2, %v4413_v43, %v1224_v50 }
0x113d   :  { %v1233_v54 = vsel %vm1230_vm5, %v1232_v51, %v1228_v52 }
0x113e   :  { %v1235_v56 = vsel %vm5150_vm4, %v4415_v53, %v1233_v54 }
0x113f   :  { %1242 = vrot.lane.b32.xlu0 %v1235_v56, %s4928_s24  ;;  %v1240_v13 = vmul.f32 %v1238_v11, %v1235_v56 }
0x11b1   :  { %v1243_v3 = vpop.permute.xlu0 %1242 }
0x11b2   :  { %v1245_v6 = vmul.f32 %v1243_v3, %v1235_v56 }
0x11b4   :  { %1247 = vrot.lane.b32.xlu2 %v1245_v6, %s4929_s23 }
0x120e   :  { %v1248_v15 = vpop.permute.xlu2 %1247 }
0x120f   :  { %v1250_v16 = vadd.f32 %v1248_v15, %v1240_v13 }
0x1211   :  { %4416 = vtanh.f32 %v1250_v16  ;;  %1263 = vrot.lane.b32.xlu2 %v1250_v16, %s4930_s6 }
0x1217   :  { %v4417_v17 = vpop.eup %4416 }
0x1218   :  { %1253 = vrot.lane.b32.xlu0 %v4417_v17, %s4928_s24 }
0x126b   :  { %v1264_v21 = vpop.permute.xlu2 %1263 }
0x126c   :  { %v1266_v22 = vsel %vm249_vm12, %v1264_v21, %v5417_v1 }
0x128a   :  { %v1254_v18 = vpop.permute.xlu0 %1253 }
0x128b   :  { %v1256_v19 = vmul.f32 %v1254_v18, %v1235_v56 }
0x128d   :  { %1258 = vrot.lane.b32.xlu1 %v1256_v19, %s4929_s23  ;;  %v1405_v19 = vpop.f32.mrf.mxu3 }
0x1295   :  { %1334 = vrot.lane.b32.xlu1 %v1266_v22, %s4929_s23 }
0x12ff   :  { %v5462_v10 = vpop.permute.xlu1 %1258 }
0x1300   :  { %v1261_v5 = vsel %vm249_vm12, %v5462_v10, %v5437_v27 }
0x1301   :  { %4227 = vmatmul.msk.f32.vlgmr.msrb.gmra.mxu0 %vm280_vm0, %v1261_v5 }
0x1302   :  { %1671 = vmatpush.msrb.mxu0 %v5355_v58 }
0x1304   :  { %1672 = vmatpush.msrb.mxu0 %v5357_v59 }
0x1306   :  { %1673 = vmatpush.msrb.mxu0 %v5361_v61 }
0x1307   :  { %v1335_v52 = vpop.permute.xlu1 %1334 }
0x1308   :  { %1674 = vmatpush.msrb.mxu0 %v5365_v62 }
0x137e   :  { %v1288_v1 = vpop.f32.mrf.mxu0 }
0x137f   :  { %v1289_v25 = vadd.f32 %v5393_v14, %v1288_v1 }
0x1381   :  { %v1311_v28 = vadd.f32 %v1308_v2, %v1289_v25 }
0x1383   :  { %v4229_v29 = vmul.f32 -1.442695, %v1311_v28 }
0x1385   :  { %4418 = vpow2.f32 %v4229_v29 }
0x138b   :  { %v4419_v30 = vpop.eup %4418 }
0x138c   :  { %v1316_v33 = vadd.f32 1.0, %v4419_v30 }
0x138e   :  { %4420 = vrcp.f32 %v1316_v33  ;;  %v1328_v38 = vand.u32 2147483648, %v1316_v33  ;;  %v1326_v41 = vand.u32 2147483647, %v1316_v33  ;;  %vm1322_vm7 = vweird.f32 %v1316_v33 }
0x138f   :  { %4422 = vtanh.f32 %v1311_v28 }
0x1390   :  { %v1329_v44 = vor.u32 1.1754944e-38, %v1328_v38  ;;  %vm1327_vm15 = vcmp.eq.f32.partialorder %v1326_v41, 8.507059e+37 }
0x1394   :  { %v4421_v34 = vpop.eup %4420 }
0x1395   :  { %v1318_v36 = vmul.f32 %v4421_v34, %v1316_v33  ;;  %vm1323_vm6 = vweird.f32 %v4421_v34  ;;  %v4423_v47 = vpop.eup %4422 }
0x1396   :  { %vm1324_vm14 = vmor %vm1322_vm7, %vm1323_vm6 }
0x1397   :  { %v1319_v37 = vsub.f32 1.0, %v1318_v36 }
0x1399   :  { %v1320_v40 = vmul.f32 %v4421_v34, %v1319_v37 }
0x139b   :  { %v1321_v43 = vadd.f32 %v4421_v34, %v1320_v40 }
0x139d   :  { %v1325_v46 = vsel %vm1324_vm14, %v4421_v34, %v1321_v43 }
0x139e   :  { %v1330_v48 = vsel %vm1327_vm15, %v1329_v44, %v1325_v46 }
0x139f   :  { %v1332_v49 = vsel %vm5150_vm4, %v4423_v47, %v1330_v48 }
0x13a0   :  { %1339 = vrot.lane.b32.xlu0 %v1332_v49, %s4928_s24  ;;  %v1337_v53 = vmul.f32 %v1335_v52, %v1332_v49 }
0x1412   :  { %v1340_v50 = vpop.permute.xlu0 %1339 }
0x1413   :  { %v1342_v51 = vmul.f32 %v1340_v50, %v1332_v49 }
0x1415   :  { %1344 = vrot.lane.b32.xlu2 %v1342_v51, %s4929_s23 }
0x146f   :  { %v1345_v54 = vpop.permute.xlu2 %1344 }
0x1470   :  { %v1347_v56 = vadd.f32 %v1345_v54, %v1337_v53 }
0x1472   :  { %4424 = vtanh.f32 %v1347_v56  ;;  %1360 = vrot.lane.b32.xlu2 %v1347_v56, %s4930_s6 }
0x1478   :  { %v4425_v3 = vpop.eup %4424 }
0x1479   :  { %1350 = vrot.lane.b32.xlu0 %v4425_v3, %s4928_s24  ;;  %v1502_v3 = vpop.f32.mrf.mxu1 }
0x14cc   :  { %v1361_v13 = vpop.permute.xlu2 %1360 }
0x14cd   :  { %v1363_v15 = vsel %vm246_vm9, %v1361_v13, %v1266_v22 }
0x14eb   :  { %v1351_v6 = vpop.permute.xlu0 %1350 }
0x14ec   :  { %v1353_v11 = vmul.f32 %v1351_v6, %v1332_v49 }
0x14ee   :  { %1355 = vrot.lane.b32.xlu1 %v1353_v11, %s4929_s23 }
0x14f6   :  { %1431 = vrot.lane.b32.xlu1 %v1363_v15, %s4929_s23 }
0x1560   :  { %v5484_v16 = vpop.permute.xlu1 %1355 }
0x1561   :  { %v1358_v17 = vsel %vm246_vm9, %v5484_v16, %v1261_v5 }
0x1562   :  { %4230 = vmatmul.msk.f32.vlgmr.msrb.gmra.mxu2 %vm280_vm0, %v1358_v17 }
0x1563   :  { %1768 = vmatpush.msrb.mxu2 %v5355_v58 }
0x1565   :  { %1769 = vmatpush.msrb.mxu2 %v5357_v59 }
0x1567   :  { %1770 = vmatpush.msrb.mxu2 %v5361_v61 }
0x1568   :  { %v1432_v41 = vpop.permute.xlu1 %1431 }
0x1569   :  { %1771 = vmatpush.msrb.mxu2 %v5365_v62 }
0x15e5   :  { %v1385_v18 = vpop.f32.mrf.mxu2 }
0x15e6   :  { %v1386_v21 = vadd.f32 %v5393_v14, %v1385_v18 }
0x15e8   :  { %v1408_v22 = vadd.f32 %v1405_v19, %v1386_v21 }
0x15ea   :  { %v4232_v1 = vmul.f32 -1.442695, %v1408_v22 }
0x15ec   :  { %4426 = vpow2.f32 %v4232_v1 }
0x15f2   :  { %v4427_v25 = vpop.eup %4426 }
0x15f3   :  { %v1413_v2 = vadd.f32 1.0, %v4427_v25 }
0x15f5   :  { %4428 = vrcp.f32 %v1413_v2  ;;  %v1425_v58 = vand.u32 2147483648, %v1413_v2  ;;  %v1423_v61 = vand.u32 2147483647, %v1413_v2  ;;  %vm1419_vm5 = vweird.f32 %v1413_v2 }
0x15f6   :  { %4430 = vtanh.f32 %v1408_v22 }
0x15f7   :  { %v1426_v62 = vor.u32 1.1754944e-38, %v1425_v58  ;;  %vm1424_vm7 = vcmp.eq.f32.partialorder %v1423_v61, 8.507059e+37 }
0x15fb   :  { %v4429_v5 = vpop.eup %4428 }
0x15fc   :  { %v1415_v28 = vmul.f32 %v4429_v5, %v1413_v2  ;;  %vm1420_vm2 = vweird.f32 %v4429_v5  ;;  %v4431_v34 = vpop.eup %4430 }
0x15fd   :  { %vm1421_vm6 = vmor %vm1419_vm5, %vm1420_vm2 }
0x15fe   :  { %v1416_v29 = vsub.f32 1.0, %v1415_v28 }
0x1600   :  { %v1417_v59 = vmul.f32 %v4429_v5, %v1416_v29 }
0x1602   :  { %v1418_v30 = vadd.f32 %v4429_v5, %v1417_v59 }
0x1604   :  { %v1422_v33 = vsel %vm1421_vm6, %v4429_v5, %v1418_v30 }
0x1605   :  { %v1427_v36 = vsel %vm1424_vm7, %v1426_v62, %v1422_v33 }
0x1606   :  { %v1429_v37 = vsel %vm5150_vm4, %v4431_v34, %v1427_v36 }
0x1607   :  { %1436 = vrot.lane.b32.xlu0 %v1429_v37, %s4928_s24  ;;  %v1434_v43 = vmul.f32 %v1432_v41, %v1429_v37 }
0x1679   :  { %v1437_v38 = vpop.permute.xlu0 %1436 }
0x167a   :  { %v1439_v40 = vmul.f32 %v1437_v38, %v1429_v37 }
0x167c   :  { %1441 = vrot.lane.b32.xlu2 %v1439_v40, %s4929_s23 }
0x16d6   :  { %v1442_v44 = vpop.permute.xlu2 %1441 }
0x16d7   :  { %v1444_v46 = vadd.f32 %v1442_v44, %v1434_v43 }
0x16d9   :  { %4432 = vtanh.f32 %v1444_v46  ;;  %1457 = vrot.lane.b32.xlu2 %v1444_v46, %s4930_s6 }
0x16df   :  { %v4433_v47 = vpop.eup %4432 }
0x16e0   :  { %1447 = vrot.lane.b32.xlu0 %v4433_v47, %s4928_s24  ;;  %v1599_v47 = vpop.f32.mrf.mxu3 }
0x1733   :  { %v1458_v50 = vpop.permute.xlu2 %1457 }
0x1734   :  { %v1460_v51 = vsel %vm243_vm1, %v1458_v50, %v1363_v15 }
0x1752   :  { %v1448_v48 = vpop.permute.xlu0 %1447 }
0x1753   :  { %v1450_v49 = vmul.f32 %v1448_v48, %v1429_v37 }
0x1755   :  { %1452 = vrot.lane.b32.xlu1 %v1450_v49, %s4929_s23 }
0x175d   :  { %1528 = vrot.lane.b32.xlu1 %v1460_v51, %s4929_s23 }
0x17c7   :  { %v5505_v52 = vpop.permute.xlu1 %1452 }
0x17c8   :  { %v1455_v53 = vsel %vm243_vm1, %v5505_v52, %v1358_v17 }
0x17c9   :  { %4233 = vmatmul.msk.f32.vlgmr.msra.gmra.mxu0 %vm280_vm0, %v1455_v53 }
0x17cf   :  { %v1529_v30 = vpop.permute.xlu1 %1528 }
0x1846   :  { %v1482_v54 = vpop.f32.mrf.mxu0 }
0x1847   :  { %v1483_v56 = vadd.f32 %v5393_v14, %v1482_v54 }
0x1849   :  { %v1505_v6 = vadd.f32 %v1502_v3, %v1483_v56 }
0x184b   :  { %v4235_v11 = vmul.f32 -1.442695, %v1505_v6 }
0x184d   :  { %4434 = vpow2.f32 %v4235_v11 }
0x1853   :  { %v4435_v13 = vpop.eup %4434 }
0x1854   :  { %v1510_v18 = vadd.f32 1.0, %v4435_v13 }
0x1856   :  { %4436 = vrcp.f32 %v1510_v18  ;;  %v1522_v22 = vand.u32 2147483648, %v1510_v18  ;;  %v1520_v17 = vand.u32 2147483647, %v1510_v18  ;;  %vm1516_vm15 = vweird.f32 %v1510_v18 }
0x1857   :  { %4438 = vtanh.f32 %v1505_v6 }
0x1858   :  { %v1523_v2 = vor.u32 1.1754944e-38, %v1522_v22  ;;  %vm1521_vm5 = vcmp.eq.f32.partialorder %v1520_v17, 8.507059e+37 }
0x185c   :  { %v4437_v15 = vpop.eup %4436 }
0x185d   :  { %v1512_v19 = vmul.f32 %v4437_v15, %v1510_v18  ;;  %vm1517_vm14 = vweird.f32 %v4437_v15  ;;  %v4439_v28 = vpop.eup %4438 }
0x185e   :  { %vm1518_vm2 = vmor %vm1516_vm15, %vm1517_vm14 }
0x185f   :  { %v1513_v21 = vsub.f32 1.0, %v1512_v19 }
0x1861   :  { %v1514_v1 = vmul.f32 %v4437_v15, %v1513_v21 }
0x1863   :  { %v1515_v25 = vadd.f32 %v4437_v15, %v1514_v1 }
0x1865   :  { %v1519_v5 = vsel %vm1518_vm2, %v4437_v15, %v1515_v25 }
0x1866   :  { %v1524_v29 = vsel %vm1521_vm5, %v1523_v2, %v1519_v5 }
0x1867   :  { %v1526_v58 = vsel %vm5150_vm4, %v4439_v28, %v1524_v29 }
0x1868   :  { %1533 = vrot.lane.b32.xlu0 %v1526_v58, %s4928_s24  ;;  %v1531_v62 = vmul.f32 %v1529_v30, %v1526_v58 }
0x18da   :  { %v1534_v59 = vpop.permute.xlu0 %1533 }
0x18db   :  { %v1536_v61 = vmul.f32 %v1534_v59, %v1526_v58 }
0x18dd   :  { %1538 = vrot.lane.b32.xlu2 %v1536_v61, %s4929_s23 }
0x1937   :  { %v1539_v33 = vpop.permute.xlu2 %1538 }
0x1938   :  { %v1541_v34 = vadd.f32 %v1539_v33, %v1531_v62  ;;  %v5545_v33 = vld [vmem:[#allocation14 + $0x18] sm:$0xff] }
0x1939   :  { %1872 = vmatpush.msra.mxu0 %v5545_v33  ;;  %1988 = vmatpush.msra.mxu3 %v5545_v33 }
0x193a   :  { %4440 = vtanh.f32 %v1541_v34  ;;  %1554 = vrot.lane.b32.xlu2 %v1541_v34, %s4930_s6  ;;  %v5547_v34 = vld [vmem:[#allocation14 + $0x10] sm:$0xff] }
0x193b   :  { %1873 = vmatpush.msra.mxu0 %v5547_v34  ;;  %1989 = vmatpush.msra.mxu3 %v5547_v34 }
0x1940   :  { %v4441_v36 = vpop.eup %4440 }
0x1941   :  { %1544 = vrot.lane.b32.xlu0 %v4441_v36, %s4928_s24  ;;  %v5551_v36 = vld [vmem:[#allocation14 + $0x8] sm:$0xff] }
0x1942   :  { %1874 = vmatpush.msra.mxu0 %v5551_v36  ;;  %1990 = vmatpush.msra.mxu3 %v5551_v36 }
0x1994   :  { %v1555_v40 = vpop.permute.xlu2 %1554 }
0x1995   :  { %v1557_v41 = vsel %vm240_vm10, %v1555_v40, %v1460_v51  ;;  %v5564_v40 = vld [vmem:[#allocation13 + $0x10] sm:$0xff] }
0x19b3   :  { %v1545_v37 = vpop.permute.xlu0 %1544 }
0x19b4   :  { %v1547_v38 = vmul.f32 %v1545_v37, %v1526_v58  ;;  %v5557_v37 = vld [vmem:[#allocation14] sm:$0xff] }
0x19b5   :  { %1875 = vmatpush.msra.mxu0 %v5557_v37  ;;  %1991 = vmatpush.msra.mxu3 %v5557_v37 }
0x19b6   :  { %1549 = vrot.lane.b32.xlu1 %v1547_v38, %s4929_s23  ;;  %v5561_v38 = vld [vmem:[#allocation13 + $0x18] sm:$0xff] }
0x19b7   :  { %2135 = vmatpush.msrb.mxu3 %v5561_v38 }
0x19b9   :  { %2136 = vmatpush.msrb.mxu3 %v5564_v40 }
0x19be   :  { %1625 = vrot.lane.b32.xlu1 %v1557_v41, %s4929_s23 }
0x1a28   :  { %v5522_v43 = vpop.permute.xlu1 %1549 }
0x1a29   :  { %v5527_v44 = vsel %vm240_vm10, %v5522_v43, %v1455_v53 }
0x1a2a   :  { %4236 = vmatmul.msk.f32.vlgmr.msra.gmra.mxu2 %vm280_vm0, %v5527_v44 }
0x1a30   :  { %v1626_v2 = vpop.permute.xlu1 %1625 }
0x1aad   :  { %v1579_v46 = vpop.f32.mrf.mxu2 }
0x1aae   :  { %v1580_v48 = vadd.f32 %v5393_v14, %v1579_v46  ;;  %v5570_v46 = vld [vmem:[#allocation13] sm:$0xff] }
0x1ab0   :  { %v1602_v49 = vadd.f32 %v1599_v47, %v1580_v48  ;;  %v5573_v47 = vld [vmem:[#allocation13 + $0x38] sm:$0xff]  ;;  %v5577_v48 = vld [vmem:[#allocation13 + $0x30] sm:$0xff] }
0x1ab1   :  { %2035 = vmatpush.msrb.mxu1 %v5573_v47  ;;  %1916 = vmatpush.msra.mxu2 %v5573_v47 }
0x1ab2   :  { %v4238_v50 = vmul.f32 -1.442695, %v1602_v49 }
0x1ab3   :  { %2036 = vmatpush.msrb.mxu1 %v5577_v48  ;;  %1917 = vmatpush.msra.mxu2 %v5577_v48 }
0x1ab4   :  { %4442 = vpow2.f32 %v4238_v50  ;;  %v5585_v50 = vld [vmem:[#allocation13 + $0x20] sm:$0xff] }
0x1aba   :  { %v4443_v51 = vpop.eup %4442 }
0x1abb   :  { %v1607_v54 = vadd.f32 1.0, %v4443_v51 }
0x1abd   :  { %4444 = vrcp.f32 %v1607_v54  ;;  %v1619_v11 = vand.u32 2147483648, %v1607_v54  ;;  %v1617_v13 = vand.u32 2147483647, %v1607_v54  ;;  %vm1613_vm7 = vweird.f32 %v1607_v54 }
0x1abe   :  { %4446 = vtanh.f32 %v1602_v49  ;;  %v5581_v49 = vld [vmem:[#allocation13 + $0x28] sm:$0xff] }
0x1abf   :  { %v1620_v15 = vor.u32 1.1754944e-38, %v1619_v11  ;;  %vm1618_vm15 = vcmp.eq.f32.partialorder %v1617_v13, 8.507059e+37  ;;  %2037 = vmatpush.msrb.mxu1 %v5581_v49  ;;  %1918 = vmatpush.msra.mxu2 %v5581_v49 }
0x1ac1   :  { %2038 = vmatpush.msrb.mxu1 %v5585_v50  ;;  %1919 = vmatpush.msra.mxu2 %v5585_v50 }
0x1ac3   :  { %v4445_v56 = vpop.eup %4444  ;;  %2236 = vmatpush.msra.mxu1 %v5545_v33 }
0x1ac4   :  { %v1609_v3 = vmul.f32 %v4445_v56, %v1607_v54  ;;  %vm1614_vm6 = vweird.f32 %v4445_v56  ;;  %v4447_v21 = vpop.eup %4446 }
0x1ac5   :  { %vm1615_vm14 = vmor %vm1613_vm7, %vm1614_vm6  ;;  %2237 = vmatpush.msra.mxu1 %v5547_v34 }
0x1ac6   :  { %v1610_v6 = vsub.f32 1.0, %v1609_v3 }
0x1ac7   :  { %2238 = vmatpush.msra.mxu1 %v5551_v36 }
0x1ac8   :  { %v1611_v53 = vmul.f32 %v4445_v56, %v1610_v6  ;;  %v1696_v6 = vpop.f32.mrf.mxu1 }
0x1ac9   :  { %2239 = vmatpush.msra.mxu1 %v5557_v37 }
0x1aca   :  { %v1612_v18 = vadd.f32 %v4445_v56, %v1611_v53 }
0x1acc   :  { %v1616_v19 = vsel %vm1615_vm14, %v4445_v56, %v1612_v18 }
0x1acd   :  { %v1621_v22 = vsel %vm1618_vm15, %v1620_v15, %v1616_v19 }
0x1ace   :  { %v1623_v1 = vsel %vm5150_vm4, %v4447_v21, %v1621_v22 }
0x1acf   :  { %1630 = vrot.lane.b32.xlu0 %v1623_v1, %s4928_s24  ;;  %v1628_v5 = vmul.f32 %v1626_v2, %v1623_v1 }
0x1b41   :  { %v1631_v17 = vpop.permute.xlu0 %1630 }
0x1b42   :  { %v1633_v25 = vmul.f32 %v1631_v17, %v1623_v1 }
0x1b44   :  { %1635 = vrot.lane.b32.xlu2 %v1633_v25, %s4929_s23 }
0x1b9e   :  { %v1636_v28 = vpop.permute.xlu2 %1635 }
0x1b9f   :  { %v1638_v29 = vadd.f32 %v1636_v28, %v1628_v5 }
0x1ba1   :  { %4448 = vtanh.f32 %v1638_v29  ;;  %1651 = vrot.lane.b32.xlu2 %v1638_v29, %s4930_s6 }
0x1ba7   :  { %v4449_v58 = vpop.eup %4448 }
0x1ba8   :  { %1641 = vrot.lane.b32.xlu0 %v4449_v58, %s4928_s24 }
0x1bfb   :  { %v1652_v30 = vpop.permute.xlu2 %1651 }
0x1bfc   :  { %v5541_v62 = vsel %vm237_vm3, %v1652_v30, %v1557_v41  ;;  %v5567_v41 = vld [vmem:[#allocation13 + $0x8] sm:$0xff] }
0x1bfd   :  { %2137 = vmatpush.msrb.mxu3 %v5567_v41 }
0x1bff   :  { %2138 = vmatpush.msrb.mxu3 %v5570_v46 }
0x1c1a   :  { %v1642_v59 = vpop.permute.xlu0 %1641 }
0x1c1b   :  { %v1644_v61 = vmul.f32 %v1642_v59, %v1623_v1 }
0x1c1d   :  { %1646 = vrot.lane.b32.xlu1 %v1644_v61, %s4929_s23 }
0x1c25   :  { %1722 = vrot.lane.b32.xlu1 %v5541_v62, %s4929_s23 }
0x1c8f   :  { %v1647_v51 = vpop.permute.xlu1 %1646 }
0x1c90   :  { %v5596_v54 = vsel %vm237_vm3, %v1647_v51, %v5527_v44  ;;  %v5611_v44 = vsel %vm234_vm13, %v5263_v35, 0.0  ;;  %v5621_v56 = vsel %vm237_vm3, %v1647_v51, 0.0 }
0x1c91   :  { %4239 = vmatmul.msk.f32.vlgmr.msrb.gmra.mxu0 %vm280_vm0, %v5596_v54 }
0x1c92   :  { %2011 = vmatpush.msrb.mxu0 %v5561_v38 }
0x1c94   :  { %2012 = vmatpush.msrb.mxu0 %v5564_v40 }
0x1c96   :  { %2013 = vmatpush.msrb.mxu0 %v5567_v41 }
0x1c97   :  { %v1723_v30 = vpop.permute.xlu1 %1722 }
0x1c98   :  { %2014 = vmatpush.msrb.mxu0 %v5570_v46 }
0x1c99   :  { %1876 = vmatmul.f32.vlgmr.msra.gmra.mxu0 %v4927_v9 }
0x1c9a   :  { %2159 = vmatpush.msra.mxu0 %v5573_v47 }
0x1c9c   :  { %2160 = vmatpush.msra.mxu0 %v5577_v48 }
0x1c9e   :  { %2161 = vmatpush.msra.mxu0 %v5581_v49 }
0x1ca0   :  { %2162 = vmatpush.msra.mxu0 %v5585_v50 }
0x1ca1   :  { %4249 = vmatmul.msk.f32.vlgmr.msrb.gmra.mxu0 %vm280_vm0, %v5611_v44 }
0x1ca2   :  { %2360 = vmatpush.msrb.mxu0 %v5545_v33 }
0x1ca4   :  { %2361 = vmatpush.msrb.mxu0 %v5547_v34 }
0x1ca6   :  { %2362 = vmatpush.msrb.mxu0 %v5551_v36 }
0x1ca8   :  { %2363 = vmatpush.msrb.mxu0 %v5557_v37 }
0x1ca9   :  { %4254 = vmatmul.msk.f32.vlgmr.msra.gmra.mxu0 %vm280_vm0, %v5621_v56 }
0x1caa   :  { %2507 = vmatpush.msra.mxu0 %v5561_v38 }
0x1cac   :  { %2508 = vmatpush.msra.mxu0 %v5564_v40 }
0x1cae   :  { %2509 = vmatpush.msra.mxu0 %v5567_v41 }
0x1cb0   :  { %2510 = vmatpush.msra.mxu0 %v5570_v46 }
0x1d0e   :  { %v1676_v35 = vpop.f32.mrf.mxu0 }
0x1d0f   :  { %v1677_v3 = vadd.f32 %v5393_v14, %v1676_v35 }
0x1d11   :  { %v1699_v11 = vadd.f32 %v1696_v6, %v1677_v3 }
0x1d13   :  { %v4241_v53 = vmul.f32 -1.442695, %v1699_v11 }
0x1d15   :  { %4450 = vpow2.f32 %v4241_v53 }
0x1d1b   :  { %v4451_v13 = vpop.eup %4450 }
0x1d1c   :  { %v1704_v18 = vadd.f32 1.0, %v4451_v13 }
0x1d1e   :  { %4452 = vrcp.f32 %v1704_v18  ;;  %v1716_v22 = vand.u32 2147483648, %v1704_v18  ;;  %v1714_v17 = vand.u32 2147483647, %v1704_v18  ;;  %vm1710_vm5 = vweird.f32 %v1704_v18 }
0x1d1f   :  { %4454 = vtanh.f32 %v1699_v11 }
0x1d20   :  { %v1717_v2 = vor.u32 1.1754944e-38, %v1716_v22  ;;  %vm1715_vm7 = vcmp.eq.f32.partialorder %v1714_v17, 8.507059e+37 }
0x1d24   :  { %v4453_v15 = vpop.eup %4452 }
0x1d25   :  { %v1706_v19 = vmul.f32 %v4453_v15, %v1704_v18  ;;  %vm1711_vm2 = vweird.f32 %v4453_v15  ;;  %v4455_v28 = vpop.eup %4454 }
0x1d26   :  { %vm1712_vm6 = vmor %vm1710_vm5, %vm1711_vm2 }
0x1d27   :  { %v1707_v21 = vsub.f32 1.0, %v1706_v19 }
0x1d29   :  { %v1708_v1 = vmul.f32 %v4453_v15, %v1707_v21 }
0x1d2b   :  { %v1709_v25 = vadd.f32 %v4453_v15, %v1708_v1 }
0x1d2d   :  { %v1713_v5 = vsel %vm1712_vm6, %v4453_v15, %v1709_v25 }
0x1d2e   :  { %v1718_v29 = vsel %vm1715_vm7, %v1717_v2, %v1713_v5 }
0x1d2f   :  { %v1720_v58 = vsel %vm5150_vm4, %v4455_v28, %v1718_v29 }
0x1d30   :  { %1727 = vrot.lane.b32.xlu0 %v1720_v58, %s4928_s24  ;;  %v1725_v51 = vmul.f32 %v1723_v30, %v1720_v58 }
0x1da2   :  { %v1728_v59 = vpop.permute.xlu0 %1727 }
0x1da3   :  { %v1730_v61 = vmul.f32 %v1728_v59, %v1720_v58 }
0x1da5   :  { %1732 = vrot.lane.b32.xlu2 %v1730_v61, %s4929_s23 }
0x1dff   :  { %v1733_v35 = vpop.permute.xlu2 %1732 }
0x1e00   :  { %v1735_v3 = vadd.f32 %v1733_v35, %v1725_v51 }
0x1e02   :  { %4456 = vtanh.f32 %v1735_v3  ;;  %1748 = vrot.lane.b32.xlu2 %v1735_v3, %s4930_s6 }
0x1e08   :  { %v4457_v6 = vpop.eup %4456 }
0x1e09   :  { %1738 = vrot.lane.b32.xlu0 %v4457_v6, %s4928_s24 }
0x1e5c   :  { %v1749_v13 = vpop.permute.xlu2 %1748 }
0x1e5d   :  { %v1751_v18 = vsel %vm234_vm13, %v1749_v13, %v5541_v62 }
0x1e7b   :  { %v1739_v11 = vpop.permute.xlu0 %1738 }
0x1e7c   :  { %v1741_v53 = vmul.f32 %v1739_v11, %v1720_v58 }
0x1e7e   :  { %1743 = vrot.lane.b32.xlu1 %v1741_v53, %s4929_s23 }
0x1e86   :  { %1819 = vrot.lane.b32.xlu1 %v1751_v18, %s4929_s23 }
0x1ef0   :  { %v1744_v15 = vpop.permute.xlu1 %1743 }
0x1ef1   :  { %v1746_v19 = vsel %vm234_vm13, %v1744_v15, %v5596_v54  ;;  %v5647_v21 = vsel %vm234_vm13, %v1744_v15, 0.0  ;;  %v1793_v54 = vpop.f32.mrf.mxu3 }
0x1ef2   :  { %4242 = vmatmul.msk.f32.vlgmr.msrb.gmra.mxu2 %vm280_vm0, %v1746_v19  ;;  %4250 = vmatmul.msk.f32.vlgmr.msrb.gmra.mxu1 %vm280_vm0, %v5647_v21 }
0x1ef3   :  { %2112 = vmatpush.msrb.mxu2 %v5545_v33  ;;  %2383 = vmatpush.msrb.mxu1 %v5561_v38 }
0x1ef5   :  { %2113 = vmatpush.msrb.mxu2 %v5547_v34  ;;  %2384 = vmatpush.msrb.mxu1 %v5564_v40 }
0x1ef7   :  { %2114 = vmatpush.msrb.mxu2 %v5551_v36  ;;  %2385 = vmatpush.msrb.mxu1 %v5567_v41 }
0x1ef8   :  { %v1820_v13 = vpop.permute.xlu1 %1819 }
0x1ef9   :  { %2115 = vmatpush.msrb.mxu2 %v5557_v37  ;;  %2386 = vmatpush.msrb.mxu1 %v5570_v46 }
0x1f75   :  { %v1773_v62 = vpop.f32.mrf.mxu2 }
0x1f76   :  { %v1774_v22 = vadd.f32 %v5393_v14, %v1773_v62 }
0x1f78   :  { %v1796_v1 = vadd.f32 %v1793_v54, %v1774_v22 }
0x1f7a   :  { %v4244_v17 = vmul.f32 -1.442695, %v1796_v1 }
0x1f7c   :  { %4458 = vpow2.f32 %v4244_v17 }
0x1f82   :  { %v4459_v25 = vpop.eup %4458 }
0x1f83   :  { %v1801_v2 = vadd.f32 1.0, %v4459_v25  ;;  %v5680_v25 = vld [vmem:[%s6467_s10] ss:$0 sm:$0xff] }
0x1f85   :  { %4460 = vrcp.f32 %v1801_v2  ;;  %v1813_v58 = vand.u32 2147483648, %v1801_v2  ;;  %v1811_v61 = vand.u32 2147483647, %v1801_v2  ;;  %vm1807_vm15 = vweird.f32 %v1801_v2 }
0x1f86   :  { %4462 = vtanh.f32 %v1796_v1 }
0x1f87   :  { %v1814_v51 = vor.u32 1.1754944e-38, %v1813_v58  ;;  %vm1812_vm5 = vcmp.eq.f32.partialorder %v1811_v61, 8.507059e+37 }
0x1f8b   :  { %v4461_v5 = vpop.eup %4460 }
0x1f8c   :  { %v1803_v28 = vmul.f32 %v4461_v5, %v1801_v2  ;;  %vm1808_vm14 = vweird.f32 %v4461_v5  ;;  %v4463_v14 = vpop.eup %4462  ;;  %v1877_v2 = vpop.f32.mrf.mxu0 }
0x1f8d   :  { %vm1809_vm2 = vmor %vm1807_vm15, %vm1808_vm14 }
0x1f8e   :  { %v1804_v29 = vsub.f32 1.0, %v1803_v28  ;;  %v1897_v28 = vpop.f32.mrf.mxu1 }
0x1f90   :  { %v1805_v59 = vmul.f32 %v4461_v5, %v1804_v29 }
0x1f92   :  { %v1806_v30 = vadd.f32 %v4461_v5, %v1805_v59 }
0x1f94   :  { %v1810_v35 = vsel %vm1809_vm2, %v4461_v5, %v1806_v30  ;;  %v1878_v5 = vadd.f32 %v5680_v25, %v1877_v2 }
0x1f95   :  { %v1815_v3 = vsel %vm1812_vm5, %v1814_v51, %v1810_v35 }
0x1f96   :  { %v1817_v6 = vsel %vm5150_vm4, %v4463_v14, %v1815_v3  ;;  %v1900_v29 = vadd.f32 %v1897_v28, %v1878_v5 }
0x1f97   :  { %1824 = vrot.lane.b32.xlu0 %v1817_v6, %s4928_s24  ;;  %v1822_v18 = vmul.f32 %v1820_v13, %v1817_v6 }
0x2009   :  { %v1825_v11 = vpop.permute.xlu0 %1824 }
0x200a   :  { %v1827_v53 = vmul.f32 %v1825_v11, %v1817_v6 }
0x200c   :  { %1829 = vrot.lane.b32.xlu2 %v1827_v53, %s4929_s23 }
0x2066   :  { %v1830_v15 = vpop.permute.xlu2 %1829 }
0x2067   :  { %v1832_v19 = vadd.f32 %v1830_v15, %v1822_v18 }
0x2069   :  { %4464 = vtanh.f32 %v1832_v19 }
0x206f   :  { %v4465_v62 = vpop.eup %4464 }
0x2070   :  { %1835 = vrot.lane.b32.xlu0 %v4465_v62, %s4928_s24 }
0x20e2   :  { %v1836_v54 = vpop.permute.xlu0 %1835 }
0x20e3   :  { %v1838_v22 = vmul.f32 %v1836_v54, %v1817_v6 }
0x20e5   :  { %1840 = vrot.lane.b32.xlu1 %v1838_v22, %s4929_s23 }
0x2157   :  { %v1841_v1 = vpop.permute.xlu1 %1840 }
0x2158   :  { %v5669_v17 = vsel %vm231_vm8, %v1841_v1, 0.0 }
0x2159   :  { %4246 = vmatmul.msk.f32.vlgmr.msra.gmra.mxu2 %vm280_vm0, %v5669_v17 }
0x215a   :  { %2259 = vmatpush.msra.mxu2 %v5561_v38 }
0x215c   :  { %2260 = vmatpush.msra.mxu2 %v5564_v40 }
0x215e   :  { %2261 = vmatpush.msra.mxu2 %v5567_v41 }
0x2160   :  { %2262 = vmatpush.msra.mxu2 %v5570_v46 }
0x21dc   :  { %v1921_v58 = vpop.f32.mrf.mxu2 }
0x21dd   :  { %v1924_v59 = vadd.f32 %v1921_v58, %v1900_v29 }
0x21df   :  { %v4247_v61 = vmul.f32 -1.442695, %v1924_v59 }
0x21e1   :  { %4466 = vpow2.f32 %v4247_v61 }
0x21e7   :  { %v4467_v30 = vpop.eup %4466 }
0x21e8   :  { %v1929_v51 = vadd.f32 1.0, %v4467_v30 }
0x21ea   :  { %4468 = vrcp.f32 %v1929_v51  ;;  %v1941_v6 = vand.u32 2147483648, %v1929_v51  ;;  %v1939_v53 = vand.u32 2147483647, %v1929_v51  ;;  %vm1935_vm7 = vweird.f32 %v1929_v51 }
0x21eb   :  { %4470 = vtanh.f32 %v1924_v59 }
0x21ec   :  { %v1942_v18 = vor.u32 1.1754944e-38, %v1941_v6  ;;  %vm1940_vm15 = vcmp.eq.f32.partialorder %v1939_v53, 8.507059e+37 }
0x21f0   :  { %v4469_v35 = vpop.eup %4468 }
0x21f1   :  { %v1931_v14 = vmul.f32 %v4469_v35, %v1929_v51  ;;  %vm1936_vm6 = vweird.f32 %v4469_v35  ;;  %v4471_v19 = vpop.eup %4470 }
0x21f2   :  { %vm1937_vm14 = vmor %vm1935_vm7, %vm1936_vm6 }
0x21f3   :  { %v1932_v3 = vsub.f32 1.0, %v1931_v14  ;;  %v5708_v14 = vsel %vm237_vm3, %v5288_v12, 0.0 }
0x21f5   :  { %v1933_v11 = vmul.f32 %v4469_v35, %v1932_v3  ;;  %v5719_v3 = vsel %vm240_vm10, %v5522_v43, 0.0  ;;  %v2040_v43 = vpop.f32.mrf.mxu1 }
0x21f7   :  { %v1934_v13 = vadd.f32 %v4469_v35, %v1933_v11  ;;  %v2016_v11 = vpop.f32.mrf.mxu0 }
0x21f9   :  { %v1938_v15 = vsel %vm1937_vm14, %v4469_v35, %v1934_v13 }
0x21fa   :  { %v1943_v62 = vsel %vm1940_vm15, %v1942_v18, %v1938_v15 }
0x21fb   :  { %v1945_v54 = vsel %vm5150_vm4, %v4471_v19, %v1943_v62 }
0x21fc   :  { %1948 = vrot.lane.b32.xlu2 %v1945_v54, %s4928_s24  ;;  %v1946_v2 = vmul.f32 0.0, %v1945_v54 }
0x2256   :  { %v1949_v22 = vpop.permute.xlu2 %1948 }
0x2257   :  { %v1951_v1 = vmul.f32 %v1949_v22, %v1945_v54 }
0x2259   :  { %1953 = vrot.lane.b32.xlu0 %v1951_v1, %s4929_s23 }
0x22cb   :  { %v1954_v5 = vpop.permute.xlu0 %1953 }
0x22cc   :  { %v1956_v28 = vadd.f32 %v1954_v5, %v1946_v2 }
0x22ce   :  { %4472 = vtanh.f32 %v1956_v28  ;;  %1969 = vrot.lane.b32.xlu0 %v1956_v28, %s4930_s6 }
0x22d4   :  { %v4473_v29 = vpop.eup %4472 }
0x22d5   :  { %1959 = vrot.lane.b32.xlu1 %v4473_v29, %s4928_s24 }
0x2340   :  { %v1970_v61 = vpop.permute.xlu0 %1969 }
0x2341   :  { %v5692_v30 = vsel %vm231_vm8, %v1970_v61, 0.0 }
0x2347   :  { %v1960_v58 = vpop.permute.xlu1 %1959 }
0x2348   :  { %v1962_v59 = vmul.f32 %v1960_v58, %v1945_v54 }
0x234a   :  { %1964 = vrot.lane.b32.xlu2 %v1962_v59, %s4929_s23 }
0x2352   :  { %2066 = vrot.lane.b32.xlu2 %v5692_v30, %s4929_s23 }
0x23a4   :  { %v1965_v51 = vpop.permute.xlu2 %1964 }
0x23a5   :  { %v5698_v35 = vsel %vm231_vm8, %v1965_v51, 0.0 }
0x23a6   :  { %4248 = vmatmul.msk.f32.vlgmr.msra.gmra.mxu3 %vm280_vm0, %v5698_v35 }
0x23a7   :  { %2283 = vmatpush.msra.mxu3 %v5573_v47 }
0x23a9   :  { %2284 = vmatpush.msra.mxu3 %v5577_v48 }
0x23ab   :  { %2285 = vmatpush.msra.mxu3 %v5581_v49 }
0x23ad   :  { %2286 = vmatpush.msra.mxu3 %v5585_v50 }
0x23ae   :  { %4253 = vmatmul.msk.f32.vlgmr.msrb.gmra.mxu3 %vm280_vm0, %v5708_v14 }
0x23af   :  { %2484 = vmatpush.msrb.mxu3 %v5545_v33 }
0x23b1   :  { %2485 = vmatpush.msrb.mxu3 %v5547_v34 }
0x23b3   :  { %2486 = vmatpush.msrb.mxu3 %v5551_v36 }
0x23b5   :  { %2487 = vmatpush.msrb.mxu3 %v5557_v37 }
0x23b6   :  { %4258 = vmatmul.msk.f32.vlgmr.msra.gmra.mxu3 %vm280_vm0, %v5719_v3 }
0x23b7   :  { %2631 = vmatpush.msra.mxu3 %v5561_v38 }
0x23b9   :  { %2632 = vmatpush.msra.mxu3 %v5564_v40 }
0x23bb   :  { %2633 = vmatpush.msra.mxu3 %v5567_v41 }
0x23bd   :  { %2634 = vmatpush.msra.mxu3 %v5570_v46 }
0x2429   :  { %v1993_v12 = vpop.f32.mrf.mxu3 }
0x242a   :  { %v1994_v6 = vadd.f32 %v5680_v25, %v1993_v12 }
0x242c   :  { %v2019_v53 = vadd.f32 %v2016_v11, %v1994_v6  ;;  %v2067_v11 = vpop.permute.xlu2 %2066 }
0x242e   :  { %v2043_v13 = vadd.f32 %v2040_v43, %v2019_v53 }
0x2430   :  { %v4251_v18 = vmul.f32 -1.442695, %v2043_v13 }
0x2432   :  { %4474 = vpow2.f32 %v4251_v18 }
0x2438   :  { %v4475_v15 = vpop.eup %4474 }
0x2439   :  { %v2048_v19 = vadd.f32 1.0, %v4475_v15 }
0x243b   :  { %4476 = vrcp.f32 %v2048_v19  ;;  %v2060_v1 = vand.u32 2147483648, %v2048_v19  ;;  %v2058_v5 = vand.u32 2147483647, %v2048_v19  ;;  %vm2054_vm5 = vweird.f32 %v2048_v19 }
0x243c   :  { %4478 = vtanh.f32 %v2043_v13 }
0x243d   :  { %v2061_v29 = vor.u32 1.1754944e-38, %v2060_v1  ;;  %vm2059_vm7 = vcmp.eq.f32.partialorder %v2058_v5, 8.507059e+37 }
0x2441   :  { %v4477_v62 = vpop.eup %4476 }
0x2442   :  { %v2050_v54 = vmul.f32 %v4477_v62, %v2048_v19  ;;  %vm2055_vm2 = vweird.f32 %v4477_v62  ;;  %v4479_v59 = vpop.eup %4478 }
0x2443   :  { %vm2056_vm6 = vmor %vm2054_vm5, %vm2055_vm2 }
0x2444   :  { %v2051_v22 = vsub.f32 1.0, %v2050_v54 }
0x2446   :  { %v2052_v2 = vmul.f32 %v4477_v62, %v2051_v22 }
0x2448   :  { %v2053_v28 = vadd.f32 %v4477_v62, %v2052_v2  ;;  %v5770_v2 = vsel %vm243_vm1, %v5505_v52, 0.0  ;;  %v2164_v52 = vpop.f32.mrf.mxu0 }
0x244a   :  { %v2057_v58 = vsel %vm2056_vm6, %v4477_v62, %v2053_v28  ;;  %v2140_v28 = vpop.f32.mrf.mxu3 }
0x244b   :  { %v2062_v61 = vsel %vm2059_vm7, %v2061_v29, %v2057_v58 }
0x244c   :  { %v2064_v51 = vsel %vm5150_vm4, %v4479_v59, %v2062_v61 }
0x244d   :  { %2071 = vrot.lane.b32.xlu1 %v2064_v51, %s4928_s24  ;;  %v2069_v53 = vmul.f32 %v2067_v11, %v2064_v51 }
0x24bf   :  { %v2072_v12 = vpop.permute.xlu1 %2071 }
0x24c0   :  { %v2074_v6 = vmul.f32 %v2072_v12, %v2064_v51 }
0x24c2   :  { %2076 = vrot.lane.b32.xlu0 %v2074_v6, %s4929_s23 }
0x2534   :  { %v2077_v43 = vpop.permute.xlu0 %2076 }
0x2535   :  { %v2079_v13 = vadd.f32 %v2077_v43, %v2069_v53 }
0x2537   :  { %4480 = vtanh.f32 %v2079_v13  ;;  %2092 = vrot.lane.b32.xlu0 %v2079_v13, %s4930_s6 }
0x253d   :  { %v4481_v18 = vpop.eup %4480 }
0x253e   :  { %2082 = vrot.lane.b32.xlu1 %v4481_v18, %s4928_s24 }
0x25a9   :  { %v2093_v62 = vpop.permute.xlu0 %2092 }
0x25aa   :  { %v5739_v54 = vsel %vm234_vm13, %v2093_v62, %v5692_v30  ;;  %v5759_v30 = vsel %vm240_vm10, %v5312_v45, 0.0 }
0x25b0   :  { %v2083_v15 = vpop.permute.xlu1 %2082 }
0x25b1   :  { %v2085_v19 = vmul.f32 %v2083_v15, %v2064_v51 }
0x25b3   :  { %2087 = vrot.lane.b32.xlu2 %v2085_v19, %s4929_s23 }
0x25bb   :  { %2190 = vrot.lane.b32.xlu2 %v5739_v54, %s4929_s23 }
0x260d   :  { %v5743_v22 = vpop.permute.xlu2 %2087 }
0x260e   :  { %v5749_v1 = vsel %vm234_vm13, %v5743_v22, %v5698_v35 }
0x260f   :  { %4252 = vmatmul.msk.f32.vlgmr.msrb.gmra.mxu2 %vm280_vm0, %v5749_v1 }
0x2610   :  { %2407 = vmatpush.msrb.mxu2 %v5573_v47 }
0x2612   :  { %2408 = vmatpush.msrb.mxu2 %v5577_v48 }
0x2614   :  { %2409 = vmatpush.msrb.mxu2 %v5581_v49 }
0x2616   :  { %2410 = vmatpush.msrb.mxu2 %v5585_v50 }
0x2617   :  { %4257 = vmatmul.msk.f32.vlgmr.msra.gmra.mxu2 %vm280_vm0, %v5759_v30 }
0x2618   :  { %2608 = vmatpush.msra.mxu2 %v5545_v33 }
0x261a   :  { %2609 = vmatpush.msra.mxu2 %v5547_v34 }
0x261c   :  { %2610 = vmatpush.msra.mxu2 %v5551_v36 }
0x261e   :  { %2611 = vmatpush.msra.mxu2 %v5557_v37 }
0x261f   :  { %4262 = vmatmul.msk.f32.vlgmr.msrb.gmra.mxu2 %vm280_vm0, %v5770_v2 }
0x2620   :  { %2755 = vmatpush.msrb.mxu2 %v5561_v38 }
0x2622   :  { %2756 = vmatpush.msrb.mxu2 %v5564_v40 }
0x2624   :  { %2757 = vmatpush.msrb.mxu2 %v5567_v41 }
0x2626   :  { %2758 = vmatpush.msrb.mxu2 %v5570_v46 }
0x2692   :  { %v2117_v45 = vpop.f32.mrf.mxu2 }
0x2693   :  { %v2118_v5 = vadd.f32 %v5680_v25, %v2117_v45  ;;  %v2191_v45 = vpop.permute.xlu2 %2190 }
0x2695   :  { %v2143_v29 = vadd.f32 %v2140_v28, %v2118_v5 }
0x2697   :  { %v2167_v58 = vadd.f32 %v2164_v52, %v2143_v29 }
0x2699   :  { %v4255_v59 = vmul.f32 -1.442695, %v2167_v58 }
0x269b   :  { %4482 = vpow2.f32 %v4255_v59 }
0x26a1   :  { %v4483_v61 = vpop.eup %4482 }
0x26a2   :  { %v2172_v51 = vadd.f32 1.0, %v4483_v61 }
0x26a4   :  { %4484 = vrcp.f32 %v2172_v51  ;;  %v2184_v40 = vand.u32 2147483648, %v2172_v51  ;;  %v2182_v46 = vand.u32 2147483647, %v2172_v51  ;;  %vm2178_vm15 = vweird.f32 %v2172_v51 }
0x26a5   :  { %4486 = vtanh.f32 %v2167_v58 }
0x26a6   :  { %v2185_v53 = vor.u32 1.1754944e-38, %v2184_v40  ;;  %vm2183_vm5 = vcmp.eq.f32.partialorder %v2182_v46, 8.507059e+37  ;;  %v2264_v40 = vpop.f32.mrf.mxu2 }
0x26aa   :  { %v4485_v12 = vpop.eup %4484 }
0x26ab   :  { %v2174_v38 = vmul.f32 %v4485_v12, %v2172_v51  ;;  %vm2179_vm14 = vweird.f32 %v4485_v12  ;;  %v4487_v13 = vpop.eup %4486 }
0x26ac   :  { %vm2180_vm2 = vmor %vm2178_vm15, %vm2179_vm14 }
0x26ad   :  { %v2175_v6 = vsub.f32 1.0, %v2174_v38 }
0x26af   :  { %v2176_v41 = vmul.f32 %v4485_v12, %v2175_v6 }
0x26b1   :  { %v2177_v11 = vadd.f32 %v4485_v12, %v2176_v41 }
0x26b3   :  { %v2181_v43 = vsel %vm2180_vm2, %v4485_v12, %v2177_v11 }
0x26b4   :  { %v2186_v18 = vsel %vm2183_vm5, %v2185_v53, %v2181_v43 }
0x26b5   :  { %v2188_v15 = vsel %vm5150_vm4, %v4487_v13, %v2186_v18 }
0x26b6   :  { %2195 = vrot.lane.b32.xlu1 %v2188_v15, %s4928_s24  ;;  %v2193_v5 = vmul.f32 %v2191_v45, %v2188_v15 }
0x2728   :  { %v2196_v19 = vpop.permute.xlu1 %2195 }
0x2729   :  { %v2198_v62 = vmul.f32 %v2196_v19, %v2188_v15 }
0x272b   :  { %2200 = vrot.lane.b32.xlu0 %v2198_v62, %s4929_s23 }
0x279d   :  { %v2201_v28 = vpop.permute.xlu0 %2200 }
0x279e   :  { %v2203_v29 = vadd.f32 %v2201_v28, %v2193_v5 }
0x27a0   :  { %4488 = vtanh.f32 %v2203_v29  ;;  %2216 = vrot.lane.b32.xlu0 %v2203_v29, %s4930_s6 }
0x27a6   :  { %v4489_v52 = vpop.eup %4488 }
0x27a7   :  { %2206 = vrot.lane.b32.xlu1 %v4489_v52, %s4928_s24 }
0x2812   :  { %v2217_v61 = vpop.permute.xlu0 %2216 }
0x2813   :  { %v2219_v51 = vsel %vm237_vm3, %v2217_v61, %v5739_v54  ;;  %v5807_v54 = vsel %vm243_vm1, %v5332_v23, 0.0 }
0x2819   :  { %v2207_v58 = vpop.permute.xlu1 %2206 }
0x281a   :  { %v2209_v59 = vmul.f32 %v2207_v58, %v2188_v15 }
0x281c   :  { %2211 = vrot.lane.b32.xlu2 %v2209_v59, %s4929_s23 }
0x2824   :  { %2314 = vrot.lane.b32.xlu2 %v2219_v51, %s4929_s23 }
0x2876   :  { %v5791_v12 = vpop.permute.xlu2 %2211 }
0x2877   :  { %v5797_v38 = vsel %vm237_vm3, %v5791_v12, %v5749_v1  ;;  %v5818_v1 = vsel %vm246_vm9, %v5484_v16, 0.0  ;;  %v2220_v42 = vsel %vm237_vm3, %v5791_v12, 0.0 }
0x2878   :  { %4256 = vmatmul.msk.f32.vlgmr.msra.gmra.mxu1 %vm280_vm0, %v5797_v38 }
0x2879   :  { %2531 = vmatpush.msra.mxu1 %v5573_v47 }
0x287b   :  { %2532 = vmatpush.msra.mxu1 %v5577_v48 }
0x287d   :  { %2533 = vmatpush.msra.mxu1 %v5581_v49 }
0x287e   :  { %v2315_v58 = vpop.permute.xlu2 %2314 }
0x287f   :  { %2534 = vmatpush.msra.mxu1 %v5585_v50 }
0x2880   :  { %4261 = vmatmul.msk.f32.vlgmr.msrb.gmra.mxu1 %vm280_vm0, %v5807_v54 }
0x2881   :  { %2732 = vmatpush.msrb.mxu1 %v5545_v33  ;;  %v2288_v33 = vpop.f32.mrf.mxu3 }
0x2883   :  { %2733 = vmatpush.msrb.mxu1 %v5547_v34 }
0x2885   :  { %2734 = vmatpush.msrb.mxu1 %v5551_v36 }
0x2887   :  { %2735 = vmatpush.msrb.mxu1 %v5557_v37 }
0x2888   :  { %4266 = vmatmul.msk.f32.vlgmr.msra.gmra.mxu1 %vm280_vm0, %v5818_v1 }
0x28f5   :  { %v2241_v23 = vpop.f32.mrf.mxu1 }
0x28f6   :  { %v2242_v6 = vadd.f32 %v5680_v25, %v2241_v23 }
0x28f8   :  { %v2267_v41 = vadd.f32 %v2264_v40, %v2242_v6 }
0x28fa   :  { %v2291_v46 = vadd.f32 %v2288_v33, %v2267_v41 }
0x28fc   :  { %v4259_v34 = vmul.f32 -1.442695, %v2291_v46 }
0x28fe   :  { %4490 = vpow2.f32 %v4259_v34  ;;  %v5837_v34 = vld [vmem:[#allocation16 + $0x18] sm:$0xff] }
0x28ff   :  { %2880 = vmatpush.msra.mxu1 %v5837_v34 }
0x2904   :  { %v4491_v36 = vpop.eup %4490 }
0x2905   :  { %v2296_v11 = vadd.f32 1.0, %v4491_v36  ;;  %v5840_v36 = vld [vmem:[#allocation16 + $0x10] sm:$0xff] }
0x2906   :  { %2881 = vmatpush.msra.mxu1 %v5840_v36 }
0x2907   :  { %4492 = vrcp.f32 %v2296_v11  ;;  %v2308_v37 = vand.u32 2147483648, %v2296_v11  ;;  %v2306_v18 = vand.u32 2147483647, %v2296_v11  ;;  %vm2302_vm7 = vweird.f32 %v2296_v11 }
0x2908   :  { %4494 = vtanh.f32 %v2291_v46 }
0x2909   :  { %v2309_v19 = vor.u32 1.1754944e-38, %v2308_v37  ;;  %vm2307_vm15 = vcmp.eq.f32.partialorder %v2306_v18, 8.507059e+37  ;;  %v5867_v37 = vsel %vm246_vm9, %v5371_v63, 0.0  ;;  %v5878_v18 = vld [vmem:[#allocation17] sm:$0xff]  ;;  %v5884_v63 = vsel %vm249_vm12, %v5462_v10, 0.0  ;;  %v5899_v10 = vld [vmem:[#allocation16 + $0x28] sm:$0xff] }
0x290d   :  { %v4493_v53 = vpop.eup %4492 }
0x290e   :  { %v2298_v16 = vmul.f32 %v4493_v53, %v2296_v11  ;;  %vm2303_vm6 = vweird.f32 %v4493_v53  ;;  %v4495_v45 = vpop.eup %4494  ;;  %v5843_v11 = vld [vmem:[#allocation16 + $0x8] sm:$0xff] }
0x290f   :  { %vm2304_vm14 = vmor %vm2302_vm7, %vm2303_vm6  ;;  %2882 = vmatpush.msra.mxu1 %v5843_v11 }
0x2910   :  { %v2299_v43 = vsub.f32 1.0, %v2298_v16  ;;  %v5848_v16 = vld [vmem:[#allocation16] sm:$0xff] }
0x2911   :  { %2883 = vmatpush.msra.mxu1 %v5848_v16 }
0x2912   :  { %v2300_v13 = vmul.f32 %v4493_v53, %v2299_v43  ;;  %v5862_v43 = vld [vmem:[#allocation17 + $0x18] sm:$0xff] }
0x2914   :  { %v2301_v15 = vadd.f32 %v4493_v53, %v2300_v13  ;;  %v5875_v13 = vld [vmem:[#allocation17 + $0x8] sm:$0xff] }
0x2916   :  { %v2305_v62 = vsel %vm2304_vm14, %v4493_v53, %v2301_v15  ;;  %v5892_v15 = vld [vmem:[#allocation16 + $0x38] sm:$0xff] }
0x2917   :  { %v2310_v5 = vsel %vm2307_vm15, %v2309_v19, %v2305_v62  ;;  %v5896_v19 = vld [vmem:[#allocation16 + $0x30] sm:$0xff]  ;;  %v5902_v62 = vld [vmem:[#allocation16 + $0x20] sm:$0xff] }
0x2918   :  { %v2312_v28 = vsel %vm5150_vm4, %v4495_v45, %v2310_v5  ;;  %v5908_v45 = vsel %vm249_vm12, %v5424_v24, 0.0  ;;  %v2388_v5 = vpop.f32.mrf.mxu1 }
0x2919   :  { %2319 = vrot.lane.b32.xlu1 %v2312_v28, %s4928_s24  ;;  %v2317_v59 = vmul.f32 %v2315_v58, %v2312_v28 }
0x298b   :  { %v2320_v29 = vpop.permute.xlu1 %2319 }
0x298c   :  { %v2322_v52 = vmul.f32 %v2320_v29, %v2312_v28  ;;  %v2412_v29 = vpop.f32.mrf.mxu2 }
0x298e   :  { %2324 = vrot.lane.b32.xlu0 %v2322_v52, %s4929_s23 }
0x2a00   :  { %v2325_v61 = vpop.permute.xlu0 %2324 }
0x2a01   :  { %v2327_v23 = vadd.f32 %v2325_v61, %v2317_v59 }
0x2a03   :  { %4496 = vtanh.f32 %v2327_v23  ;;  %2340 = vrot.lane.b32.xlu0 %v2327_v23, %s4930_s6 }
0x2a09   :  { %v4497_v6 = vpop.eup %4496 }
0x2a0a   :  { %2330 = vrot.lane.b32.xlu1 %v4497_v6, %s4928_s24 }
0x2a75   :  { %v2341_v33 = vpop.permute.xlu0 %2340 }
0x2a76   :  { %v5833_v46 = vsel %vm240_vm10, %v2341_v33, %v2219_v51 }
0x2a7c   :  { %v2331_v40 = vpop.permute.xlu1 %2330 }
0x2a7d   :  { %v2333_v41 = vmul.f32 %v2331_v40, %v2312_v28 }
0x2a7f   :  { %2335 = vrot.lane.b32.xlu2 %v2333_v41, %s4929_s23 }
0x2a87   :  { %2438 = vrot.lane.b32.xlu2 %v5833_v46, %s4929_s23 }
0x2ad9   :  { %v5846_v53 = vpop.permute.xlu2 %2335 }
0x2ada   :  { %v5854_v51 = vsel %vm240_vm10, %v5846_v53, %v5797_v38  ;;  %v5872_v38 = vld [vmem:[#allocation17 + $0x10] sm:$0xff] }
0x2adb   :  { %4260 = vmatmul.msk.f32.vlgmr.msrb.gmra.mxu0 %vm280_vm0, %v5854_v51 }
0x2adc   :  { %2655 = vmatpush.msrb.mxu0 %v5573_v47 }
0x2ade   :  { %2656 = vmatpush.msrb.mxu0 %v5577_v48 }
0x2ae0   :  { %2657 = vmatpush.msrb.mxu0 %v5581_v49 }
0x2ae2   :  { %2658 = vmatpush.msrb.mxu0 %v5585_v50 }
0x2ae3   :  { %4265 = vmatmul.msk.f32.vlgmr.msra.gmra.mxu0 %vm280_vm0, %v5867_v37 }
0x2ae4   :  { %2860 = vmatpush.msra.mxu0 %v5862_v43 }
0x2ae6   :  { %2861 = vmatpush.msra.mxu0 %v5872_v38 }
0x2ae8   :  { %2862 = vmatpush.msra.mxu0 %v5875_v13 }
0x2aea   :  { %2863 = vmatpush.msra.mxu0 %v5878_v18 }
0x2aeb   :  { %4270 = vmatmul.msk.f32.vlgmr.msrb.gmra.mxu0 %vm280_vm0, %v5884_v63 }
0x2aec   :  { %2993 = vmatpush.msrb.mxu0 %v5837_v34 }
0x2aee   :  { %2994 = vmatpush.msrb.mxu0 %v5840_v36 }
0x2af0   :  { %2995 = vmatpush.msrb.mxu0 %v5843_v11 }
0x2af2   :  { %2996 = vmatpush.msrb.mxu0 %v5848_v16 }
0x2af3   :  { %2864 = vmatmul.f32.vlgmr.msra.gmra.mxu0 %v4927_v9 }
0x2af4   :  { %3132 = vmatpush.msra.mxu0 %v5892_v15 }
0x2af6   :  { %3133 = vmatpush.msra.mxu0 %v5896_v19 }
0x2af8   :  { %3134 = vmatpush.msra.mxu0 %v5899_v10 }
0x2afa   :  { %3135 = vmatpush.msra.mxu0 %v5902_v62 }
0x2afb   :  { %4280 = vmatmul.msk.f32.vlgmr.msrb.gmra.mxu0 %vm280_vm0, %v5908_v45 }
0x2afc   :  { %3327 = vmatpush.msrb.mxu0 %v5862_v43 }
0x2afe   :  { %3328 = vmatpush.msrb.mxu0 %v5872_v38 }
0x2b00   :  { %3329 = vmatpush.msrb.mxu0 %v5875_v13 }
0x2b02   :  { %3330 = vmatpush.msrb.mxu0 %v5878_v18 }
0x2b03   :  { %4285 = vmatmul.msk.f32.vlgmr.msra.gmra.mxu0 %vm280_vm0, %v5818_v1 }
0x2b04   :  { %3465 = vmatpush.msra.mxu0 %v5837_v34 }
0x2b06   :  { %3466 = vmatpush.msra.mxu0 %v5840_v36 }
0x2b08   :  { %3467 = vmatpush.msra.mxu0 %v5843_v11 }
0x2b0a   :  { %3468 = vmatpush.msra.mxu0 %v5848_v16 }
0x2b58   :  { %v2365_v9 = vpop.f32.mrf.mxu0 }
0x2b59   :  { %v2366_v24 = vadd.f32 %v5680_v25, %v2365_v9 }
0x2b5b   :  { %v2391_v28 = vadd.f32 %v2388_v5, %v2366_v24 }
0x2b5d   :  { %v2415_v52 = vadd.f32 %v2412_v29, %v2391_v28 }
0x2b5f   :  { %v4263_v58 = vmul.f32 -1.442695, %v2415_v52 }
0x2b61   :  { %4498 = vpow2.f32 %v4263_v58 }
0x2b67   :  { %v4499_v59 = vpop.eup %4498 }
0x2b68   :  { %v2420_v61 = vadd.f32 1.0, %v4499_v59 }
0x2b6a   :  { %4500 = vrcp.f32 %v2420_v61  ;;  %v2432_v40 = vand.u32 2147483648, %v2420_v61  ;;  %v2430_v33 = vand.u32 2147483647, %v2420_v61  ;;  %vm2426_vm5 = vweird.f32 %v2420_v61 }
0x2b6b   :  { %4502 = vtanh.f32 %v2415_v52  ;;  %v2439_v52 = vpop.permute.xlu2 %2438 }
0x2b6c   :  { %v2433_v9 = vor.u32 1.1754944e-38, %v2432_v40  ;;  %vm2431_vm7 = vcmp.eq.f32.partialorder %v2430_v33, 8.507059e+37 }
0x2b70   :  { %v4501_v1 = vpop.eup %4500 }
0x2b71   :  { %v2422_v23 = vmul.f32 %v4501_v1, %v2420_v61  ;;  %vm2427_vm2 = vweird.f32 %v4501_v1  ;;  %v4503_v5 = vpop.eup %4502 }
0x2b72   :  { %vm2428_vm6 = vmor %vm2426_vm5, %vm2427_vm2 }
0x2b73   :  { %v2423_v6 = vsub.f32 1.0, %v2422_v23 }
0x2b75   :  { %v2424_v41 = vmul.f32 %v4501_v1, %v2423_v6 }
0x2b77   :  { %v2425_v39 = vadd.f32 %v4501_v1, %v2424_v41 }
0x2b79   :  { %v2429_v24 = vsel %vm2428_vm6, %v4501_v1, %v2425_v39 }
0x2b7a   :  { %v2434_v28 = vsel %vm2431_vm7, %v2433_v9, %v2429_v24 }
0x2b7b   :  { %v2436_v29 = vsel %vm5150_vm4, %v4503_v5, %v2434_v28 }
0x2b7c   :  { %2443 = vrot.lane.b32.xlu1 %v2436_v29, %s4928_s24  ;;  %v2441_v23 = vmul.f32 %v2439_v52, %v2436_v29 }
0x2bee   :  { %v2444_v58 = vpop.permute.xlu1 %2443 }
0x2bef   :  { %v2446_v59 = vmul.f32 %v2444_v58, %v2436_v29 }
0x2bf1   :  { %2448 = vrot.lane.b32.xlu0 %v2446_v59, %s4929_s23 }
0x2c63   :  { %v2449_v6 = vpop.permute.xlu0 %2448 }
0x2c64   :  { %v2451_v41 = vadd.f32 %v2449_v6, %v2441_v23 }
0x2c66   :  { %4504 = vtanh.f32 %v2451_v41  ;;  %2464 = vrot.lane.b32.xlu0 %v2451_v41, %s4930_s6 }
0x2c6c   :  { %v4505_v39 = vpop.eup %4504 }
0x2c6d   :  { %2454 = vrot.lane.b32.xlu1 %v4505_v39, %s4928_s24 }
0x2cd8   :  { %v2465_v40 = vpop.permute.xlu0 %2464 }
0x2cd9   :  { %v5934_v33 = vsel %vm243_vm1, %v2465_v40, %v5833_v46  ;;  %v2536_v46 = vpop.f32.mrf.mxu1 }
0x2cdf   :  { %v2455_v61 = vpop.permute.xlu1 %2454 }
0x2ce0   :  { %v2457_v1 = vmul.f32 %v2455_v61, %v2436_v29 }
0x2ce2   :  { %2459 = vrot.lane.b32.xlu2 %v2457_v1, %s4929_s23 }
0x2cea   :  { %2562 = vrot.lane.b32.xlu2 %v5934_v33, %s4929_s23 }
0x2d3c   :  { %v5938_v9 = vpop.permute.xlu2 %2459 }
0x2d3d   :  { %v5944_v24 = vsel %vm243_vm1, %v5938_v9, %v5854_v51  ;;  %v2468_v12 = vsel %vm243_vm1, %v5938_v9, 0.0 }
0x2d3e   :  { %4264 = vmatmul.msk.f32.vlgmr.msrb.gmra.mxu3 %vm280_vm0, %v5944_v24 }
0x2d3f   :  { %2776 = vmatpush.msrb.mxu3 %v5573_v47 }
0x2d41   :  { %2777 = vmatpush.msrb.mxu3 %v5577_v48 }
0x2d43   :  { %2778 = vmatpush.msrb.mxu3 %v5581_v49  ;;  %v2512_v49 = vpop.f32.mrf.mxu0 }
0x2d45   :  { %2779 = vmatpush.msrb.mxu3 %v5585_v50 }
0x2d46   :  { %4269 = vmatmul.msk.f32.vlgmr.msra.gmra.mxu3 %vm280_vm0, %v5908_v45 }
0x2d47   :  { %2973 = vmatpush.msra.mxu3 %v5862_v43 }
0x2d49   :  { %2974 = vmatpush.msra.mxu3 %v5872_v38 }
0x2d4b   :  { %2975 = vmatpush.msra.mxu3 %v5875_v13 }
0x2d4d   :  { %2976 = vmatpush.msra.mxu3 %v5878_v18 }
0x2d4e   :  { %4274 = vmatmul.msk.f32.vlgmr.msrb.gmra.mxu3 %vm280_vm0, %v5437_v27 }
0x2d4f   :  { %3111 = vmatpush.msrb.mxu3 %v5837_v34 }
0x2d51   :  { %3112 = vmatpush.msrb.mxu3 %v5840_v36 }
0x2d53   :  { %3113 = vmatpush.msrb.mxu3 %v5843_v11 }
0x2d55   :  { %3114 = vmatpush.msrb.mxu3 %v5848_v16 }
0x2dc1   :  { %v2489_v47 = vpop.f32.mrf.mxu3 }
0x2dc2   :  { %v2490_v48 = vadd.f32 %v5680_v25, %v2489_v47 }
0x2dc4   :  { %v2515_v50 = vadd.f32 %v2512_v49, %v2490_v48 }
0x2dc6   :  { %v2539_v51 = vadd.f32 %v2536_v46, %v2515_v50  ;;  %v4221_v50 = vmul.f32 -1.442695, %v5448_v31 }
0x2dc8   :  { %v4267_v45 = vmul.f32 -1.442695, %v2539_v51 }
0x2dca   :  { %4506 = vpow2.f32 %v4267_v45 }
0x2dd0   :  { %v4507_v5 = vpop.eup %4506 }
0x2dd1   :  { %v2544_v28 = vadd.f32 1.0, %v4507_v5 }
0x2dd3   :  { %4508 = vrcp.f32 %v2544_v28  ;;  %v2556_v52 = vand.u32 2147483648, %v2544_v28  ;;  %v2554_v6 = vand.u32 2147483647, %v2544_v28  ;;  %vm2550_vm15 = vweird.f32 %v2544_v28 }
0x2dd4   :  { %4510 = vtanh.f32 %v2539_v51 }
0x2dd5   :  { %v2557_v39 = vor.u32 1.1754944e-38, %v2556_v52  ;;  %vm2555_vm5 = vcmp.eq.f32.partialorder %v2554_v6, 8.507059e+37  ;;  %4512 = vpow2.f32 %v4221_v50 }
0x2dd9   :  { %v4509_v29 = vpop.eup %4508 }
0x2dda   :  { %v2546_v58 = vmul.f32 %v4509_v29, %v2544_v28  ;;  %vm2551_vm14 = vweird.f32 %v4509_v29  ;;  %v4511_v1 = vpop.eup %4510  ;;  %v2563_v28 = vpop.permute.xlu2 %2562 }
0x2ddb   :  { %vm2552_vm2 = vmor %vm2550_vm15, %vm2551_vm14  ;;  %v4513_v46 = vpop.eup %4512 }
0x2ddc   :  { %v2547_v59 = vsub.f32 1.0, %v2546_v58  ;;  %v1027_v51 = vadd.f32 1.0, %v4513_v46 }
0x2dde   :  { %v2548_v23 = vmul.f32 %v4509_v29, %v2547_v59  ;;  %4514 = vrcp.f32 %v1027_v51  ;;  %vm1033_vm7 = vweird.f32 %v1027_v51 }
0x2de0   :  { %v2549_v41 = vadd.f32 %v4509_v29, %v2548_v23 }
0x2de2   :  { %v2553_v61 = vsel %vm2552_vm2, %v4509_v29, %v2549_v41  ;;  %v1039_v41 = vand.u32 2147483648, %v1027_v51 }
0x2de3   :  { %v2558_v40 = vsel %vm2555_vm5, %v2557_v39, %v2553_v61 }
0x2de4   :  { %v2560_v47 = vsel %vm5150_vm4, %v4511_v1, %v2558_v40  ;;  %v4515_v45 = vpop.eup %4514  ;;  %v1040_v1 = vor.u32 1.1754944e-38, %v1039_v41  ;;  %v2636_v41 = vpop.f32.mrf.mxu3 }
0x2de5   :  { %2567 = vrot.lane.b32.xlu1 %v2560_v47, %s4928_s24  ;;  %v1029_v5 = vmul.f32 %v4515_v45, %v1027_v51  ;;  %v2565_v29 = vmul.f32 %v2563_v28, %v2560_v47  ;;  %vm1034_vm6 = vweird.f32 %v4515_v45 }
0x2de6   :  { %vm1035_vm14 = vmor %vm1033_vm7, %vm1034_vm6 }
0x2de7   :  { %v1030_v58 = vsub.f32 1.0, %v1029_v5 }
0x2de9   :  { %v1031_v23 = vmul.f32 %v4515_v45, %v1030_v58 }
0x2deb   :  { %v1032_v6 = vadd.f32 %v4515_v45, %v1031_v23 }
0x2ded   :  { %v1036_v61 = vsel %vm1035_vm14, %v4515_v45, %v1032_v6 }
0x2e57   :  { %v2568_v48 = vpop.permute.xlu1 %2567 }
0x2e58   :  { %v2570_v49 = vmul.f32 %v2568_v48, %v2560_v47 }
0x2e5a   :  { %2572 = vrot.lane.b32.xlu0 %v2570_v49, %s4929_s23 }
0x2e62   :  { %971 = vrot.lane.b32.xlu0 %v5404_v8, %s4930_s6  ;;  %v1037_v8 = vand.u32 2147483647, %v1027_v51 }
0x2e64   :  { %vm1038_vm15 = vcmp.eq.f32.partialorder %v1037_v8, 8.507059e+37  ;;  %v2660_v8 = vpop.f32.mrf.mxu0 }
0x2e65   :  { %v1041_v40 = vsel %vm1038_vm15, %v1040_v1, %v1036_v61 }
0x2ecc   :  { %v2573_v59 = vpop.permute.xlu0 %2572 }
0x2ecd   :  { %v2575_v52 = vadd.f32 %v2573_v59, %v2565_v29 }
0x2ecf   :  { %4516 = vtanh.f32 %v2575_v52 }
0x2ed0   :  { %4518 = vtanh.f32 %v5448_v31 }
0x2ed4   :  { %v972_v50 = vpop.permute.xlu0 %971 }
0x2ed5   :  { %v4517_v39 = vpop.eup %4516  ;;  %v974_v46 = vsel %vm249_vm12, %v972_v50, %v5351_v57 }
0x2ed6   :  { %2578 = vrot.lane.b32.xlu1 %v4517_v39, %s4928_s24  ;;  %v4519_v48 = vpop.eup %4518 }
0x2ed7   :  { %v1043_v49 = vsel %vm5150_vm4, %v4519_v48, %v1041_v40 }
0x2ede   :  { %1050 = vrot.lane.b32.xlu1 %v1043_v49, %s4928_s24 }
0x2ee6   :  { %1045 = vrot.lane.b32.xlu1 %v974_v46, %s4929_s23 }
0x2f48   :  { %v2579_v31 = vpop.permute.xlu1 %2578 }
0x2f49   :  { %v2581_v51 = vmul.f32 %v2579_v31, %v2560_v47 }
0x2f4b   :  { %2583 = vrot.lane.b32.xlu2 %v2581_v51, %s4929_s23 }
0x2f50   :  { %v1051_v45 = vpop.permute.xlu1 %1050 }
0x2f51   :  { %v1053_v5 = vmul.f32 %v1051_v45, %v1043_v49 }
0x2f53   :  { %2588 = vrot.lane.b32.xlu2 %v2575_v52, %s4930_s6 }
0x2f58   :  { %v1046_v47 = vpop.permute.xlu1 %1045 }
0x2f59   :  { %v1048_v58 = vmul.f32 %v1046_v47, %v1043_v49 }
0x2f5b   :  { %1055 = vrot.lane.b32.xlu2 %v1053_v5, %s4929_s23 }
0x2fa5   :  { %v5984_v28 = vpop.permute.xlu2 %2583 }
0x2fa6   :  { %v5990_v29 = vsel %vm246_vm9, %v5984_v28, %v5944_v24 }
0x2fa7   :  { %4268 = vmatmul.msk.f32.vlgmr.msra.gmra.mxu2 %vm280_vm0, %v5990_v29 }
0x2fa8   :  { %2901 = vmatpush.msra.mxu2 %v5892_v15 }
0x2faa   :  { %2902 = vmatpush.msra.mxu2 %v5896_v19 }
0x2fac   :  { %2903 = vmatpush.msra.mxu2 %v5899_v10 }
0x2fad   :  { %v2589_v57 = vpop.permute.xlu2 %2588 }
0x2fae   :  { %2904 = vmatpush.msra.mxu2 %v5902_v62 }
0x2fb5   :  { %v1056_v59 = vpop.permute.xlu2 %1055 }
0x2fb6   :  { %v1058_v52 = vadd.f32 %v1056_v59, %v1048_v58 }
0x2fb8   :  { %4520 = vtanh.f32 %v1058_v52 }
0x2fbe   :  { %v4521_v23 = vpop.eup %4520 }
0x2fbf   :  { %1061 = vrot.lane.b32.xlu2 %v4521_v23, %s4928_s24 }
0x302a   :  { %v2613_v24 = vpop.f32.mrf.mxu2 }
0x302b   :  { %v2614_v6 = vadd.f32 %v5680_v25, %v2613_v24  ;;  %v6006_v24 = vsel %vm246_vm9, %v2589_v57, %v5934_v33 }
0x302d   :  { %v2639_v39 = vadd.f32 %v2636_v41, %v2614_v6 }
0x302f   :  { %v2663_v61 = vadd.f32 %v2660_v8, %v2639_v39  ;;  %v1062_v39 = vpop.permute.xlu2 %1061 }
0x3030   :  { %v1064_v8 = vmul.f32 %v1062_v39, %v1043_v49 }
0x3031   :  { %v4271_v1 = vmul.f32 -1.442695, %v2663_v61 }
0x3033   :  { %4522 = vpow2.f32 %v4271_v1 }
0x3039   :  { %v4523_v40 = vpop.eup %4522 }
0x303a   :  { %v2668_v48 = vadd.f32 1.0, %v4523_v40 }
0x303c   :  { %4524 = vrcp.f32 %v2668_v48  ;;  %v2680_v51 = vand.u32 2147483648, %v2668_v48  ;;  %v2678_v5 = vand.u32 2147483647, %v2668_v48  ;;  %vm2674_vm5 = vweird.f32 %v2668_v48 }
0x303d   :  { %4526 = vtanh.f32 %v2663_v61 }
0x303e   :  { %v2681_v25 = vor.u32 1.1754944e-38, %v2680_v51  ;;  %vm2679_vm7 = vcmp.eq.f32.partialorder %v2678_v5, 8.507059e+37  ;;  %v2865_v5 = vpop.f32.mrf.mxu0 }
0x3042   :  { %v4525_v50 = vpop.eup %4524 }
0x3043   :  { %v2670_v46 = vmul.f32 %v4525_v50, %v2668_v48  ;;  %vm2675_vm2 = vweird.f32 %v4525_v50  ;;  %v4527_v59 = vpop.eup %4526 }
0x3044   :  { %vm2676_vm6 = vmor %vm2674_vm5, %vm2675_vm2 }
0x3045   :  { %v2671_v31 = vsub.f32 1.0, %v2670_v46 }
0x3047   :  { %v2672_v45 = vmul.f32 %v4525_v50, %v2671_v31 }
0x3049   :  { %v2673_v47 = vadd.f32 %v4525_v50, %v2672_v45  ;;  %v6059_v45 = vld [vmem:[%s6470_s13] ss:$0 sm:$0xff] }
0x304b   :  { %v2677_v58 = vsel %vm2676_vm6, %v4525_v50, %v2673_v47 }
0x304c   :  { %v2682_v52 = vsel %vm2679_vm7, %v2681_v25, %v2677_v58 }
0x304d   :  { %v2684_v23 = vsel %vm5150_vm4, %v4527_v59, %v2682_v52 }
0x304e   :  { %2691 = vrot.lane.b32.xlu0 %v2684_v23, %s4928_s24 }
0x3056   :  { %2686 = vrot.lane.b32.xlu0 %v6006_v24, %s4929_s23 }
0x30c0   :  { %v2692_v6 = vpop.permute.xlu0 %2691 }
0x30c1   :  { %v2694_v41 = vmul.f32 %v2692_v6, %v2684_v23 }
0x30c3   :  { %2696 = vrot.lane.b32.xlu1 %v2694_v41, %s4929_s23 }
0x30c8   :  { %v2687_v61 = vpop.permute.xlu0 %2686 }
0x30c9   :  { %v2689_v1 = vmul.f32 %v2687_v61, %v2684_v23 }
0x30cb   :  { %1066 = vrot.lane.b32.xlu1 %v1064_v8, %s4929_s23 }
0x3135   :  { %v2697_v40 = vpop.permute.xlu1 %2696 }
0x3136   :  { %v6012_v48 = vadd.f32 %v2697_v40, %v2689_v1 }
0x3138   :  { %4528 = vtanh.f32 %v6012_v48 }
0x313d   :  { %v1067_v33 = vpop.permute.xlu1 %1066 }
0x313e   :  { %v4529_v57 = vpop.eup %4528  ;;  %v1069_v50 = vsel %vm252_vm11, %v1067_v33, 0.0 }
0x313f   :  { %2702 = vrot.lane.b32.xlu0 %v4529_v57, %s4928_s24  ;;  %4273 = vmatmul.msk.f32.vlgmr.msrb.gmra.mxu2 %vm280_vm0, %v1069_v50 }
0x3140   :  { %3091 = vmatpush.msrb.mxu2 %v5862_v43 }
0x3142   :  { %3092 = vmatpush.msrb.mxu2 %v5872_v38 }
0x3144   :  { %3093 = vmatpush.msrb.mxu2 %v5875_v13 }
0x3146   :  { %3094 = vmatpush.msrb.mxu2 %v5878_v18 }
0x3147   :  { %4277 = vmatmul.msk.f32.vlgmr.msra.gmra.mxu2 %vm280_vm0, %v5437_v27 }
0x3148   :  { %3229 = vmatpush.msra.mxu2 %v5837_v34 }
0x314a   :  { %3230 = vmatpush.msra.mxu2 %v5840_v36 }
0x314c   :  { %3231 = vmatpush.msra.mxu2 %v5843_v11 }
0x314e   :  { %3232 = vmatpush.msra.mxu2 %v5848_v16 }
0x31b1   :  { %v2703_v49 = vpop.permute.xlu0 %2702 }
0x31b2   :  { %v2705_v46 = vmul.f32 %v2703_v49, %v2684_v23 }
0x31b4   :  { %2707 = vrot.lane.b32.xlu2 %v2705_v46, %s4929_s23 }
0x31c2   :  { %v6052_v27 = vpop.f32.mrf.mxu2 }
0x31ca   :  { %v2906_v58 = vpop.f32.mrf.mxu2 }
0x320e   :  { %v6030_v31 = vpop.permute.xlu2 %2707 }
0x320f   :  { %v2710_v51 = vsel %vm249_vm12, %v6030_v31, %v5990_v29  ;;  %v2716_v55 = vsel %vm249_vm12, %v6030_v31, 0.0 }
0x3210   :  { %4272 = vmatmul.msk.f32.vlgmr.msrb.gmra.mxu1 %vm280_vm0, %v2710_v51 }
0x3211   :  { %3014 = vmatpush.msrb.mxu1 %v5892_v15 }
0x3213   :  { %3015 = vmatpush.msrb.mxu1 %v5896_v19 }
0x3215   :  { %3016 = vmatpush.msrb.mxu1 %v5899_v10 }
0x3217   :  { %3017 = vmatpush.msrb.mxu1 %v5902_v62 }
0x3218   :  { %4276 = vmatmul.msk.f32.vlgmr.msra.gmra.mxu1 %vm280_vm0, %v1069_v50 }
0x3219   :  { %3209 = vmatpush.msra.mxu1 %v5862_v43 }
0x321b   :  { %3210 = vmatpush.msra.mxu1 %v5872_v38 }
0x321d   :  { %3211 = vmatpush.msra.mxu1 %v5875_v13 }
0x321f   :  { %3212 = vmatpush.msra.mxu1 %v5878_v18 }
0x3220   :  { %4281 = vmatmul.msk.f32.vlgmr.msrb.gmra.mxu1 %vm280_vm0, %v5884_v63  ;;  %v2866_v63 = vadd.f32 %v6059_v45, %v2865_v5 }
0x3221   :  { %3347 = vmatpush.msrb.mxu1 %v5837_v34 }
0x3223   :  { %3348 = vmatpush.msrb.mxu1 %v5840_v36 }
0x3225   :  { %3349 = vmatpush.msrb.mxu1 %v5843_v11 }
0x3227   :  { %3350 = vmatpush.msrb.mxu1 %v5848_v16 }
0x328d   :  { %v6054_v29 = vpop.f32.mrf.mxu1 }
0x3295   :  { %v2885_v47 = vpop.f32.mrf.mxu1 }
0x3296   :  { %v2888_v25 = vadd.f32 %v2885_v47, %v2866_v63 }
0x3298   :  { %v2909_v59 = vadd.f32 %v2906_v58, %v2888_v25 }
0x329a   :  { %v4278_v52 = vmul.f32 -1.442695, %v2909_v59 }
0x329c   :  { %4530 = vpow2.f32 %v4278_v52 }
0x32a2   :  { %v4531_v23 = vpop.eup %4530 }
0x32a3   :  { %v2914_v6 = vadd.f32 1.0, %v4531_v23 }
0x32a5   :  { %4532 = vrcp.f32 %v2914_v6  ;;  %v2926_v61 = vand.u32 2147483648, %v2914_v6  ;;  %v2924_v40 = vand.u32 2147483647, %v2914_v6  ;;  %vm2920_vm15 = vweird.f32 %v2914_v6 }
0x32a6   :  { %4534 = vtanh.f32 %v2909_v59 }
0x32a7   :  { %v2927_v57 = vor.u32 1.1754944e-38, %v2926_v61  ;;  %vm2925_vm5 = vcmp.eq.f32.partialorder %v2924_v40, 8.507059e+37  ;;  %v2998_v40 = vpop.f32.mrf.mxu0 }
0x32ab   :  { %v4533_v41 = vpop.eup %4532 }
0x32ac   :  { %v2916_v39 = vmul.f32 %v4533_v41, %v2914_v6  ;;  %vm2921_vm14 = vweird.f32 %v4533_v41  ;;  %v4535_v49 = vpop.eup %4534 }
0x32ad   :  { %vm2922_vm2 = vmor %vm2920_vm15, %vm2921_vm14 }
0x32ae   :  { %v2917_v8 = vsub.f32 1.0, %v2916_v39 }
0x32b0   :  { %v2918_v1 = vmul.f32 %v4533_v41, %v2917_v8 }
0x32b2   :  { %v2919_v33 = vadd.f32 %v4533_v41, %v2918_v1 }
0x32b4   :  { %v2923_v50 = vsel %vm2922_vm2, %v4533_v41, %v2919_v33 }
0x32b5   :  { %v2928_v46 = vsel %vm2925_vm5, %v2927_v57, %v2923_v50  ;;  %v3019_v57 = vpop.f32.mrf.mxu1 }
0x32b6   :  { %v2930_v51 = vsel %vm5150_vm4, %v4535_v49, %v2928_v46 }
0x32b7   :  { %2933 = vrot.lane.b32.xlu0 %v2930_v51, %s4928_s24  ;;  %v2931_v47 = vmul.f32 0.0, %v2930_v51 }
0x3329   :  { %v2934_v5 = vpop.permute.xlu0 %2933 }
0x332a   :  { %v2936_v63 = vmul.f32 %v2934_v5, %v2930_v51 }
0x332c   :  { %2938 = vrot.lane.b32.xlu1 %v2936_v63, %s4929_s23 }
0x339e   :  { %v2939_v25 = vpop.permute.xlu1 %2938 }
0x339f   :  { %v2941_v58 = vadd.f32 %v2939_v25, %v2931_v47 }
0x33a1   :  { %4536 = vtanh.f32 %v2941_v58  ;;  %2954 = vrot.lane.b32.xlu1 %v2941_v58, %s4930_s6 }
0x33a7   :  { %v4537_v59 = vpop.eup %4536 }
0x33a8   :  { %2944 = vrot.lane.b32.xlu2 %v4537_v59, %s4928_s24 }
0x3402   :  { %v2945_v52 = vpop.permute.xlu2 %2944 }
0x3403   :  { %v2947_v23 = vmul.f32 %v2945_v52, %v2930_v51 }
0x3405   :  { %2949 = vrot.lane.b32.xlu0 %v2947_v23, %s4929_s23 }
0x3413   :  { %v2955_v6 = vpop.permute.xlu1 %2954 }
0x3414   :  { %v6071_v41 = vsel %vm252_vm11, %v2955_v6, 0.0 }
0x3415   :  { %3045 = vrot.lane.b32.xlu0 %v6071_v41, %s4929_s23 }
0x3477   :  { %v2950_v39 = vpop.permute.xlu0 %2949 }
0x3478   :  { %v6077_v8 = vsel %vm252_vm11, %v2950_v39, 0.0 }
0x3479   :  { %4279 = vmatmul.msk.f32.vlgmr.msra.gmra.mxu3 %vm280_vm0, %v6077_v8 }
0x347a   :  { %3250 = vmatpush.msra.mxu3 %v5892_v15 }
0x347c   :  { %3251 = vmatpush.msra.mxu3 %v5896_v19 }
0x347e   :  { %3252 = vmatpush.msra.mxu3 %v5899_v10 }
0x3480   :  { %3253 = vmatpush.msra.mxu3 %v5902_v62 }
0x3481   :  { %4284 = vmatmul.msk.f32.vlgmr.msrb.gmra.mxu3 %vm280_vm0, %v5867_v37  ;;  %v6097_v37 = vpop.f32.mrf.mxu3 }
0x3482   :  { %3445 = vmatpush.msrb.mxu3 %v5862_v43 }
0x3484   :  { %3446 = vmatpush.msrb.mxu3 %v5872_v38 }
0x3486   :  { %3447 = vmatpush.msrb.mxu3 %v5875_v13 }
0x3488   :  { %3448 = vmatpush.msrb.mxu3 %v5878_v18 }
0x3489   :  { %4289 = vmatmul.msk.f32.vlgmr.msra.gmra.mxu3 %vm280_vm0, %v5770_v2 }
0x348a   :  { %3583 = vmatpush.msra.mxu3 %v5837_v34 }
0x348c   :  { %3584 = vmatpush.msra.mxu3 %v5840_v36 }
0x348e   :  { %3585 = vmatpush.msra.mxu3 %v5843_v11 }
0x3490   :  { %3586 = vmatpush.msra.mxu3 %v5848_v16 }
0x34fc   :  { %v2978_v61 = vpop.f32.mrf.mxu3 }
0x34fd   :  { %v2979_v1 = vadd.f32 %v6059_v45, %v2978_v61 }
0x34ff   :  { %v3001_v33 = vadd.f32 %v2998_v40, %v2979_v1 }
0x3501   :  { %v3022_v50 = vadd.f32 %v3019_v57, %v3001_v33  ;;  %v3046_v33 = vpop.permute.xlu0 %3045 }
0x3503   :  { %v4282_v49 = vmul.f32 -1.442695, %v3022_v50 }
0x3505   :  { %4538 = vpow2.f32 %v4282_v49 }
0x350b   :  { %v4539_v2 = vpop.eup %4538 }
0x350c   :  { %v3027_v46 = vadd.f32 1.0, %v4539_v2 }
0x350e   :  { %4540 = vrcp.f32 %v3027_v46  ;;  %v3039_v47 = vand.u32 2147483648, %v3027_v46  ;;  %v3037_v58 = vand.u32 2147483647, %v3027_v46  ;;  %vm3033_vm7 = vweird.f32 %v3027_v46 }
0x350f   :  { %4542 = vtanh.f32 %v3022_v50 }
0x3510   :  { %v3040_v52 = vor.u32 1.1754944e-38, %v3039_v47  ;;  %vm3038_vm15 = vcmp.eq.f32.partialorder %v3037_v58, 8.507059e+37  ;;  %v3116_v58 = vpop.f32.mrf.mxu3 }
0x3514   :  { %v4541_v51 = vpop.eup %4540 }
0x3515   :  { %v3029_v5 = vmul.f32 %v4541_v51, %v3027_v46  ;;  %vm3034_vm6 = vweird.f32 %v4541_v51  ;;  %v4543_v6 = vpop.eup %4542 }
0x3516   :  { %vm3035_vm14 = vmor %vm3033_vm7, %vm3034_vm6 }
0x3517   :  { %v3030_v63 = vsub.f32 1.0, %v3029_v5 }
0x3519   :  { %v3031_v25 = vmul.f32 %v4541_v51, %v3030_v63 }
0x351b   :  { %v3032_v59 = vadd.f32 %v4541_v51, %v3031_v25 }
0x351d   :  { %v3036_v23 = vsel %vm3035_vm14, %v4541_v51, %v3032_v59 }
0x351e   :  { %v3041_v39 = vsel %vm3038_vm15, %v3040_v52, %v3036_v23  ;;  %v3137_v52 = vpop.f32.mrf.mxu0 }
0x351f   :  { %v3043_v61 = vsel %vm5150_vm4, %v4543_v6, %v3041_v39 }
0x3520   :  { %3050 = vrot.lane.b32.xlu2 %v3043_v61, %s4928_s24  ;;  %v3048_v57 = vmul.f32 %v3046_v33, %v3043_v61 }
0x357a   :  { %v3051_v1 = vpop.permute.xlu2 %3050 }
0x357b   :  { %v3053_v40 = vmul.f32 %v3051_v1, %v3043_v61 }
0x357d   :  { %3055 = vrot.lane.b32.xlu1 %v3053_v40, %s4929_s23 }
0x35ef   :  { %v3056_v50 = vpop.permute.xlu1 %3055 }
0x35f0   :  { %v3058_v49 = vadd.f32 %v3056_v50, %v3048_v57 }
0x35f2   :  { %4544 = vtanh.f32 %v3058_v49  ;;  %3071 = vrot.lane.b32.xlu1 %v3058_v49, %s4930_s6 }
0x35f8   :  { %v4545_v2 = vpop.eup %4544 }
0x35f9   :  { %3061 = vrot.lane.b32.xlu2 %v4545_v2, %s4928_s24 }
0x3653   :  { %v3062_v46 = vpop.permute.xlu2 %3061 }
0x3654   :  { %v3064_v51 = vmul.f32 %v3062_v46, %v3043_v61 }
0x3656   :  { %3066 = vrot.lane.b32.xlu0 %v3064_v51, %s4929_s23 }
0x3664   :  { %v3072_v5 = vpop.permute.xlu1 %3071 }
0x3665   :  { %v6110_v63 = vsel %vm249_vm12, %v3072_v5, %v6071_v41 }
0x3666   :  { %3163 = vrot.lane.b32.xlu0 %v6110_v63, %s4929_s23 }
0x36c8   :  { %v6114_v47 = vpop.permute.xlu0 %3066 }
0x36c9   :  { %v6120_v25 = vsel %vm249_vm12, %v6114_v47, %v6077_v8  ;;  %v3075_v7 = vsel %vm249_vm12, %v6114_v47, 0.0 }
0x36ca   :  { %4283 = vmatmul.msk.f32.vlgmr.msrb.gmra.mxu2 %vm280_vm0, %v6120_v25 }
0x36cb   :  { %3368 = vmatpush.msrb.mxu2 %v5892_v15 }
0x36cd   :  { %3369 = vmatpush.msrb.mxu2 %v5896_v19 }
0x36cf   :  { %3370 = vmatpush.msrb.mxu2 %v5899_v10 }
0x36d1   :  { %3371 = vmatpush.msrb.mxu2 %v5902_v62 }
0x36d2   :  { %4288 = vmatmul.msk.f32.vlgmr.msra.gmra.mxu2 %vm280_vm0, %v5807_v54 }
0x36d3   :  { %3563 = vmatpush.msra.mxu2 %v5862_v43 }
0x36d5   :  { %3564 = vmatpush.msra.mxu2 %v5872_v38 }
0x36d7   :  { %3565 = vmatpush.msra.mxu2 %v5875_v13 }
0x36d8   :  { %v3164_v5 = vpop.permute.xlu0 %3163 }
0x36d9   :  { %3566 = vmatpush.msra.mxu2 %v5878_v18 }
0x36da   :  { %4293 = vmatmul.msk.f32.vlgmr.msrb.gmra.mxu2 %vm280_vm0, %v5719_v3 }
0x36db   :  { %3701 = vmatpush.msrb.mxu2 %v5837_v34 }
0x36dd   :  { %3702 = vmatpush.msrb.mxu2 %v5840_v36 }
0x36df   :  { %3703 = vmatpush.msrb.mxu2 %v5843_v11 }
0x36e1   :  { %3704 = vmatpush.msrb.mxu2 %v5848_v16 }
0x374d   :  { %v3096_v54 = vpop.f32.mrf.mxu2 }
0x374e   :  { %v3097_v41 = vadd.f32 %v6059_v45, %v3096_v54 }
0x3750   :  { %v3119_v59 = vadd.f32 %v3116_v58, %v3097_v41 }
0x3752   :  { %v3140_v23 = vadd.f32 %v3137_v52, %v3119_v59 }
0x3754   :  { %v4286_v6 = vmul.f32 -1.442695, %v3140_v23 }
0x3756   :  { %4546 = vpow2.f32 %v4286_v6 }
0x375c   :  { %v4547_v39 = vpop.eup %4546 }
0x375d   :  { %v3145_v61 = vadd.f32 1.0, %v4547_v39 }
0x375f   :  { %4548 = vrcp.f32 %v3145_v61  ;;  %v3157_v36 = vand.u32 2147483648, %v3145_v61  ;;  %v3155_v16 = vand.u32 2147483647, %v3145_v61  ;;  %vm3151_vm5 = vweird.f32 %v3145_v61 }
0x3760   :  { %4550 = vtanh.f32 %v3140_v23 }
0x3761   :  { %v3158_v33 = vor.u32 1.1754944e-38, %v3157_v36  ;;  %vm3156_vm7 = vcmp.eq.f32.partialorder %v3155_v16, 8.507059e+37  ;;  %v3255_v36 = vpop.f32.mrf.mxu3 }
0x3765   :  { %v4549_v3 = vpop.eup %4548 }
0x3766   :  { %v3147_v34 = vmul.f32 %v4549_v3, %v3145_v61  ;;  %vm3152_vm2 = vweird.f32 %v4549_v3  ;;  %v4551_v50 = vpop.eup %4550 }
0x3767   :  { %vm3153_vm6 = vmor %vm3151_vm5, %vm3152_vm2 }
0x3768   :  { %v3148_v1 = vsub.f32 1.0, %v3147_v34  ;;  %v3234_v34 = vpop.f32.mrf.mxu2 }
0x376a   :  { %v3149_v11 = vmul.f32 %v4549_v3, %v3148_v1 }
0x376c   :  { %v3150_v40 = vadd.f32 %v4549_v3, %v3149_v11 }
0x376e   :  { %v3154_v57 = vsel %vm3153_vm6, %v4549_v3, %v3150_v40 }
0x376f   :  { %v3159_v49 = vsel %vm3156_vm7, %v3158_v33, %v3154_v57 }
0x3770   :  { %v3161_v2 = vsel %vm5150_vm4, %v4551_v50, %v3159_v49 }
0x3771   :  { %3168 = vrot.lane.b32.xlu2 %v3161_v2, %s4928_s24  ;;  %v3166_v54 = vmul.f32 %v3164_v5, %v3161_v2 }
0x37cb   :  { %v3169_v46 = vpop.permute.xlu2 %3168 }
0x37cc   :  { %v3171_v51 = vmul.f32 %v3169_v46, %v3161_v2 }
0x37ce   :  { %3173 = vrot.lane.b32.xlu1 %v3171_v51, %s4929_s23 }
0x3840   :  { %v3174_v41 = vpop.permute.xlu1 %3173 }
0x3841   :  { %v3176_v58 = vadd.f32 %v3174_v41, %v3166_v54 }
0x3843   :  { %4552 = vtanh.f32 %v3176_v58  ;;  %3189 = vrot.lane.b32.xlu1 %v3176_v58, %s4930_s6 }
0x3849   :  { %v4553_v59 = vpop.eup %4552 }
0x384a   :  { %3179 = vrot.lane.b32.xlu2 %v4553_v59, %s4928_s24 }
0x38a4   :  { %v3180_v52 = vpop.permute.xlu2 %3179 }
0x38a5   :  { %v3182_v23 = vmul.f32 %v3180_v52, %v3161_v2 }
0x38a7   :  { %3184 = vrot.lane.b32.xlu0 %v3182_v23, %s4929_s23 }
0x38b5   :  { %v3190_v6 = vpop.permute.xlu1 %3189 }
0x38b6   :  { %v3192_v39 = vsel %vm246_vm9, %v3190_v6, %v6110_v63 }
0x38b7   :  { %3281 = vrot.lane.b32.xlu0 %v3192_v39, %s4929_s23 }
0x3919   :  { %v6152_v61 = vpop.permute.xlu0 %3184 }
0x391a   :  { %v3187_v3 = vsel %vm246_vm9, %v6152_v61, %v6120_v25 }
0x391b   :  { %4287 = vmatmul.msk.f32.vlgmr.msra.gmra.mxu1 %vm280_vm0, %v3187_v3 }
0x391c   :  { %3486 = vmatpush.msra.mxu1 %v5892_v15 }
0x391e   :  { %3487 = vmatpush.msra.mxu1 %v5896_v19 }
0x3920   :  { %3488 = vmatpush.msra.mxu1 %v5899_v10 }
0x3922   :  { %3489 = vmatpush.msra.mxu1 %v5902_v62 }
0x3923   :  { %4292 = vmatmul.msk.f32.vlgmr.msrb.gmra.mxu1 %vm280_vm0, %v5759_v30 }
0x3924   :  { %3681 = vmatpush.msrb.mxu1 %v5862_v43 }
0x3926   :  { %3682 = vmatpush.msrb.mxu1 %v5872_v38 }
0x3928   :  { %3683 = vmatpush.msrb.mxu1 %v5875_v13 }
0x3929   :  { %v3282_v41 = vpop.permute.xlu0 %3281 }
0x392a   :  { %3684 = vmatpush.msrb.mxu1 %v5878_v18 }
0x392b   :  { %4297 = vmatmul.msk.f32.vlgmr.msra.gmra.mxu1 %vm280_vm0, %v5621_v56 }
0x3998   :  { %v3214_v63 = vpop.f32.mrf.mxu1 }
0x3999   :  { %v3215_v25 = vadd.f32 %v6059_v45, %v3214_v63 }
0x399b   :  { %v3237_v1 = vadd.f32 %v3234_v34, %v3215_v25 }
0x399d   :  { %v3258_v11 = vadd.f32 %v3255_v36, %v3237_v1 }
0x399f   :  { %v4290_v16 = vmul.f32 -1.442695, %v3258_v11 }
0x39a1   :  { %4554 = vpow2.f32 %v4290_v16 }
0x39a7   :  { %v4555_v30 = vpop.eup %4554 }
0x39a8   :  { %v3263_v43 = vadd.f32 1.0, %v4555_v30  ;;  %v3373_v30 = vpop.f32.mrf.mxu2 }
0x39aa   :  { %4556 = vrcp.f32 %v3263_v43  ;;  %v3275_v18 = vand.u32 2147483648, %v3263_v43  ;;  %v3273_v56 = vand.u32 2147483647, %v3263_v43  ;;  %vm3269_vm15 = vweird.f32 %v3263_v43 }
0x39ab   :  { %4558 = vtanh.f32 %v3258_v11  ;;  %v3352_v11 = vpop.f32.mrf.mxu1 }
0x39ac   :  { %v3276_v50 = vor.u32 1.1754944e-38, %v3275_v18  ;;  %vm3274_vm5 = vcmp.eq.f32.partialorder %v3273_v56, 8.507059e+37 }
0x39b0   :  { %v4557_v38 = vpop.eup %4556 }
0x39b1   :  { %v3265_v40 = vmul.f32 %v4557_v38, %v3263_v43  ;;  %vm3270_vm14 = vweird.f32 %v4557_v38  ;;  %v4559_v2 = vpop.eup %4558 }
0x39b2   :  { %vm3271_vm2 = vmor %vm3269_vm15, %vm3270_vm14 }
0x39b3   :  { %v3266_v13 = vsub.f32 1.0, %v3265_v40 }
0x39b5   :  { %v3267_v33 = vmul.f32 %v4557_v38, %v3266_v13 }
0x39b7   :  { %v3268_v57 = vadd.f32 %v4557_v38, %v3267_v33 }
0x39b9   :  { %v3272_v49 = vsel %vm3271_vm2, %v4557_v38, %v3268_v57 }
0x39ba   :  { %v3277_v46 = vsel %vm3274_vm5, %v3276_v50, %v3272_v49 }
0x39bb   :  { %v3279_v51 = vsel %vm5150_vm4, %v4559_v2, %v3277_v46 }
0x39bc   :  { %3286 = vrot.lane.b32.xlu2 %v3279_v51, %s4928_s24  ;;  %v3284_v58 = vmul.f32 %v3282_v41, %v3279_v51 }
0x3a16   :  { %v3287_v5 = vpop.permute.xlu2 %3286 }
0x3a17   :  { %v3289_v54 = vmul.f32 %v3287_v5, %v3279_v51 }
0x3a19   :  { %3291 = vrot.lane.b32.xlu1 %v3289_v54, %s4929_s23 }
0x3a8b   :  { %v3292_v59 = vpop.permute.xlu1 %3291 }
0x3a8c   :  { %v3294_v52 = vadd.f32 %v3292_v59, %v3284_v58 }
0x3a8e   :  { %4560 = vtanh.f32 %v3294_v52  ;;  %3307 = vrot.lane.b32.xlu1 %v3294_v52, %s4930_s6 }
0x3a94   :  { %v4561_v23 = vpop.eup %4560 }
0x3a95   :  { %3297 = vrot.lane.b32.xlu2 %v4561_v23, %s4928_s24 }
0x3aef   :  { %v3298_v6 = vpop.permute.xlu2 %3297 }
0x3af0   :  { %v3300_v63 = vmul.f32 %v3298_v6, %v3279_v51 }
0x3af2   :  { %3302 = vrot.lane.b32.xlu0 %v3300_v63, %s4929_s23  ;;  %v6213_v63 = vld [vmem:[#allocation19 + $0x18] sm:$0xff] }
0x3af3   :  { %3822 = vmatpush.msra.mxu1 %v6213_v63 }
0x3b00   :  { %v3308_v25 = vpop.permute.xlu1 %3307 }
0x3b01   :  { %v3310_v34 = vsel %vm243_vm1, %v3308_v25, %v3192_v39  ;;  %v6216_v25 = vld [vmem:[#allocation19 + $0x10] sm:$0xff] }
0x3b02   :  { %3399 = vrot.lane.b32.xlu0 %v3310_v34, %s4929_s23  ;;  %3823 = vmatpush.msra.mxu1 %v6216_v25 }
0x3b64   :  { %v6182_v1 = vpop.permute.xlu0 %3302 }
0x3b65   :  { %v6187_v36 = vsel %vm243_vm1, %v6182_v1, %v3187_v3  ;;  %v3311_v0 = vsel %vm243_vm1, %v6182_v1, 0.0 }
0x3b66   :  { %4291 = vmatmul.msk.f32.vlgmr.msrb.gmra.mxu0 %vm280_vm0, %v6187_v36 }
0x3b67   :  { %3604 = vmatpush.msrb.mxu0 %v5892_v15 }
0x3b69   :  { %3605 = vmatpush.msrb.mxu0 %v5896_v19 }
0x3b6b   :  { %3606 = vmatpush.msrb.mxu0 %v5899_v10 }
0x3b6d   :  { %3607 = vmatpush.msrb.mxu0 %v5902_v62 }
0x3b6e   :  { %4296 = vmatmul.msk.f32.vlgmr.msra.gmra.mxu0 %vm280_vm0, %v5708_v14 }
0x3b74   :  { %v3400_v51 = vpop.permute.xlu0 %3399 }
0x3b76   :  { %4301 = vmatmul.msk.f32.vlgmr.msrb.gmra.mxu0 %vm280_vm0, %v5647_v21 }
0x3be3   :  { %v3332_v39 = vpop.f32.mrf.mxu0 }
0x3be4   :  { %v3333_v3 = vadd.f32 %v6059_v45, %v3332_v39  ;;  %v6219_v39 = vld [vmem:[#allocation19 + $0x8] sm:$0xff] }
0x3be5   :  { %3824 = vmatpush.msra.mxu1 %v6219_v39 }
0x3be6   :  { %v3355_v16 = vadd.f32 %v3352_v11, %v3333_v3  ;;  %v6222_v3 = vld [vmem:[#allocation19] sm:$0xff] }
0x3be7   :  { %3825 = vmatpush.msra.mxu1 %v6222_v3 }
0x3be8   :  { %v3376_v43 = vadd.f32 %v3373_v30, %v3355_v16  ;;  %v4607_v16 = vld [vmem:[#allocation16 + $0x38] sm:$0xff]  ;;  %v4608_v30 = vld [vmem:[#allocation16 + $0x30] sm:$0xff] }
0x3bea   :  { %v4294_v15 = vmul.f32 -1.442695, %v3376_v43 }
0x3bec   :  { %4562 = vpow2.f32 %v4294_v15  ;;  %v4610_v15 = vld [vmem:[#allocation16 + $0x20] sm:$0xff] }
0x3bf2   :  { %v4563_v19 = vpop.eup %4562 }
0x3bf3   :  { %v3381_v38 = vadd.f32 1.0, %v4563_v19  ;;  %v3470_v19 = vpop.f32.mrf.mxu0 }
0x3bf5   :  { %4564 = vrcp.f32 %v3381_v38  ;;  %v3393_v14 = vand.u32 2147483648, %v3381_v38  ;;  %v3391_v21 = vand.u32 2147483647, %v3381_v38  ;;  %vm3387_vm7 = vweird.f32 %v3381_v38 }
0x3bf6   :  { %4566 = vtanh.f32 %v3376_v43  ;;  %v4609_v43 = vld [vmem:[#allocation16 + $0x28] sm:$0xff] }
0x3bf7   :  { %v3394_v33 = vor.u32 1.1754944e-38, %v3393_v14  ;;  %vm3392_vm15 = vcmp.eq.f32.partialorder %v3391_v21, 8.507059e+37 }
0x3bfb   :  { %v4565_v10 = vpop.eup %4564 }
0x3bfc   :  { %v3383_v62 = vmul.f32 %v4565_v10, %v3381_v38  ;;  %vm3388_vm6 = vweird.f32 %v4565_v10  ;;  %v4567_v57 = vpop.eup %4566 }
0x3bfd   :  { %vm3389_vm14 = vmor %vm3387_vm7, %vm3388_vm6 }
0x3bfe   :  { %v3384_v40 = vsub.f32 1.0, %v3383_v62 }
0x3c00   :  { %v3385_v13 = vmul.f32 %v4565_v10, %v3384_v40 }
0x3c02   :  { %v3386_v18 = vadd.f32 %v4565_v10, %v3385_v13 }
0x3c04   :  { %v3390_v56 = vsel %vm3389_vm14, %v4565_v10, %v3386_v18  ;;  %v3491_v10 = vpop.f32.mrf.mxu1 }
0x3c05   :  { %v3395_v50 = vsel %vm3392_vm15, %v3394_v33, %v3390_v56 }
0x3c06   :  { %v3397_v49 = vsel %vm5150_vm4, %v4567_v57, %v3395_v50 }
0x3c07   :  { %3404 = vrot.lane.b32.xlu2 %v3397_v49, %s4928_s24  ;;  %v3402_v5 = vmul.f32 %v3400_v51, %v3397_v49 }
0x3c61   :  { %v3405_v2 = vpop.permute.xlu2 %3404 }
0x3c62   :  { %v3407_v46 = vmul.f32 %v3405_v2, %v3397_v49 }
0x3c64   :  { %3409 = vrot.lane.b32.xlu1 %v3407_v46, %s4929_s23 }
0x3cd6   :  { %v3410_v54 = vpop.permute.xlu1 %3409 }
0x3cd7   :  { %v3412_v41 = vadd.f32 %v3410_v54, %v3402_v5 }
0x3cd9   :  { %4568 = vtanh.f32 %v3412_v41  ;;  %3425 = vrot.lane.b32.xlu1 %v3412_v41, %s4930_s6 }
0x3cdf   :  { %v4569_v58 = vpop.eup %4568 }
0x3ce0   :  { %3415 = vrot.lane.b32.xlu2 %v4569_v58, %s4928_s24 }
0x3d3a   :  { %v3416_v59 = vpop.permute.xlu2 %3415 }
0x3d3b   :  { %v3418_v52 = vmul.f32 %v3416_v59, %v3397_v49 }
0x3d3d   :  { %3420 = vrot.lane.b32.xlu0 %v3418_v52, %s4929_s23 }
0x3d4b   :  { %v3426_v23 = vpop.permute.xlu1 %3425 }
0x3d4c   :  { %v6209_v6 = vsel %vm240_vm10, %v3426_v23, %v3310_v34 }
0x3d4d   :  { %3517 = vrot.lane.b32.xlu0 %v6209_v6, %s4929_s23 }
0x3daf   :  { %v6225_v34 = vpop.permute.xlu0 %3420 }
0x3db0   :  { %v6231_v11 = vsel %vm240_vm10, %v6225_v34, %v6187_v36 }
0x3db1   :  { %4295 = vmatmul.msk.f32.vlgmr.msrb.gmra.mxu3 %vm280_vm0, %v6231_v11 }
0x3db2   :  { %3722 = vmatpush.msrb.mxu3 %v4607_v16 }
0x3db4   :  { %3723 = vmatpush.msrb.mxu3 %v4608_v30 }
0x3db6   :  { %3724 = vmatpush.msrb.mxu3 %v4609_v43 }
0x3db8   :  { %3725 = vmatpush.msrb.mxu3 %v4610_v15 }
0x3db9   :  { %4300 = vmatmul.msk.f32.vlgmr.msra.gmra.mxu3 %vm280_vm0, %v5611_v44  ;;  %v2096_v44 = vsel %vm234_vm13, %v5743_v22, 0.0  ;;  %v2592_v22 = vsel %vm246_vm9, %v5984_v28, 0.0 }
0x3dba   :  { %3873 = vmatpush.msra.mxu3 %v6213_v63 }
0x3dbc   :  { %3874 = vmatpush.msra.mxu3 %v6216_v25 }
0x3dbe   :  { %3875 = vmatpush.msra.mxu3 %v6219_v39 }
0x3dbf   :  { %v3518_v58 = vpop.permute.xlu0 %3517 }
0x3dc0   :  { %3876 = vmatpush.msra.mxu3 %v6222_v3 }
0x3dc1   :  { %4305 = vmatmul.msk.f32.vlgmr.msrb.gmra.mxu3 %vm280_vm0, %v5669_v17  ;;  %v2344_v17 = vsel %vm240_vm10, %v5846_v53, 0.0 }
0x3dc2   :  { %3971 = vmatpush.msrb.mxu3 %v6213_v63 }
0x3dc4   :  { %3972 = vmatpush.msrb.mxu3 %v6216_v25 }
0x3dc6   :  { %3973 = vmatpush.msrb.mxu3 %v6219_v39 }
0x3dc8   :  { %3974 = vmatpush.msrb.mxu3 %v6222_v3 }
0x3dc9   :  { %4310 = vmatmul.msk.f32.vlgmr.msra.gmra.mxu3 %vm280_vm0, %v2096_v44 }
0x3dca   :  { %4069 = vmatpush.msra.mxu3 %v6213_v63 }
0x3dcc   :  { %4070 = vmatpush.msra.mxu3 %v6216_v25 }
0x3dce   :  { %4071 = vmatpush.msra.mxu3 %v6219_v39 }
0x3dd0   :  { %4072 = vmatpush.msra.mxu3 %v6222_v3 }
0x3dd1   :  { %4314 = vmatmul.msk.f32.vlgmr.msrb.gmra.mxu3 %vm280_vm0, %v2344_v17 }
0x3dd2   :  { %4164 = vmatpush.msrb.mxu3 %v6213_v63 }
0x3dd4   :  { %4165 = vmatpush.msrb.mxu3 %v6216_v25 }
0x3dd6   :  { %4166 = vmatpush.msrb.mxu3 %v6219_v39 }
0x3dd8   :  { %4167 = vmatpush.msrb.mxu3 %v6222_v3 }
0x3dd9   :  { %4318 = vmatmul.msk.f32.vlgmr.msra.gmra.mxu3 %vm280_vm0, %v2592_v22 }
0x3e34   :  { %v3450_v36 = vpop.f32.mrf.mxu3 }
0x3e35   :  { %v3451_v53 = vadd.f32 %v6059_v45, %v3450_v36 }
0x3e37   :  { %v3473_v38 = vadd.f32 %v3470_v19, %v3451_v53 }
0x3e39   :  { %v3494_v62 = vadd.f32 %v3491_v10, %v3473_v38  ;;  %v3609_v38 = vpop.f32.mrf.mxu0 }
0x3e3b   :  { %v4298_v40 = vmul.f32 -1.442695, %v3494_v62 }
0x3e3c   :  { %v3588_v53 = vpop.f32.mrf.mxu3 }
0x3e3d   :  { %4570 = vpow2.f32 %v4298_v40 }
0x3e43   :  { %v4571_v14 = vpop.eup %4570 }
0x3e44   :  { %v3499_v13 = vadd.f32 1.0, %v4571_v14 }
0x3e46   :  { %4572 = vrcp.f32 %v3499_v13  ;;  %v3511_v28 = vand.u32 2147483648, %v3499_v13  ;;  %v3509_v57 = vand.u32 2147483647, %v3499_v13  ;;  %vm3505_vm5 = vweird.f32 %v3499_v13 }
0x3e47   :  { %4574 = vtanh.f32 %v3494_v62 }
0x3e48   :  { %v3512_v49 = vor.u32 1.1754944e-38, %v3511_v28  ;;  %vm3510_vm7 = vcmp.eq.f32.partialorder %v3509_v57, 8.507059e+37 }
0x3e4c   :  { %v4573_v21 = vpop.eup %4572 }
0x3e4d   :  { %v3501_v18 = vmul.f32 %v4573_v21, %v3499_v13  ;;  %vm3506_vm2 = vweird.f32 %v4573_v21  ;;  %v4575_v46 = vpop.eup %4574 }
0x3e4e   :  { %vm3507_vm6 = vmor %vm3505_vm5, %vm3506_vm2 }
0x3e4f   :  { %v3502_v33 = vsub.f32 1.0, %v3501_v18 }
0x3e51   :  { %v3503_v56 = vmul.f32 %v4573_v21, %v3502_v33 }
0x3e53   :  { %v3504_v50 = vadd.f32 %v4573_v21, %v3503_v56 }
0x3e55   :  { %v3508_v2 = vsel %vm3507_vm6, %v4573_v21, %v3504_v50 }
0x3e56   :  { %v3513_v51 = vsel %vm3510_vm7, %v3512_v49, %v3508_v2 }
0x3e57   :  { %v3515_v5 = vsel %vm5150_vm4, %v4575_v46, %v3513_v51 }
0x3e58   :  { %3522 = vrot.lane.b32.xlu2 %v3515_v5, %s4928_s24  ;;  %v3520_v59 = vmul.f32 %v3518_v58, %v3515_v5 }
0x3eb2   :  { %v3523_v54 = vpop.permute.xlu2 %3522 }
0x3eb3   :  { %v3525_v41 = vmul.f32 %v3523_v54, %v3515_v5 }
0x3eb5   :  { %3527 = vrot.lane.b32.xlu1 %v3525_v41, %s4929_s23 }
0x3f27   :  { %v3528_v52 = vpop.permute.xlu1 %3527 }
0x3f28   :  { %v3530_v23 = vadd.f32 %v3528_v52, %v3520_v59 }
0x3f2a   :  { %4576 = vtanh.f32 %v3530_v23  ;;  %3543 = vrot.lane.b32.xlu1 %v3530_v23, %s4930_s6 }
0x3f30   :  { %v4577_v16 = vpop.eup %4576 }
0x3f31   :  { %3533 = vrot.lane.b32.xlu2 %v4577_v16, %s4928_s24 }
0x3f8b   :  { %v3534_v30 = vpop.permute.xlu2 %3533 }
0x3f8c   :  { %v3536_v43 = vmul.f32 %v3534_v30, %v3515_v5  ;;  %v4611_v5 = vld [vmem:[%s6467_s10] ss:$0 sm:$0xff] }
0x3f8d   :  { %v2738_v54 = vadd.f32 %v4611_v5, %v6054_v29 }
0x3f8e   :  { %3538 = vrot.lane.b32.xlu0 %v3536_v43, %s4929_s23 }
0x3f8f   :  { %v2763_v41 = vadd.f32 %v6052_v27, %v2738_v54 }
0x3f91   :  { %v2784_v58 = vadd.f32 %v6097_v37, %v2763_v41 }
0x3f93   :  { %v4275_v59 = vmul.f32 -1.442695, %v2784_v58 }
0x3f9c   :  { %v3544_v15 = vpop.permute.xlu1 %3543 }
0x3f9d   :  { %v6278_v44 = vsel %vm237_vm3, %v3544_v15, %v6209_v6 }
0x3f9e   :  { %3635 = vrot.lane.b32.xlu0 %v6278_v44, %s4929_s23 }
0x4000   :  { %v6282_v17 = vpop.permute.xlu0 %3538 }
0x4001   :  { %v6288_v22 = vsel %vm237_vm3, %v6282_v17, %v6231_v11 }
0x4002   :  { %4299 = vmatmul.msk.f32.vlgmr.msra.gmra.mxu2 %vm280_vm0, %v6288_v22 }
0x400a   :  { %4304 = vmatmul.msk.f32.vlgmr.msrb.gmra.mxu2 %vm280_vm0, %v5238_v60 }
0x4085   :  { %v3568_v36 = vpop.f32.mrf.mxu2 }
0x4086   :  { %v3569_v6 = vadd.f32 %v6059_v45, %v3568_v36  ;;  %v3636_v36 = vpop.permute.xlu0 %3635 }
0x4088   :  { %v3591_v19 = vadd.f32 %v3588_v53, %v3569_v6 }
0x408a   :  { %v3612_v10 = vadd.f32 %v3609_v38, %v3591_v19 }
0x408c   :  { %v4302_v62 = vmul.f32 -1.442695, %v3612_v10 }
0x408e   :  { %4578 = vpow2.f32 %v4302_v62 }
0x4094   :  { %v4579_v40 = vpop.eup %4578 }
0x4095   :  { %v3617_v14 = vadd.f32 1.0, %v4579_v40 }
0x4097   :  { %4580 = vrcp.f32 %v3617_v14  ;;  %v3629_v18 = vand.u32 2147483648, %v3617_v14  ;;  %v3627_v60 = vand.u32 2147483647, %v3617_v14  ;;  %vm3623_vm15 = vweird.f32 %v3617_v14 }
0x4098   :  { %4582 = vtanh.f32 %v3612_v10 }
0x4099   :  { %v3630_v56 = vor.u32 1.1754944e-38, %v3629_v18  ;;  %vm3628_vm5 = vcmp.eq.f32.partialorder %v3627_v60, 8.507059e+37  ;;  %4584 = vpow2.f32 %v4275_v59  ;;  %v6319_v18 = vld [vmem:[#allocation19 + $0x28] sm:$0xff] }
0x409d   :  { %v4581_v11 = vpop.eup %4580 }
0x409e   :  { %v3619_v13 = vmul.f32 %v4581_v11, %v3617_v14  ;;  %vm3624_vm14 = vweird.f32 %v4581_v11  ;;  %v4583_v50 = vpop.eup %4582 }
0x409f   :  { %vm3625_vm2 = vmor %vm3623_vm15, %vm3624_vm14  ;;  %v4585_v52 = vpop.eup %4584 }
0x40a0   :  { %v3620_v21 = vsub.f32 1.0, %v3619_v13  ;;  %v2789_v23 = vadd.f32 1.0, %v4585_v52  ;;  %v6313_v13 = vld [vmem:[#allocation19 + $0x38] sm:$0xff] }
0x40a1   :  { %3850 = vmatpush.msra.mxu2 %v6313_v13  ;;  %3802 = vmatpush.msra.mxu0 %v6313_v13 }
0x40a2   :  { %v3621_v33 = vmul.f32 %v4581_v11, %v3620_v21  ;;  %4586 = vrcp.f32 %v2789_v23  ;;  %v2801_v29 = vand.u32 2147483648, %v2789_v23  ;;  %vm2795_vm7 = vweird.f32 %v2789_v23  ;;  %v6315_v21 = vld [vmem:[#allocation19 + $0x30] sm:$0xff] }
0x40a3   :  { %4588 = vtanh.f32 %v2784_v58  ;;  %v2799_v27 = vand.u32 2147483647, %v2789_v23  ;;  %3851 = vmatpush.msra.mxu2 %v6315_v21  ;;  %3803 = vmatpush.msra.mxu0 %v6315_v21 }
0x40a4   :  { %v3622_v28 = vadd.f32 %v4581_v11, %v3621_v33  ;;  %v2802_v10 = vor.u32 1.1754944e-38, %v2801_v29 }
0x40a5   :  { %vm2800_vm15 = vcmp.eq.f32.partialorder %v2799_v27, 8.507059e+37  ;;  %3852 = vmatpush.msra.mxu2 %v6319_v18  ;;  %3804 = vmatpush.msra.mxu0 %v6319_v18 }
0x40a6   :  { %v3626_v57 = vsel %vm3625_vm2, %v4581_v11, %v3622_v28  ;;  %v6328_v28 = vld [vmem:[#allocation19 + $0x20] sm:$0xff] }
0x40a7   :  { %v3631_v49 = vsel %vm3628_vm5, %v3630_v56, %v3626_v57  ;;  %3853 = vmatpush.msra.mxu2 %v6328_v28  ;;  %3805 = vmatpush.msra.mxu0 %v6328_v28 }
0x40a8   :  { %v3633_v2 = vsel %vm5150_vm4, %v4583_v50, %v3631_v49  ;;  %v4587_v16 = vpop.eup %4586  ;;  %v3429_v50 = vsel %vm240_vm10, %v6225_v34, 0.0 }
0x40a9   :  { %3640 = vrot.lane.b32.xlu2 %v3633_v2, %s4928_s24  ;;  %v2791_v30 = vmul.f32 %v4587_v16, %v2789_v23  ;;  %v3638_v6 = vmul.f32 %v3636_v36, %v3633_v2  ;;  %vm2796_vm6 = vweird.f32 %v4587_v16  ;;  %v4589_v40 = vpop.eup %4588  ;;  %3948 = vmatpush.msrb.mxu2 %v6313_v13 }
0x40aa   :  { %vm2797_vm14 = vmor %vm2795_vm7, %vm2796_vm6  ;;  %3899 = vmatpush.msrb.mxu0 %v6313_v13 }
0x40ab   :  { %v2792_v43 = vsub.f32 1.0, %v2791_v30  ;;  %3949 = vmatpush.msrb.mxu2 %v6315_v21 }
0x40ac   :  { %3900 = vmatpush.msrb.mxu0 %v6315_v21 }
0x40ad   :  { %v2793_v15 = vmul.f32 %v4587_v16, %v2792_v43  ;;  %3950 = vmatpush.msrb.mxu2 %v6319_v18 }
0x40ae   :  { %3901 = vmatpush.msrb.mxu0 %v6319_v18 }
0x40af   :  { %v2794_v19 = vadd.f32 %v4587_v16, %v2793_v15  ;;  %3951 = vmatpush.msrb.mxu2 %v6328_v28 }
0x40b0   :  { %3902 = vmatpush.msrb.mxu0 %v6328_v28 }
0x40b1   :  { %v2798_v37 = vsel %vm2797_vm14, %v4587_v16, %v2794_v19 }
0x40b2   :  { %v2803_v62 = vsel %vm2800_vm15, %v2802_v10, %v2798_v37 }
0x40b3   :  { %v6309_v11 = vsel %vm5150_vm4, %v4589_v40, %v2803_v62 }
0x4103   :  { %v3641_v46 = vpop.permute.xlu2 %3640 }
0x4104   :  { %v3643_v51 = vmul.f32 %v3641_v46, %v3633_v2 }
0x4106   :  { %3645 = vrot.lane.b32.xlu1 %v3643_v51, %s4929_s23 }
0x4178   :  { %v3646_v53 = vpop.permute.xlu1 %3645 }
0x4179   :  { %v3648_v38 = vadd.f32 %v3646_v53, %v3638_v6 }
0x417b   :  { %4590 = vtanh.f32 %v3648_v38  ;;  %3661 = vrot.lane.b32.xlu1 %v3648_v38, %s4930_s6 }
0x4181   :  { %v4591_v14 = vpop.eup %4590 }
0x4182   :  { %3651 = vrot.lane.b32.xlu2 %v4591_v14, %s4928_s24 }
0x4183   :  { %2812 = vrot.lane.b32.xlu1 %v6309_v11, %s4928_s24 }
0x41dc   :  { %v3652_v33 = vpop.permute.xlu2 %3651 }
0x41dd   :  { %v3654_v60 = vmul.f32 %v3652_v33, %v3633_v2 }
0x41df   :  { %3656 = vrot.lane.b32.xlu0 %v3654_v60, %s4929_s23 }
0x41e7   :  { %2712 = vrot.lane.b32.xlu0 %v6012_v48, %s4930_s6 }
0x41ed   :  { %v3662_v62 = vpop.permute.xlu1 %3661 }
0x41ee   :  { %v3664_v40 = vsel %vm234_vm13, %v3662_v62, %v6278_v44 }
0x41f5   :  { %v2813_v14 = vpop.permute.xlu1 %2812 }
0x41f6   :  { %v2815_v33 = vmul.f32 %v2813_v14, %v6309_v11 }
0x4251   :  { %v3657_v48 = vpop.permute.xlu0 %3656 }
0x4252   :  { %v3659_v56 = vsel %vm234_vm13, %v3657_v48, %v6288_v22  ;;  %v3665_v57 = vsel %vm234_vm13, %v3657_v48, 0.0 }
0x4253   :  { %4303 = vmatmul.msk.f32.vlgmr.msrb.gmra.mxu1 %vm280_vm0, %v3659_v56  ;;  %4309 = vmatmul.msk.f32.vlgmr.msra.gmra.mxu2 %vm280_vm0, %v3665_v57 }
0x4254   :  { %3922 = vmatpush.msrb.mxu1 %v6213_v63  ;;  %4046 = vmatpush.msra.mxu2 %v6313_v13 }
0x4256   :  { %3923 = vmatpush.msrb.mxu1 %v6216_v25  ;;  %4047 = vmatpush.msra.mxu2 %v6315_v21 }
0x4258   :  { %3924 = vmatpush.msrb.mxu1 %v6219_v39  ;;  %4048 = vmatpush.msra.mxu2 %v6319_v18 }
0x4259   :  { %v2713_v22 = vpop.permute.xlu0 %2712 }
0x425a   :  { %v2715_v49 = vsel %vm249_vm12, %v2713_v22, %v6006_v24  ;;  %3925 = vmatpush.msrb.mxu1 %v6222_v3  ;;  %4049 = vmatpush.msra.mxu2 %v6328_v28  ;;  %v3727_v24 = vpop.f32.mrf.mxu3 }
0x425b   :  { %4308 = vmatmul.msk.f32.vlgmr.msra.gmra.mxu1 %vm280_vm0, %v5698_v35  ;;  %4313 = vmatmul.msk.f32.vlgmr.msrb.gmra.mxu2 %vm280_vm0, %v3429_v50  ;;  %v3193_v35 = vsel %vm246_vm9, %v6152_v61, 0.0  ;;  %v3706_v61 = vpop.f32.mrf.mxu2 }
0x425c   :  { %2807 = vrot.lane.b32.xlu1 %v2715_v49, %s4929_s23  ;;  %4020 = vmatpush.msra.mxu1 %v6213_v63 }
0x425d   :  { %4141 = vmatpush.msrb.mxu2 %v6313_v13 }
0x425e   :  { %4021 = vmatpush.msra.mxu1 %v6216_v25 }
0x425f   :  { %4142 = vmatpush.msrb.mxu2 %v6315_v21 }
0x4260   :  { %4022 = vmatpush.msra.mxu1 %v6219_v39 }
0x4261   :  { %4143 = vmatpush.msrb.mxu2 %v6319_v18 }
0x4262   :  { %4023 = vmatpush.msra.mxu1 %v6222_v3 }
0x4263   :  { %4312 = vmatmul.msk.f32.vlgmr.msrb.gmra.mxu1 %vm280_vm0, %v2220_v42  ;;  %4317 = vmatmul.msk.f32.vlgmr.msra.gmra.mxu2 %vm280_vm0, %v3193_v35 }
0x4264   :  { %4144 = vmatpush.msrb.mxu2 %v6328_v28  ;;  %4118 = vmatpush.msrb.mxu1 %v6213_v63 }
0x4266   :  { %4119 = vmatpush.msrb.mxu1 %v6216_v25 }
0x4268   :  { %4120 = vmatpush.msrb.mxu1 %v6219_v39  ;;  %v3878_v39 = vpop.f32.mrf.mxu3 }
0x426a   :  { %4121 = vmatpush.msrb.mxu1 %v6222_v3  ;;  %v6399_v3 = vld [vmem:[%s6472_s15] ss:$0 sm:$0xff]  ;;  %s4931_s15 = smov [#allocation20]  }
0x426b   :  { %4316 = vmatmul.msk.f32.vlgmr.msra.gmra.mxu1 %vm280_vm0, %v2468_v12  ;;  %4321 = vmatmul.msk.f32.vlgmr.msrb.gmra.mxu2 %vm280_vm0, %v6077_v8  ;;  %s4179_s17 = sshll.u32 %s4931_s15, 4  ;;  %s4180_s17 = int_to_ptr.vmem [resolvable:$true] %s4179_s17 }
0x4270   :  { %v3976_v51 = vpop.f32.mrf.mxu3 }
0x4273   :  { %4320 = vmatmul.msk.f32.vlgmr.msrb.gmra.mxu1 %vm280_vm0, %v2716_v55 }
0x4278   :  { %v4074_v59 = vpop.f32.mrf.mxu3 }
0x42ce   :  { %v2808_v56 = vpop.permute.xlu1 %2807 }
0x42cf   :  { %v2810_v57 = vmul.f32 %v2808_v56, %v6309_v11 }
0x42d0   :  { %v3686_v63 = vpop.f32.mrf.mxu1 }
0x42d1   :  { %v3687_v25 = vadd.f32 %v6059_v45, %v3686_v63 }
0x42d3   :  { %v3709_v9 = vadd.f32 %v3706_v61, %v3687_v25 }
0x42d5   :  { %v3730_v34 = vadd.f32 %v3727_v24, %v3709_v9 }
0x42d6   :  { %v3855_v8 = vpop.f32.mrf.mxu2 }
0x42d7   :  { %v4306_v2 = vmul.f32 -1.442695, %v3730_v34  ;;  %v3879_v46 = vadd.f32 %v3878_v39, %v3855_v8 }
0x42d9   :  { %4592 = vpow2.f32 %v4306_v2  ;;  %v3881_v31 = vadd.f32 %v6399_v3, %v3879_v46 }
0x42db   :  { %3883 = vst [vmem:[#allocation20 + $0x8] sm:$0xff] %v3881_v31 }
0x42de   :  { %v3953_v5 = vpop.f32.mrf.mxu2 }
0x42df   :  { %v4593_v54 = vpop.eup %4592  ;;  %v3977_v41 = vadd.f32 %v3976_v51, %v3953_v5 }
0x42e0   :  { %v3735_v45 = vadd.f32 1.0, %v4593_v54 }
0x42e1   :  { %v3979_v58 = vadd.f32 %v6399_v3, %v3977_v41 }
0x42e2   :  { %4594 = vrcp.f32 %v3735_v45  ;;  %v3747_v36 = vand.u32 2147483648, %v3735_v45  ;;  %v3745_v53 = vand.u32 2147483647, %v3735_v45  ;;  %vm3741_vm9 = vweird.f32 %v3735_v45 }
0x42e3   :  { %3981 = vst [vmem:[#allocation20 + $0x18] sm:$0xff] %v3979_v58  ;;  %4596 = vtanh.f32 %v3730_v34 }
0x42e4   :  { %v3748_v38 = vor.u32 1.1754944e-38, %v3747_v36  ;;  %vm3746_vm5 = vcmp.eq.f32.partialorder %v3745_v53, 8.507059e+37 }
0x42e6   :  { %v4051_v52 = vpop.f32.mrf.mxu2 }
0x42e7   :  { %v4075_v23 = vadd.f32 %v4074_v59, %v4051_v52 }
0x42e8   :  { %v4595_v16 = vpop.eup %4594 }
0x42e9   :  { %v4077_v30 = vadd.f32 %v6399_v3, %v4075_v23  ;;  %v3737_v43 = vmul.f32 %v4595_v16, %v3735_v45  ;;  %vm3742_vm10 = vweird.f32 %v4595_v16  ;;  %v4597_v27 = vpop.eup %4596 }
0x42ea   :  { %vm3743_vm2 = vmor %vm3741_vm9, %vm3742_vm10 }
0x42eb   :  { %4079 = vst [vmem:[#allocation20 + $0x28] sm:$0xff] %v4077_v30  ;;  %v3738_v15 = vsub.f32 1.0, %v3737_v43 }
0x42ed   :  { %v3739_v6 = vmul.f32 %v4595_v16, %v3738_v15 }
0x42ef   :  { %v3740_v19 = vadd.f32 %v4595_v16, %v3739_v6 }
0x42f1   :  { %v3744_v29 = vsel %vm3743_vm2, %v4595_v16, %v3740_v19 }
0x42f2   :  { %v3749_v37 = vsel %vm3746_vm5, %v3748_v38, %v3744_v29 }
0x42f3   :  { %v3751_v10 = vsel %vm5150_vm4, %v4597_v27, %v3749_v37 }
0x42f4   :  { %3758 = vrot.lane.b32.xlu2 %v3751_v10, %s4928_s24 }
0x42fc   :  { %3753 = vrot.lane.b32.xlu2 %v3664_v40, %s4929_s23 }
0x4304   :  { %2817 = vrot.lane.b32.xlu2 %v2815_v33, %s4929_s23 }
0x434e   :  { %v3759_v60 = vpop.permute.xlu2 %3758 }
0x434f   :  { %v3761_v48 = vmul.f32 %v3759_v60, %v3751_v10 }
0x4351   :  { %3763 = vrot.lane.b32.xlu0 %v3761_v48, %s4929_s23 }
0x4356   :  { %v3754_v26 = vpop.permute.xlu2 %3753 }
0x4357   :  { %v3756_v44 = vmul.f32 %v3754_v26, %v3751_v10 }
0x435e   :  { %v2818_v22 = vpop.permute.xlu2 %2817 }
0x435f   :  { %v2820_v50 = vadd.f32 %v2818_v22, %v2810_v57 }
0x4361   :  { %4598 = vtanh.f32 %v2820_v50 }
0x4367   :  { %v4599_v32 = vpop.eup %4598 }
0x4368   :  { %2823 = vrot.lane.b32.xlu1 %v4599_v32, %s4928_s24 }
0x43c3   :  { %v3764_v49 = vpop.permute.xlu0 %3763 }
0x43c4   :  { %v3766_v42 = vadd.f32 %v3764_v49, %v3756_v44 }
0x43c6   :  { %4600 = vtanh.f32 %v3766_v42 }
0x43cc   :  { %v4601_v35 = vpop.eup %4600 }
0x43cd   :  { %3769 = vrot.lane.b32.xlu0 %v4601_v35, %s4928_s24 }
0x43da   :  { %v2824_v12 = vpop.permute.xlu1 %2823 }
0x43db   :  { %v2826_v55 = vmul.f32 %v2824_v12, %v6309_v11  ;;  %v3547_v11 = vsel %vm237_vm3, %v6282_v17, 0.0  ;;  %v4146_v17 = vpop.f32.mrf.mxu2 }
0x43dd   :  { %2828 = vrot.lane.b32.xlu0 %v2826_v55, %s4929_s23 }
0x443f   :  { %v3770_v24 = vpop.permute.xlu0 %3769 }
0x4440   :  { %v3772_v61 = vmul.f32 %v3770_v24, %v3751_v10 }
0x4442   :  { %3774 = vrot.lane.b32.xlu2 %v3772_v61, %s4929_s23 }
0x444f   :  { %v2829_v63 = vpop.permute.xlu0 %2828 }
0x4450   :  { %v2831_v25 = vsel %vm252_vm11, %v2829_v63, 0.0 }
0x4451   :  { %4322 = vmatmul.msk.f32.vlgmr.msrb.gmra.mxu3 %vm280_vm0, %v2831_v25 }
0x449c   :  { %v3775_v39 = vpop.permute.xlu2 %3774 }
0x449d   :  { %v3777_v34 = vsel %vm231_vm8, %v3775_v39, 0.0 }
0x449e   :  { %4307 = vmatmul.msk.f32.vlgmr.msra.gmra.mxu0 %vm280_vm0, %v3777_v34 }
0x449f   :  { %3997 = vmatpush.msra.mxu0 %v6313_v13 }
0x44a1   :  { %3998 = vmatpush.msra.mxu0 %v6315_v21 }
0x44a3   :  { %3999 = vmatpush.msra.mxu0 %v6319_v18 }
0x44a5   :  { %4000 = vmatpush.msra.mxu0 %v6328_v28 }
0x44a6   :  { %4311 = vmatmul.msk.f32.vlgmr.msrb.gmra.mxu0 %vm280_vm0, %v3547_v11 }
0x44a7   :  { %4095 = vmatpush.msrb.mxu0 %v6313_v13 }
0x44a9   :  { %4096 = vmatpush.msrb.mxu0 %v6315_v21 }
0x44ab   :  { %4097 = vmatpush.msrb.mxu0 %v6319_v18  ;;  %v3827_v18 = vpop.f32.mrf.mxu1 }
0x44ad   :  { %4098 = vmatpush.msrb.mxu0 %v6328_v28 }
0x44ae   :  { %4315 = vmatmul.msk.f32.vlgmr.msra.gmra.mxu0 %vm280_vm0, %v3311_v0 }
0x44b3   :  { %v3927_v28 = vpop.f32.mrf.mxu1 }
0x44b6   :  { %4319 = vmatmul.msk.f32.vlgmr.msrb.gmra.mxu0 %vm280_vm0, %v3075_v7 }
0x44bb   :  { %v4025_v47 = vpop.f32.mrf.mxu1 }
0x44c3   :  { %v4123_v41 = vpop.f32.mrf.mxu1 }
0x44d4   :  { %v4169_v13 = vpop.f32.mrf.mxu3 }
0x44d5   :  { %v4170_v8 = vadd.f32 %v4169_v13, %v4146_v17 }
0x44d7   :  { %v4172_v21 = vadd.f32 %v6399_v3, %v4170_v8 }
0x44d9   :  { %4174 = vst [vmem:[#allocation20 + $0x38] sm:$0xff] %v4172_v21 }
0x451b   :  { %v3807_v2 = vpop.f32.mrf.mxu0 }
0x451c   :  { %v3828_v20 = vadd.f32 %v3827_v18, %v3807_v2 }
0x451e   :  { %v3833_v1 = vadd.f32 %v6399_v3, %v3828_v20 }
0x4520   :  { %3834 = vst [vmem:[#allocation20] sm:$0xff] %v3833_v1 }
0x4523   :  { %v3904_v46 = vpop.f32.mrf.mxu0 }
0x4524   :  { %v3928_v31 = vadd.f32 %v3927_v28, %v3904_v46 }
0x4526   :  { %v3930_v4 = vadd.f32 %v6399_v3, %v3928_v31 }
0x4528   :  { %3932 = vst [vmem:[#allocation20 + $0x10] sm:$0xff] %v3930_v4 }
0x452b   :  { %v4002_v51 = vpop.f32.mrf.mxu0 }
0x452c   :  { %v4026_v5 = vadd.f32 %v4025_v47, %v4002_v51 }
0x452e   :  { %v4028_v54 = vadd.f32 %v6399_v3, %v4026_v5 }
0x4530   :  { %4030 = vst [vmem:[#allocation20 + $0x20] sm:$0xff] %v4028_v54 }
0x4533   :  { %v4100_v45 = vpop.f32.mrf.mxu0 }
0x4534   :  { %v4124_v58 = vadd.f32 %v4123_v41, %v4100_v45 }
0x4536   :  { %v4126_v59 = vadd.f32 %v6399_v3, %v4124_v58 }
0x4538   :  { %4128 = vst [vmem:[#allocation20 + $0x30] sm:$0xff] %v4126_v59 }
0x4539   :  { %4187 = dma.vmem_to_hbm [thread:$0]  %s4180_s17, 1024, %s4182_s1, [#allocation4], %s4915_s29, %s4915_s29, %s4916_s30  }
0x453a   :  { %4912 = dma.done.wait [#allocation4], 1024  }
0x453b   :  { %4913 = vsyncadd [#allocation4], 4294966272 }
0x453c   :  { %4192 = vsyncpa [#allocation3], 1 }
0x453d   :  { %4193 = vsyncpa [#allocation6], 1 }
0x453e   :  { %4194 = vsyncpa [#allocation9], 1 }
0x453f   :  { %4195 = vsyncpa [#allocation12], 1 }
0x4540   :  { %4196 = vsyncpa [#allocation15], 1 }
0x4541   :  { %4197 = vsyncpa [#allocation18], 1 }
0x4542   :  { %4198 = vsyncpa [#allocation4], 1 }

</bundles_post_ra>
